<compile_context>
chip_gen: v7x
topology: tpu7x:2x2x1
jax: 0.10.0
libtpu: 0.0.40
codegen_flags: <defaults>
</compile_context>

<pallas_src>
import functools

import jax
import jax.numpy as jnp
from jax.experimental import pallas as pl
from jax.experimental.pallas import tpu as pltpu

EPS = 1e-5
LANES = 128                      # channel padding granularity (lane width)

_VMEM_LIMIT = None


def _vmem_limit():
    """Scoped-VMEM budget: 3/4 of physical, capped (v5e/v6e ~96 MiB, v7x 48 MiB)."""
    global _VMEM_LIMIT
    if _VMEM_LIMIT is None:
        try:
            cap = int(pltpu.get_tpu_info().vmem_capacity_bytes)
            _VMEM_LIMIT = min(112 * 1024 * 1024, (cap * 3) // 4)
        except Exception:
            _VMEM_LIMIT = 48 * 1024 * 1024
    return _VMEM_LIMIT


def _round_up(x, m):
    return (x + m - 1) // m * m


def _pick_tn(cp):
    # Whole padded Cout when it fits comfortably: fills the 256-wide MXU on
    # v6e/v7x and keeps n_ct == 1 for all standard ResNet block widths.
    if cp <= 512:
        return cp
    return 256 if cp % 256 == 0 else LANES


# ----------------------------------------------------------------------------
# Kernel A: direct conv (k x k, stride s) + fused per-image BN partial stats.
#   grid = (N, Cout_tiles), both "parallel" (no cross-step state).
#   inputs : stride-phase views of the (spatially padded) NHWC bf16 image so
#            every tap is a contiguous *static* slice; flattened bf16 weights
#            (k*k*Cin_p, tn) in (tap-major, channel-minor) row order.
#   outputs: y     (N, Ho*Wo, Cout_p) bf16 pre-BN conv output (lane dense)
#            stats (N, 2, Cout_p)     f32 per-image [sum, sum of squares]
#   The conv runs as k*k per-tap MXU matmuls accumulated in f32 — the im2col
#   matrix is never materialised (no patch scratch, no patch vst traffic).
# ----------------------------------------------------------------------------
def _conv_stats_kernel(*refs, n_phases, phase_idx, k, stride, ho, wo, cin_p):
    x_refs = refs[:n_phases]
    w_ref = refs[n_phases]
    y_ref = refs[n_phases + 1]
    stats_ref = refs[n_phases + 2]

    acc = None
    for i in range(k):
        for j in range(k):
            ph = phase_idx[(i % stride, j % stride)]
            i0, j0 = i // stride, j // stride
            tap = x_refs[ph][0, i0:i0 + ho, j0:j0 + wo, :]       # (ho, wo, cin_p) bf16
            lhs = tap.reshape(ho * wo, cin_p)                    # merge leading dims
            t = i * k + j
            rhs = w_ref[t * cin_p:(t + 1) * cin_p, :]            # (cin_p, tn) bf16
            part = jnp.dot(lhs, rhs, preferred_element_type=jnp.float32)
            acc = part if acc is None else acc + part

    y_ref[0] = acc.astype(y_ref.dtype)                           # bf16 writeback

    # Per-image BN partial stats from the exact f32 accumulator; two separate
    # row stores (no cross-sublane concatenate).
    stats_ref[0, 0:1, :] = jnp.sum(acc, axis=0, keepdims=True)
    stats_ref[0, 1:2, :] = jnp.sum(acc * acc, axis=0, keepdims=True)


def conv_bn_stats(x_phases, phase_idx, w_flat, *, k, stride, ho, wo, cin_p,
                  cout_p, tn):
    n_ph = len(x_phases)
    n_img = x_phases[0].shape[0]
    kk = w_flat.shape[0]
    assert kk == k * k * cin_p
    n_ct = cout_p // tn

    in_specs = [pl.BlockSpec((1,) + xp.shape[1:], lambda n, c: (n, 0, 0, 0))
                for xp in x_phases]
    in_specs.append(pl.BlockSpec((kk, tn), lambda n, c: (0, c)))

    grid_spec = pltpu.PrefetchScalarGridSpec(
        num_scalar_prefetch=0,
        grid=(n_img, n_ct),
        in_specs=in_specs,
        out_specs=[pl.BlockSpec((1, ho * wo, tn), lambda n, c: (n, 0, c)),
                   pl.BlockSpec((1, 2, tn), lambda n, c: (n, 0, c))],
    )
    y, stats = pl.pallas_call(
        functools.partial(_conv_stats_kernel, n_phases=n_ph, phase_idx=phase_idx,
                          k=k, stride=stride, ho=ho, wo=wo, cin_p=cin_p),
        grid_spec=grid_spec,
        out_shape=[jax.ShapeDtypeStruct((n_img, ho * wo, cout_p), jnp.bfloat16),
                   jax.ShapeDtypeStruct((n_img, 2, cout_p), jnp.float32)],
        compiler_params=pltpu.CompilerParams(
            dimension_semantics=("parallel", "parallel"),
            vmem_limit_bytes=_vmem_limit()),
    )(*x_phases, w_flat)
    return y, stats


# ----------------------------------------------------------------------------
# Kernel B: BN + ReLU (f32 math) -> spatially re-padded bf16 image feeding the
#           second 3x3 conv.  Border written once, interior in one big store.
# ----------------------------------------------------------------------------
def _bn_relu_pad_kernel(y_ref, sc_ref, sh_ref, o_ref, *, ho, wo):
    tn = o_ref.shape[-1]
    zrow = jnp.zeros((1, wo + 2, tn), o_ref.dtype)
    zcol = jnp.zeros((ho + 2, 1, tn), o_ref.dtype)
    o_ref[0, 0:1, :, :] = zrow
    o_ref[0, ho + 1:ho + 2, :, :] = zrow
    o_ref[0, :, 0:1, :] = zcol
    o_ref[0, :, wo + 1:wo + 2, :] = zcol
    yn = jnp.maximum(
        y_ref[...].astype(jnp.float32) * sc_ref[...] + sh_ref[...], 0.0)
    o_ref[0, 1:1 + ho, 1:1 + wo, :] = yn.reshape(ho, wo, tn).astype(o_ref.dtype)


def bn_relu_pad(y_flat, scale, shift, *, ho, wo, tn):
    n_img, m, cp = y_flat.shape
    n_ct = cp // tn
    return pl.pallas_call(
        functools.partial(_bn_relu_pad_kernel, ho=ho, wo=wo),
        grid=(n_img, n_ct),
        in_specs=[pl.BlockSpec((1, m, tn), lambda n, c: (n, 0, c)),
                  pl.BlockSpec((1, 1, tn), lambda n, c: (0, 0, c)),
                  pl.BlockSpec((1, 1, tn), lambda n, c: (0, 0, c))],
        out_specs=pl.BlockSpec((1, ho + 2, wo + 2, tn), lambda n, c: (n, 0, 0, c)),
        out_shape=jax.ShapeDtypeStruct((n_img, ho + 2, wo + 2, cp), jnp.bfloat16),
        compiler_params=pltpu.CompilerParams(
            dimension_semantics=("parallel", "parallel"),
            vmem_limit_bytes=_vmem_limit()),
    )(y_flat, scale, shift)


# ----------------------------------------------------------------------------
# Kernel C: fused BN(main) + BN(skip) + residual add + ReLU (lane-dense tiles).
# ----------------------------------------------------------------------------
def _bn_add_relu_kernel(y2_ref, ys_ref, a2_ref, b2_ref, as_ref, bs_ref, o_ref):
    y2 = y2_ref[...].astype(jnp.float32)
    ys = ys_ref[...].astype(jnp.float32)
    o_ref[...] = jnp.maximum(
        y2 * a2_ref[...] + b2_ref[...] + ys * as_ref[...] + bs_ref[...], 0.0)


def bn_add_relu(y2, ys, sc2, sh2, scs, shs, *, tn):
    n_img, m, cp = y2.shape
    n_ct = cp // tn
    data = pl.BlockSpec((1, m, tn), lambda n, c: (n, 0, c))
    vec = pl.BlockSpec((1, 1, tn), lambda n, c: (0, 0, c))
    return pl.pallas_call(
        _bn_add_relu_kernel,
        grid=(n_img, n_ct),
        in_specs=[data, data, vec, vec, vec, vec],
        out_specs=data,
        out_shape=jax.ShapeDtypeStruct((n_img, m, cp), jnp.float32),
        compiler_params=pltpu.CompilerParams(
            dimension_semantics=("parallel", "parallel"),
            vmem_limit_bytes=_vmem_limit()),
    )(y2, ys, sc2, sh2, scs, shs)


# ----------------------------------------------------------------------------
# JAX glue
# ----------------------------------------------------------------------------
def _prep_conv_weight(w_oihw, cin_pad, cout_pad):
    # (Cout, Cin, kh, kw) -> (kh*kw*cin_pad, cout_pad) bf16, (kh, kw, cin) row
    # order (matches the in-kernel tap ordering).  Conv bias is dropped: it is
    # exactly cancelled by the batch-statistics BatchNorm that follows.
    co, ci, kh, kw = w_oihw.shape
    w = jnp.transpose(w_oihw, (2, 3, 1, 0))
    w = jnp.pad(w, ((0, 0), (0, 0), (0, cin_pad - ci), (0, cout_pad - co)))
    return w.reshape(kh * kw * cin_pad, cout_pad).astype(jnp.bfloat16)


def _make_phases(x_img, k, stride):
    # Pre-split H and W into stride phases so every in-kernel tap slice is a
    # contiguous static slice (no strided / overlapping windows).  Only the
    # phases actually touched by the k*k taps are produced (k=1 -> 1 phase).
    keys = sorted({(i % stride, j % stride) for i in range(k) for j in range(k)})
    idx = {key: n for n, key in enumerate(keys)}
    if stride == 1:
        return [x_img], idx
    return [x_img[:, a::stride, b::stride, :] for (a, b) in keys], idx


def _bn_scale_shift(stats, gamma, beta, count, cp):
    # Per-channel scale/shift hoisted out of the kernels (computed once, f32).
    # stats: per-image partials (N, 2, cp); reduce over the batch here.
    s = jnp.sum(stats, axis=0)
    g = jnp.pad(gamma.astype(jnp.float32), (0, cp - gamma.shape[0]))
    b = jnp.pad(beta.astype(jnp.float32), (0, cp - beta.shape[0]))
    mean = s[0] / count
    var = jnp.maximum(s[1] / count - mean * mean, 0.0)
    scale = g * jax.lax.rsqrt(var + EPS)
    shift = b - mean * scale
    return scale.reshape(1, 1, cp), shift.reshape(1, 1, cp)


def resblock_forward_nhwc(x_nhwc, p, stride):
    n_img, h, w, cin = x_nhwc.shape
    cout = p["w1"].shape[0]
    cp = _round_up(cout, LANES)            # lane-dense Cout padding
    cinp = _round_up(cin, LANES)           # lane-dense Cin padding
    ho = (h - 1) // stride + 1
    wo = (w - 1) // stride + 1
    count = float(n_img * ho * wo)
    tn = _pick_tn(cp)

    w1 = _prep_conv_weight(p["w1"], cinp, cp)
    w2 = _prep_conv_weight(p["w2"], cp, cp)
    ws = _prep_conv_weight(p["ws"], cinp, cp)

    # bf16 + channel-padded input, cast once in glue (review pt 1).
    x_cp = jnp.pad(x_nhwc, ((0, 0), (0, 0), (0, 0),
                            (0, cinp - cin))).astype(jnp.bfloat16)
    x_pad = jnp.pad(x_cp, ((0, 0), (1, 1), (1, 1), (0, 0)))

    # main branch: conv3x3(stride)+stats -> BN+ReLU (re-padded) -> conv3x3+stats
    ph1, idx1 = _make_phases(x_pad, 3, stride)
    y1, st1 = conv_bn_stats(ph1, idx1, w1, k=3, stride=stride, ho=ho, wo=wo,
                            cin_p=cinp, cout_p=cp, tn=tn)
    sc1, sh1 = _bn_scale_shift(st1, p["g1"], p["be1"], count, cp)
    y1p = bn_relu_pad(y1, sc1, sh1, ho=ho, wo=wo, tn=tn)   # bf16 padded image

    ph2, idx2 = _make_phases(y1p, 3, 1)
    y2, st2 = conv_bn_stats(ph2, idx2, w2, k=3, stride=1, ho=ho, wo=wo,
                            cin_p=cp, cout_p=cp, tn=tn)
    sc2, sh2 = _bn_scale_shift(st2, p["g2"], p["be2"], count, cp)

    # skip branch: 1x1 conv(stride) + stats (H/W pre-strided in glue -> single
    # matmul per image, no copies)
    phs, idxs = _make_phases(x_cp, 1, stride)
    ys, sts = conv_bn_stats(phs, idxs, ws, k=1, stride=stride, ho=ho, wo=wo,
                            cin_p=cinp, cout_p=cp, tn=tn)
    scs, shs = _bn_scale_shift(sts, p["gs"], p["bes"], count, cp)

    # fused BN(main) + BN(skip) + add + ReLU
    out = bn_add_relu(y2, ys, sc2, sh2, scs, shs, tn=tn)
    return out.reshape(n_img, ho, wo, cp)[..., :cout]


@functools.partial(jax.jit, static_argnums=2)
def resblock_forward(x_nchw, p, stride):
    # Module boundary is NCHW only for PyTorch parity; everything inside is NHWC.
    x = jnp.transpose(x_nchw, (0, 2, 3, 1))
    out = resblock_forward_nhwc(x, p, stride)
    return jnp.transpose(out, (0, 3, 1, 2))


# ----------------------------------------------------------------------------
# Pure-JAX reference (training-mode BatchNorm, PyTorch default forward).
# bf16_storage=True mirrors the kernel's quantisation points: bf16 conv
# operands + bf16-stored conv outputs, with BN stats taken from the exact
# f32 conv output — a tight plumbing check.
# ----------------------------------------------------------------------------
def reference_forward(x, p, stride, bf16_storage=False):
    q = ((lambda a: a.astype(jnp.bfloat16).astype(jnp.float32))
         if bf16_storage else (lambda a: a))

    def conv(t, w, b, s, pad):
        y = jax.lax.conv_general_dilated(
            q(t), q(w), (s, s), [(pad, pad), (pad, pad)],
            dimension_numbers=("NCHW", "OIHW", "NCHW"),
            precision=jax.lax.Precision.HIGHEST)
        return y + b[None, :, None, None]

    def bn(t, g, be):
        mean = t.mean(axis=(0, 2, 3), keepdims=True)
        var = ((t - mean) ** 2).mean(axis=(0, 2, 3), keepdims=True)
        return (q(t) - mean) * jax.lax.rsqrt(var + EPS) * g[None, :, None, None] \
            + be[None, :, None, None]

    y = conv(x, p["w1"], p["b1"], stride, 1)
    y = jnp.maximum(bn(y, p["g1"], p["be1"]), 0.0)
    y = conv(y, p["w2"], p["b2"], 1, 1)
    y = bn(y, p["g2"], p["be2"])
    s = conv(x, p["ws"], p["bs"], stride, 0)
    s = bn(s, p["gs"], p["bes"])
    return jnp.maximum(y + s, 0.0)


def make_params(key, cin, cout):
    ks = jax.random.split(key, 12)

    def w(k, shape, fan_in):
        return jax.random.normal(k, shape, jnp.float32) / jnp.sqrt(fan_in)

    return {
        "w1": w(ks[0], (cout, cin, 3, 3), 9 * cin),
        "b1": 0.1 * jax.random.normal(ks[1], (cout,), jnp.float32),
        "g1": 1.0 + 0.1 * jax.random.normal(ks[2], (cout,), jnp.float32),
        "be1": 0.1 * jax.random.normal(ks[3], (cout,), jnp.float32),
        "w2": w(ks[4], (cout, cout, 3, 3), 9 * cout),
        "b2": 0.1 * jax.random.normal(ks[5], (cout,), jnp.float32),
        "g2": 1.0 + 0.1 * jax.random.normal(ks[6], (cout,), jnp.float32),
        "be2": 0.1 * jax.random.normal(ks[7], (cout,), jnp.float32),
        "ws": w(ks[8], (cout, cin, 1, 1), cin),
        "bs": 0.1 * jax.random.normal(ks[9], (cout,), jnp.float32),
        "gs": 1.0 + 0.1 * jax.random.normal(ks[10], (cout,), jnp.float32),
        "bes": 0.1 * jax.random.normal(ks[11], (cout,), jnp.float32),
    }


if __name__ == "__main__":
    key = jax.random.PRNGKey(0)
    kx, kp = jax.random.split(key)

    N, Cin, Cout, H, W, stride = 2, 4, 8, 16, 16, 2
    x = jax.random.normal(kx, (N, Cin, H, W), jnp.float32)      # NCHW input
    params = make_params(kp, Cin, Cout)

    out = jax.block_until_ready(resblock_forward(x, params, stride))

    # Plumbing check against a reference with the kernel's bf16 rounding points
    # (bf16 conv operands + bf16-stored activations => slightly looser atol).
    ref_q = jax.block_until_ready(reference_forward(x, params, stride, True))
    # Semantic check against the full-f32 reference (bf16 MXU / storage tol).
    ref_f = jax.block_until_ready(reference_forward(x, params, stride, False))

    assert out.shape == ref_f.shape == (N, Cout, H // stride, W // stride)
    err_q = float(jnp.max(jnp.abs(out - ref_q)))
    err_f = float(jnp.max(jnp.abs(out - ref_f)))
    assert jnp.allclose(out, ref_q, atol=2.5e-2, rtol=2e-2), err_q
    assert jnp.allclose(out, ref_f, atol=5e-2, rtol=5e-2), err_f

    print("KERNEL_OK")
</pallas_src>

<mosaic_0001>
module attributes {stable_mosaic.version = 11 : i64} {
  func.func @_conv_stats_kernel(%arg0: i32, %arg1: i32, %arg2: memref<1x9x9x128xbf16, #tpu.memory_space<vmem>>, %arg3: memref<1x9x9x128xbf16, #tpu.memory_space<vmem>>, %arg4: memref<1x9x9x128xbf16, #tpu.memory_space<vmem>>, %arg5: memref<1x9x9x128xbf16, #tpu.memory_space<vmem>>, %arg6: memref<1152x128xbf16, #tpu.memory_space<vmem>>, %arg7: memref<1x64x128xbf16, #tpu.memory_space<vmem>>, %arg8: memref<1x2x128xf32, #tpu.memory_space<vmem>>) attributes {dimension_semantics = [#tpu.dimension_semantics<parallel>, #tpu.dimension_semantics<parallel>], iteration_bounds = array<i64: 2, 1>, scalar_prefetch = 0 : i64, scratch_operands = 0 : i64, tpu.core_type = #tpu.core_type<tc>, window_params = [{transform_indices = @transform_0, window_bounds = array<i64: 1, 9, 9, 128>}, {transform_indices = @transform_1, window_bounds = array<i64: 1, 9, 9, 128>}, {transform_indices = @transform_2, window_bounds = array<i64: 1, 9, 9, 128>}, {transform_indices = @transform_3, window_bounds = array<i64: 1, 9, 9, 128>}, {transform_indices = @transform_4, window_bounds = array<i64: 1152, 128>}, {transform_indices = @transform_5, window_bounds = array<i64: 1, 64, 128>}, {transform_indices = @transform_6, window_bounds = array<i64: 1, 2, 128>}]} {
    %c0 = arith.constant 0 : index
    %c0_0 = arith.constant 0 : index
    %c0_1 = arith.constant 0 : index
    %c0_2 = arith.constant 0 : index
    %0 = vector.load %arg2[%c0, %c0_0, %c0_1, %c0_2] : memref<1x9x9x128xbf16, #tpu.memory_space<vmem>>, vector<1x8x8x128xbf16>
    %1 = vector.shape_cast %0 : vector<1x8x8x128xbf16> to vector<8x8x128xbf16>
    %2 = vector.shape_cast %1 : vector<8x8x128xbf16> to vector<64x128xbf16>
    %c0_3 = arith.constant 0 : index
    %c0_4 = arith.constant 0 : index
    %3 = vector.load %arg6[%c0_3, %c0_4] : memref<1152x128xbf16, #tpu.memory_space<vmem>>, vector<128x128xbf16>
    %cst = arith.constant dense<0.000000e+00> : vector<64x128xf32>
    %4 = tpu.matmul %2, %3, %cst {dimension_numbers = #tpu.dot_dimension_numbers<[1], [0], [0], [1], [0, 0, 1, 1], [], []>} : vector<64x128xbf16>, vector<128x128xbf16>, vector<64x128xf32> -> vector<64x128xf32>
    %c0_5 = arith.constant 0 : index
    %c0_6 = arith.constant 0 : index
    %c0_7 = arith.constant 0 : index
    %c0_8 = arith.constant 0 : index
    %5 = vector.load %arg3[%c0_5, %c0_6, %c0_7, %c0_8] : memref<1x9x9x128xbf16, #tpu.memory_space<vmem>>, vector<1x8x8x128xbf16>
    %6 = vector.shape_cast %5 : vector<1x8x8x128xbf16> to vector<8x8x128xbf16>
    %7 = vector.shape_cast %6 : vector<8x8x128xbf16> to vector<64x128xbf16>
    %c128 = arith.constant 128 : index
    %c0_9 = arith.constant 0 : index
    %8 = vector.load %arg6[%c128, %c0_9] : memref<1152x128xbf16, #tpu.memory_space<vmem>>, vector<128x128xbf16>
    %cst_10 = arith.constant dense<0.000000e+00> : vector<64x128xf32>
    %9 = tpu.matmul %7, %8, %cst_10 {dimension_numbers = #tpu.dot_dimension_numbers<[1], [0], [0], [1], [0, 0, 1, 1], [], []>} : vector<64x128xbf16>, vector<128x128xbf16>, vector<64x128xf32> -> vector<64x128xf32>
    %10 = arith.addf %4, %9 : vector<64x128xf32>
    %c0_11 = arith.constant 0 : index
    %c0_12 = arith.constant 0 : index
    %c1 = arith.constant 1 : index
    %c0_13 = arith.constant 0 : index
    %11 = vector.load %arg2[%c0_11, %c0_12, %c1, %c0_13] : memref<1x9x9x128xbf16, #tpu.memory_space<vmem>>, vector<1x8x8x128xbf16>
    %12 = vector.shape_cast %11 : vector<1x8x8x128xbf16> to vector<8x8x128xbf16>
    %13 = vector.shape_cast %12 : vector<8x8x128xbf16> to vector<64x128xbf16>
    %c256 = arith.constant 256 : index
    %c0_14 = arith.constant 0 : index
    %14 = vector.load %arg6[%c256, %c0_14] : memref<1152x128xbf16, #tpu.memory_space<vmem>>, vector<128x128xbf16>
    %cst_15 = arith.constant dense<0.000000e+00> : vector<64x128xf32>
    %15 = tpu.matmul %13, %14, %cst_15 {dimension_numbers = #tpu.dot_dimension_numbers<[1], [0], [0], [1], [0, 0, 1, 1], [], []>} : vector<64x128xbf16>, vector<128x128xbf16>, vector<64x128xf32> -> vector<64x128xf32>
    %16 = arith.addf %10, %15 : vector<64x128xf32>
    %c0_16 = arith.constant 0 : index
    %c0_17 = arith.constant 0 : index
    %c0_18 = arith.constant 0 : index
    %c0_19 = arith.constant 0 : index
    %17 = vector.load %arg4[%c0_16, %c0_17, %c0_18, %c0_19] : memref<1x9x9x128xbf16, #tpu.memory_space<vmem>>, vector<1x8x8x128xbf16>
    %18 = vector.shape_cast %17 : vector<1x8x8x128xbf16> to vector<8x8x128xbf16>
    %19 = vector.shape_cast %18 : vector<8x8x128xbf16> to vector<64x128xbf16>
    %c384 = arith.constant 384 : index
    %c0_20 = arith.constant 0 : index
    %20 = vector.load %arg6[%c384, %c0_20] : memref<1152x128xbf16, #tpu.memory_space<vmem>>, vector<128x128xbf16>
    %cst_21 = arith.constant dense<0.000000e+00> : vector<64x128xf32>
    %21 = tpu.matmul %19, %20, %cst_21 {dimension_numbers = #tpu.dot_dimension_numbers<[1], [0], [0], [1], [0, 0, 1, 1], [], []>} : vector<64x128xbf16>, vector<128x128xbf16>, vector<64x128xf32> -> vector<64x128xf32>
    %22 = arith.addf %16, %21 : vector<64x128xf32>
    %c0_22 = arith.constant 0 : index
    %c0_23 = arith.constant 0 : index
    %c0_24 = arith.constant 0 : index
    %c0_25 = arith.constant 0 : index
    %23 = vector.load %arg5[%c0_22, %c0_23, %c0_24, %c0_25] : memref<1x9x9x128xbf16, #tpu.memory_space<vmem>>, vector<1x8x8x128xbf16>
    %24 = vector.shape_cast %23 : vector<1x8x8x128xbf16> to vector<8x8x128xbf16>
    %25 = vector.shape_cast %24 : vector<8x8x128xbf16> to vector<64x128xbf16>
    %c512 = arith.constant 512 : index
    %c0_26 = arith.constant 0 : index
    %26 = vector.load %arg6[%c512, %c0_26] : memref<1152x128xbf16, #tpu.memory_space<vmem>>, vector<128x128xbf16>
    %cst_27 = arith.constant dense<0.000000e+00> : vector<64x128xf32>
    %27 = tpu.matmul %25, %26, %cst_27 {dimension_numbers = #tpu.dot_dimension_numbers<[1], [0], [0], [1], [0, 0, 1, 1], [], []>} : vector<64x128xbf16>, vector<128x128xbf16>, vector<64x128xf32> -> vector<64x128xf32>
    %28 = arith.addf %22, %27 : vector<64x128xf32>
    %c0_28 = arith.constant 0 : index
    %c0_29 = arith.constant 0 : index
    %c1_30 = arith.constant 1 : index
    %c0_31 = arith.constant 0 : index
    %29 = vector.load %arg4[%c0_28, %c0_29, %c1_30, %c0_31] : memref<1x9x9x128xbf16, #tpu.memory_space<vmem>>, vector<1x8x8x128xbf16>
    %30 = vector.shape_cast %29 : vector<1x8x8x128xbf16> to vector<8x8x128xbf16>
    %31 = vector.shape_cast %30 : vector<8x8x128xbf16> to vector<64x128xbf16>
    %c640 = arith.constant 640 : index
    %c0_32 = arith.constant 0 : index
    %32 = vector.load %arg6[%c640, %c0_32] : memref<1152x128xbf16, #tpu.memory_space<vmem>>, vector<128x128xbf16>
    %cst_33 = arith.constant dense<0.000000e+00> : vector<64x128xf32>
    %33 = tpu.matmul %31, %32, %cst_33 {dimension_numbers = #tpu.dot_dimension_numbers<[1], [0], [0], [1], [0, 0, 1, 1], [], []>} : vector<64x128xbf16>, vector<128x128xbf16>, vector<64x128xf32> -> vector<64x128xf32>
    %34 = arith.addf %28, %33 : vector<64x128xf32>
    %c0_34 = arith.constant 0 : index
    %c1_35 = arith.constant 1 : index
    %c0_36 = arith.constant 0 : index
    %c0_37 = arith.constant 0 : index
    %35 = vector.load %arg2[%c0_34, %c1_35, %c0_36, %c0_37] : memref<1x9x9x128xbf16, #tpu.memory_space<vmem>>, vector<1x8x8x128xbf16>
    %36 = vector.shape_cast %35 : vector<1x8x8x128xbf16> to vector<8x8x128xbf16>
    %37 = vector.shape_cast %36 : vector<8x8x128xbf16> to vector<64x128xbf16>
    %c768 = arith.constant 768 : index
    %c0_38 = arith.constant 0 : index
    %38 = vector.load %arg6[%c768, %c0_38] : memref<1152x128xbf16, #tpu.memory_space<vmem>>, vector<128x128xbf16>
    %cst_39 = arith.constant dense<0.000000e+00> : vector<64x128xf32>
    %39 = tpu.matmul %37, %38, %cst_39 {dimension_numbers = #tpu.dot_dimension_numbers<[1], [0], [0], [1], [0, 0, 1, 1], [], []>} : vector<64x128xbf16>, vector<128x128xbf16>, vector<64x128xf32> -> vector<64x128xf32>
    %40 = arith.addf %34, %39 : vector<64x128xf32>
    %c0_40 = arith.constant 0 : index
    %c1_41 = arith.constant 1 : index
    %c0_42 = arith.constant 0 : index
    %c0_43 = arith.constant 0 : index
    %41 = vector.load %arg3[%c0_40, %c1_41, %c0_42, %c0_43] : memref<1x9x9x128xbf16, #tpu.memory_space<vmem>>, vector<1x8x8x128xbf16>
    %42 = vector.shape_cast %41 : vector<1x8x8x128xbf16> to vector<8x8x128xbf16>
    %43 = vector.shape_cast %42 : vector<8x8x128xbf16> to vector<64x128xbf16>
    %c896 = arith.constant 896 : index
    %c0_44 = arith.constant 0 : index
    %44 = vector.load %arg6[%c896, %c0_44] : memref<1152x128xbf16, #tpu.memory_space<vmem>>, vector<128x128xbf16>
    %cst_45 = arith.constant dense<0.000000e+00> : vector<64x128xf32>
    %45 = tpu.matmul %43, %44, %cst_45 {dimension_numbers = #tpu.dot_dimension_numbers<[1], [0], [0], [1], [0, 0, 1, 1], [], []>} : vector<64x128xbf16>, vector<128x128xbf16>, vector<64x128xf32> -> vector<64x128xf32>
    %46 = arith.addf %40, %45 : vector<64x128xf32>
    %c0_46 = arith.constant 0 : index
    %c1_47 = arith.constant 1 : index
    %c1_48 = arith.constant 1 : index
    %c0_49 = arith.constant 0 : index
    %47 = vector.load %arg2[%c0_46, %c1_47, %c1_48, %c0_49] : memref<1x9x9x128xbf16, #tpu.memory_space<vmem>>, vector<1x8x8x128xbf16>
    %48 = vector.shape_cast %47 : vector<1x8x8x128xbf16> to vector<8x8x128xbf16>
    %49 = vector.shape_cast %48 : vector<8x8x128xbf16> to vector<64x128xbf16>
    %c1024 = arith.constant 1024 : index
    %c0_50 = arith.constant 0 : index
    %50 = vector.load %arg6[%c1024, %c0_50] : memref<1152x128xbf16, #tpu.memory_space<vmem>>, vector<128x128xbf16>
    %cst_51 = arith.constant dense<0.000000e+00> : vector<64x128xf32>
    %51 = tpu.matmul %49, %50, %cst_51 {dimension_numbers = #tpu.dot_dimension_numbers<[1], [0], [0], [1], [0, 0, 1, 1], [], []>} : vector<64x128xbf16>, vector<128x128xbf16>, vector<64x128xf32> -> vector<64x128xf32>
    %52 = arith.addf %46, %51 : vector<64x128xf32>
    %53 = arith.truncf %52 : vector<64x128xf32> to vector<64x128xbf16>
    %c0_52 = arith.constant 0 : index
    %c0_53 = arith.constant 0 : index
    %c0_54 = arith.constant 0 : index
    %54 = vector.load %arg7[%c0_52, %c0_53, %c0_54] : memref<1x64x128xbf16, #tpu.memory_space<vmem>>, vector<1x64x128xbf16>
    %55 = vector.shape_cast %54 : vector<1x64x128xbf16> to vector<64x128xbf16>
    %56 = vector.shape_cast %53 : vector<64x128xbf16> to vector<1x64x128xbf16>
    tpu.vector_store %arg7[%c0_52, %c0_53, %c0_54], %56 {strides = array<i32>} : memref<1x64x128xbf16, #tpu.memory_space<vmem>>, vector<1x64x128xbf16>,
    %cst_55 = arith.constant dense<0.000000e+00> : vector<128xf32>
    %57 = vector.multi_reduction <add>, %52, %cst_55 [0] : vector<64x128xf32> to vector<128xf32>
    %58 = vector.shape_cast %57 : vector<128xf32> to vector<1x128xf32>
    %c0_56 = arith.constant 0 : index
    %c0_57 = arith.constant 0 : index
    %c0_58 = arith.constant 0 : index
    %59 = vector.load %arg8[%c0_56, %c0_57, %c0_58] : memref<1x2x128xf32, #tpu.memory_space<vmem>>, vector<1x1x128xf32>
    %60 = vector.shape_cast %59 : vector<1x1x128xf32> to vector<1x128xf32>
    %61 = vector.shape_cast %58 : vector<1x128xf32> to vector<1x1x128xf32>
    tpu.vector_store %arg8[%c0_56, %c0_57, %c0_58], %61 {strides = array<i32>} : memref<1x2x128xf32, #tpu.memory_space<vmem>>, vector<1x1x128xf32>,
    %62 = arith.mulf %52, %52 : vector<64x128xf32>
    %cst_59 = arith.constant dense<0.000000e+00> : vector<128xf32>
    %63 = vector.multi_reduction <add>, %62, %cst_59 [0] : vector<64x128xf32> to vector<128xf32>
    %64 = vector.shape_cast %63 : vector<128xf32> to vector<1x128xf32>
    %c0_60 = arith.constant 0 : index
    %c1_61 = arith.constant 1 : index
    %c0_62 = arith.constant 0 : index
    %65 = vector.load %arg8[%c0_60, %c1_61, %c0_62] : memref<1x2x128xf32, #tpu.memory_space<vmem>>, vector<1x1x128xf32>
    %66 = vector.shape_cast %65 : vector<1x1x128xf32> to vector<1x128xf32>
    %67 = vector.shape_cast %64 : vector<1x128xf32> to vector<1x1x128xf32>
    tpu.vector_store %arg8[%c0_60, %c1_61, %c0_62], %67 {strides = array<i32>} : memref<1x2x128xf32, #tpu.memory_space<vmem>>, vector<1x1x128xf32>,
    return
  }
  func.func @transform_0(%arg0: i32, %arg1: i32) -> (i32, i32, i32, i32) {
    %c0_i32 = arith.constant 0 : i32
    %c0_i32_0 = arith.constant 0 : i32
    %c0_i32_1 = arith.constant 0 : i32
    %c0_i32_2 = arith.constant 0 : i32
    return %arg0, %c0_i32, %c0_i32_0, %c0_i32_1 : i32, i32, i32, i32
  }
  func.func @transform_1(%arg0: i32, %arg1: i32) -> (i32, i32, i32, i32) {
    %c0_i32 = arith.constant 0 : i32
    %c0_i32_0 = arith.constant 0 : i32
    %c0_i32_1 = arith.constant 0 : i32
    %c0_i32_2 = arith.constant 0 : i32
    return %arg0, %c0_i32, %c0_i32_0, %c0_i32_1 : i32, i32, i32, i32
  }
  func.func @transform_2(%arg0: i32, %arg1: i32) -> (i32, i32, i32, i32) {
    %c0_i32 = arith.constant 0 : i32
    %c0_i32_0 = arith.constant 0 : i32
    %c0_i32_1 = arith.constant 0 : i32
    %c0_i32_2 = arith.constant 0 : i32
    return %arg0, %c0_i32, %c0_i32_0, %c0_i32_1 : i32, i32, i32, i32
  }
  func.func @transform_3(%arg0: i32, %arg1: i32) -> (i32, i32, i32, i32) {
    %c0_i32 = arith.constant 0 : i32
    %c0_i32_0 = arith.constant 0 : i32
    %c0_i32_1 = arith.constant 0 : i32
    %c0_i32_2 = arith.constant 0 : i32
    return %arg0, %c0_i32, %c0_i32_0, %c0_i32_1 : i32, i32, i32, i32
  }
  func.func @transform_4(%arg0: i32, %arg1: i32) -> (i32, i32) {
    %c0_i32 = arith.constant 0 : i32
    %c0_i32_0 = arith.constant 0 : i32
    return %c0_i32, %arg1 : i32, i32
  }
  func.func @transform_5(%arg0: i32, %arg1: i32) -> (i32, i32, i32) {
    %c0_i32 = arith.constant 0 : i32
    %c0_i32_0 = arith.constant 0 : i32
    return %arg0, %c0_i32, %arg1 : i32, i32, i32
  }
  func.func @transform_6(%arg0: i32, %arg1: i32) -> (i32, i32, i32) {
    %c0_i32 = arith.constant 0 : i32
    %c0_i32_0 = arith.constant 0 : i32
    return %arg0, %c0_i32, %arg1 : i32, i32, i32
  }
}

module attributes {stable_mosaic.version = 11 : i64} {
  func.func @_bn_relu_pad_kernel(%arg0: i32, %arg1: i32, %arg2: memref<1x64x128xbf16, #tpu.memory_space<vmem>>, %arg3: memref<1x1x128xf32, #tpu.memory_space<vmem>>, %arg4: memref<1x1x128xf32, #tpu.memory_space<vmem>>, %arg5: memref<1x10x10x128xbf16, #tpu.memory_space<vmem>>) attributes {dimension_semantics = [#tpu.dimension_semantics<parallel>, #tpu.dimension_semantics<parallel>], iteration_bounds = array<i64: 2, 1>, scalar_prefetch = 0 : i64, scratch_operands = 0 : i64, tpu.core_type = #tpu.core_type<tc>, window_params = [{transform_indices = @transform_0, window_bounds = array<i64: 1, 64, 128>}, {transform_indices = @transform_1, window_bounds = array<i64: 1, 1, 128>}, {transform_indices = @transform_2, window_bounds = array<i64: 1, 1, 128>}, {transform_indices = @transform_3, window_bounds = array<i64: 1, 10, 10, 128>}]} {
    %cst = arith.constant 0.000000e+00 : bf16
    %0 = vector.broadcast %cst : bf16 to vector<1x10x128xbf16>
    %cst_0 = arith.constant 0.000000e+00 : bf16
    %1 = vector.broadcast %cst_0 : bf16 to vector<10x1x128xbf16>
    %c0 = arith.constant 0 : index
    %c0_1 = arith.constant 0 : index
    %c0_2 = arith.constant 0 : index
    %c0_3 = arith.constant 0 : index
    %2 = vector.load %arg5[%c0, %c0_1, %c0_2, %c0_3] : memref<1x10x10x128xbf16, #tpu.memory_space<vmem>>, vector<1x1x10x128xbf16>
    %3 = vector.shape_cast %2 : vector<1x1x10x128xbf16> to vector<1x10x128xbf16>
    %4 = vector.shape_cast %0 : vector<1x10x128xbf16> to vector<1x1x10x128xbf16>
    tpu.vector_store %arg5[%c0, %c0_1, %c0_2, %c0_3], %4 {strides = array<i32>} : memref<1x10x10x128xbf16, #tpu.memory_space<vmem>>, vector<1x1x10x128xbf16>,
    %c0_4 = arith.constant 0 : index
    %c9 = arith.constant 9 : index
    %c0_5 = arith.constant 0 : index
    %c0_6 = arith.constant 0 : index
    %5 = vector.load %arg5[%c0_4, %c9, %c0_5, %c0_6] : memref<1x10x10x128xbf16, #tpu.memory_space<vmem>>, vector<1x1x10x128xbf16>
    %6 = vector.shape_cast %5 : vector<1x1x10x128xbf16> to vector<1x10x128xbf16>
    %7 = vector.shape_cast %0 : vector<1x10x128xbf16> to vector<1x1x10x128xbf16>
    tpu.vector_store %arg5[%c0_4, %c9, %c0_5, %c0_6], %7 {strides = array<i32>} : memref<1x10x10x128xbf16, #tpu.memory_space<vmem>>, vector<1x1x10x128xbf16>,
    %c0_7 = arith.constant 0 : index
    %c0_8 = arith.constant 0 : index
    %c0_9 = arith.constant 0 : index
    %c0_10 = arith.constant 0 : index
    %8 = vector.load %arg5[%c0_7, %c0_8, %c0_9, %c0_10] : memref<1x10x10x128xbf16, #tpu.memory_space<vmem>>, vector<1x10x1x128xbf16>
    %9 = vector.shape_cast %8 : vector<1x10x1x128xbf16> to vector<10x1x128xbf16>
    %10 = vector.shape_cast %1 : vector<10x1x128xbf16> to vector<1x10x1x128xbf16>
    tpu.vector_store %arg5[%c0_7, %c0_8, %c0_9, %c0_10], %10 {strides = array<i32>} : memref<1x10x10x128xbf16, #tpu.memory_space<vmem>>, vector<1x10x1x128xbf16>,
    %c0_11 = arith.constant 0 : index
    %c0_12 = arith.constant 0 : index
    %c9_13 = arith.constant 9 : index
    %c0_14 = arith.constant 0 : index
    %11 = vector.load %arg5[%c0_11, %c0_12, %c9_13, %c0_14] : memref<1x10x10x128xbf16, #tpu.memory_space<vmem>>, vector<1x10x1x128xbf16>
    %12 = vector.shape_cast %11 : vector<1x10x1x128xbf16> to vector<10x1x128xbf16>
    %13 = vector.shape_cast %1 : vector<10x1x128xbf16> to vector<1x10x1x128xbf16>
    tpu.vector_store %arg5[%c0_11, %c0_12, %c9_13, %c0_14], %13 {strides = array<i32>} : memref<1x10x10x128xbf16, #tpu.memory_space<vmem>>, vector<1x10x1x128xbf16>,
    %c0_15 = arith.constant 0 : index
    %c0_16 = arith.constant 0 : index
    %c0_17 = arith.constant 0 : index
    %14 = vector.load %arg2[%c0_15, %c0_16, %c0_17] : memref<1x64x128xbf16, #tpu.memory_space<vmem>>, vector<1x64x128xbf16>
    %15 = arith.extf %14 : vector<1x64x128xbf16> to vector<1x64x128xf32>
    %c0_18 = arith.constant 0 : index
    %c0_19 = arith.constant 0 : index
    %c0_20 = arith.constant 0 : index
    %16 = vector.load %arg3[%c0_18, %c0_19, %c0_20] : memref<1x1x128xf32, #tpu.memory_space<vmem>>, vector<1x1x128xf32>
    %17 = vector.broadcast %16 : vector<1x1x128xf32> to vector<1x64x128xf32>
    %18 = arith.mulf %15, %17 : vector<1x64x128xf32>
    %c0_21 = arith.constant 0 : index
    %c0_22 = arith.constant 0 : index
    %c0_23 = arith.constant 0 : index
    %19 = vector.load %arg4[%c0_21, %c0_22, %c0_23] : memref<1x1x128xf32, #tpu.memory_space<vmem>>, vector<1x1x128xf32>
    %20 = vector.broadcast %19 : vector<1x1x128xf32> to vector<1x64x128xf32>
    %21 = arith.addf %18, %20 : vector<1x64x128xf32>
    %cst_24 = arith.constant 0.000000e+00 : f32
    %22 = vector.broadcast %cst_24 : f32 to vector<1x64x128xf32>
    %23 = arith.maximumf %21, %22 : vector<1x64x128xf32>
    %24 = vector.shape_cast %23 : vector<1x64x128xf32> to vector<8x8x128xf32>
    %25 = arith.truncf %24 : vector<8x8x128xf32> to vector<8x8x128xbf16>
    %c0_25 = arith.constant 0 : index
    %c1 = arith.constant 1 : index
    %c1_26 = arith.constant 1 : index
    %c0_27 = arith.constant 0 : index
    %26 = vector.load %arg5[%c0_25, %c1, %c1_26, %c0_27] : memref<1x10x10x128xbf16, #tpu.memory_space<vmem>>, vector<1x8x8x128xbf16>
    %27 = vector.shape_cast %26 : vector<1x8x8x128xbf16> to vector<8x8x128xbf16>
    %28 = vector.shape_cast %25 : vector<8x8x128xbf16> to vector<1x8x8x128xbf16>
    tpu.vector_store %arg5[%c0_25, %c1, %c1_26, %c0_27], %28 {strides = array<i32>} : memref<1x10x10x128xbf16, #tpu.memory_space<vmem>>, vector<1x8x8x128xbf16>,
    return
  }
  func.func @transform_0(%arg0: i32, %arg1: i32) -> (i32, i32, i32) {
    %c0_i32 = arith.constant 0 : i32
    %c0_i32_0 = arith.constant 0 : i32
    return %arg0, %c0_i32, %arg1 : i32, i32, i32
  }
  func.func @transform_1(%arg0: i32, %arg1: i32) -> (i32, i32, i32) {
    %c0_i32 = arith.constant 0 : i32
    %c0_i32_0 = arith.constant 0 : i32
    %c0_i32_1 = arith.constant 0 : i32
    return %c0_i32, %c0_i32_0, %arg1 : i32, i32, i32
  }
  func.func @transform_2(%arg0: i32, %arg1: i32) -> (i32, i32, i32) {
    %c0_i32 = arith.constant 0 : i32
    %c0_i32_0 = arith.constant 0 : i32
    %c0_i32_1 = arith.constant 0 : i32
    return %c0_i32, %c0_i32_0, %arg1 : i32, i32, i32
  }
  func.func @transform_3(%arg0: i32, %arg1: i32) -> (i32, i32, i32, i32) {
    %c0_i32 = arith.constant 0 : i32
    %c0_i32_0 = arith.constant 0 : i32
    %c0_i32_1 = arith.constant 0 : i32
    return %arg0, %c0_i32, %c0_i32_0, %arg1 : i32, i32, i32, i32
  }
}

module attributes {stable_mosaic.version = 11 : i64} {
  func.func @_conv_stats_kernel(%arg0: i32, %arg1: i32, %arg2: memref<1x10x10x128xbf16, #tpu.memory_space<vmem>>, %arg3: memref<1152x128xbf16, #tpu.memory_space<vmem>>, %arg4: memref<1x64x128xbf16, #tpu.memory_space<vmem>>, %arg5: memref<1x2x128xf32, #tpu.memory_space<vmem>>) attributes {dimension_semantics = [#tpu.dimension_semantics<parallel>, #tpu.dimension_semantics<parallel>], iteration_bounds = array<i64: 2, 1>, scalar_prefetch = 0 : i64, scratch_operands = 0 : i64, tpu.core_type = #tpu.core_type<tc>, window_params = [{transform_indices = @transform_0, window_bounds = array<i64: 1, 10, 10, 128>}, {transform_indices = @transform_1, window_bounds = array<i64: 1152, 128>}, {transform_indices = @transform_2, window_bounds = array<i64: 1, 64, 128>}, {transform_indices = @transform_3, window_bounds = array<i64: 1, 2, 128>}]} {
    %c0 = arith.constant 0 : index
    %c0_0 = arith.constant 0 : index
    %c0_1 = arith.constant 0 : index
    %c0_2 = arith.constant 0 : index
    %0 = vector.load %arg2[%c0, %c0_0, %c0_1, %c0_2] : memref<1x10x10x128xbf16, #tpu.memory_space<vmem>>, vector<1x8x8x128xbf16>
    %1 = vector.shape_cast %0 : vector<1x8x8x128xbf16> to vector<8x8x128xbf16>
    %2 = vector.shape_cast %1 : vector<8x8x128xbf16> to vector<64x128xbf16>
    %c0_3 = arith.constant 0 : index
    %c0_4 = arith.constant 0 : index
    %3 = vector.load %arg3[%c0_3, %c0_4] : memref<1152x128xbf16, #tpu.memory_space<vmem>>, vector<128x128xbf16>
    %cst = arith.constant dense<0.000000e+00> : vector<64x128xf32>
    %4 = tpu.matmul %2, %3, %cst {dimension_numbers = #tpu.dot_dimension_numbers<[1], [0], [0], [1], [0, 0, 1, 1], [], []>} : vector<64x128xbf16>, vector<128x128xbf16>, vector<64x128xf32> -> vector<64x128xf32>
    %c0_5 = arith.constant 0 : index
    %c0_6 = arith.constant 0 : index
    %c1 = arith.constant 1 : index
    %c0_7 = arith.constant 0 : index
    %5 = vector.load %arg2[%c0_5, %c0_6, %c1, %c0_7] : memref<1x10x10x128xbf16, #tpu.memory_space<vmem>>, vector<1x8x8x128xbf16>
    %6 = vector.shape_cast %5 : vector<1x8x8x128xbf16> to vector<8x8x128xbf16>
    %7 = vector.shape_cast %6 : vector<8x8x128xbf16> to vector<64x128xbf16>
    %c128 = arith.constant 128 : index
    %c0_8 = arith.constant 0 : index
    %8 = vector.load %arg3[%c128, %c0_8] : memref<1152x128xbf16, #tpu.memory_space<vmem>>, vector<128x128xbf16>
    %cst_9 = arith.constant dense<0.000000e+00> : vector<64x128xf32>
    %9 = tpu.matmul %7, %8, %cst_9 {dimension_numbers = #tpu.dot_dimension_numbers<[1], [0], [0], [1], [0, 0, 1, 1], [], []>} : vector<64x128xbf16>, vector<128x128xbf16>, vector<64x128xf32> -> vector<64x128xf32>
    %10 = arith.addf %4, %9 : vector<64x128xf32>
    %c0_10 = arith.constant 0 : index
    %c0_11 = arith.constant 0 : index
    %c2 = arith.constant 2 : index
    %c0_12 = arith.constant 0 : index
    %11 = vector.load %arg2[%c0_10, %c0_11, %c2, %c0_12] : memref<1x10x10x128xbf16, #tpu.memory_space<vmem>>, vector<1x8x8x128xbf16>
    %12 = vector.shape_cast %11 : vector<1x8x8x128xbf16> to vector<8x8x128xbf16>
    %13 = vector.shape_cast %12 : vector<8x8x128xbf16> to vector<64x128xbf16>
    %c256 = arith.constant 256 : index
    %c0_13 = arith.constant 0 : index
    %14 = vector.load %arg3[%c256, %c0_13] : memref<1152x128xbf16, #tpu.memory_space<vmem>>, vector<128x128xbf16>
    %cst_14 = arith.constant dense<0.000000e+00> : vector<64x128xf32>
    %15 = tpu.matmul %13, %14, %cst_14 {dimension_numbers = #tpu.dot_dimension_numbers<[1], [0], [0], [1], [0, 0, 1, 1], [], []>} : vector<64x128xbf16>, vector<128x128xbf16>, vector<64x128xf32> -> vector<64x128xf32>
    %16 = arith.addf %10, %15 : vector<64x128xf32>
    %c0_15 = arith.constant 0 : index
    %c1_16 = arith.constant 1 : index
    %c0_17 = arith.constant 0 : index
    %c0_18 = arith.constant 0 : index
    %17 = vector.load %arg2[%c0_15, %c1_16, %c0_17, %c0_18] : memref<1x10x10x128xbf16, #tpu.memory_space<vmem>>, vector<1x8x8x128xbf16>
    %18 = vector.shape_cast %17 : vector<1x8x8x128xbf16> to vector<8x8x128xbf16>
    %19 = vector.shape_cast %18 : vector<8x8x128xbf16> to vector<64x128xbf16>
    %c384 = arith.constant 384 : index
    %c0_19 = arith.constant 0 : index
    %20 = vector.load %arg3[%c384, %c0_19] : memref<1152x128xbf16, #tpu.memory_space<vmem>>, vector<128x128xbf16>
    %cst_20 = arith.constant dense<0.000000e+00> : vector<64x128xf32>
    %21 = tpu.matmul %19, %20, %cst_20 {dimension_numbers = #tpu.dot_dimension_numbers<[1], [0], [0], [1], [0, 0, 1, 1], [], []>} : vector<64x128xbf16>, vector<128x128xbf16>, vector<64x128xf32> -> vector<64x128xf32>
    %22 = arith.addf %16, %21 : vector<64x128xf32>
    %c0_21 = arith.constant 0 : index
    %c1_22 = arith.constant 1 : index
    %c1_23 = arith.constant 1 : index
    %c0_24 = arith.constant 0 : index
    %23 = vector.load %arg2[%c0_21, %c1_22, %c1_23, %c0_24] : memref<1x10x10x128xbf16, #tpu.memory_space<vmem>>, vector<1x8x8x128xbf16>
    %24 = vector.shape_cast %23 : vector<1x8x8x128xbf16> to vector<8x8x128xbf16>
    %25 = vector.shape_cast %24 : vector<8x8x128xbf16> to vector<64x128xbf16>
    %c512 = arith.constant 512 : index
    %c0_25 = arith.constant 0 : index
    %26 = vector.load %arg3[%c512, %c0_25] : memref<1152x128xbf16, #tpu.memory_space<vmem>>, vector<128x128xbf16>
    %cst_26 = arith.constant dense<0.000000e+00> : vector<64x128xf32>
    %27 = tpu.matmul %25, %26, %cst_26 {dimension_numbers = #tpu.dot_dimension_numbers<[1], [0], [0], [1], [0, 0, 1, 1], [], []>} : vector<64x128xbf16>, vector<128x128xbf16>, vector<64x128xf32> -> vector<64x128xf32>
    %28 = arith.addf %22, %27 : vector<64x128xf32>
    %c0_27 = arith.constant 0 : index
    %c1_28 = arith.constant 1 : index
    %c2_29 = arith.constant 2 : index
    %c0_30 = arith.constant 0 : index
    %29 = vector.load %arg2[%c0_27, %c1_28, %c2_29, %c0_30] : memref<1x10x10x128xbf16, #tpu.memory_space<vmem>>, vector<1x8x8x128xbf16>
    %30 = vector.shape_cast %29 : vector<1x8x8x128xbf16> to vector<8x8x128xbf16>
    %31 = vector.shape_cast %30 : vector<8x8x128xbf16> to vector<64x128xbf16>
    %c640 = arith.constant 640 : index
    %c0_31 = arith.constant 0 : index
    %32 = vector.load %arg3[%c640, %c0_31] : memref<1152x128xbf16, #tpu.memory_space<vmem>>, vector<128x128xbf16>
    %cst_32 = arith.constant dense<0.000000e+00> : vector<64x128xf32>
    %33 = tpu.matmul %31, %32, %cst_32 {dimension_numbers = #tpu.dot_dimension_numbers<[1], [0], [0], [1], [0, 0, 1, 1], [], []>} : vector<64x128xbf16>, vector<128x128xbf16>, vector<64x128xf32> -> vector<64x128xf32>
    %34 = arith.addf %28, %33 : vector<64x128xf32>
    %c0_33 = arith.constant 0 : index
    %c2_34 = arith.constant 2 : index
    %c0_35 = arith.constant 0 : index
    %c0_36 = arith.constant 0 : index
    %35 = vector.load %arg2[%c0_33, %c2_34, %c0_35, %c0_36] : memref<1x10x10x128xbf16, #tpu.memory_space<vmem>>, vector<1x8x8x128xbf16>
    %36 = vector.shape_cast %35 : vector<1x8x8x128xbf16> to vector<8x8x128xbf16>
    %37 = vector.shape_cast %36 : vector<8x8x128xbf16> to vector<64x128xbf16>
    %c768 = arith.constant 768 : index
    %c0_37 = arith.constant 0 : index
    %38 = vector.load %arg3[%c768, %c0_37] : memref<1152x128xbf16, #tpu.memory_space<vmem>>, vector<128x128xbf16>
    %cst_38 = arith.constant dense<0.000000e+00> : vector<64x128xf32>
    %39 = tpu.matmul %37, %38, %cst_38 {dimension_numbers = #tpu.dot_dimension_numbers<[1], [0], [0], [1], [0, 0, 1, 1], [], []>} : vector<64x128xbf16>, vector<128x128xbf16>, vector<64x128xf32> -> vector<64x128xf32>
    %40 = arith.addf %34, %39 : vector<64x128xf32>
    %c0_39 = arith.constant 0 : index
    %c2_40 = arith.constant 2 : index
    %c1_41 = arith.constant 1 : index
    %c0_42 = arith.constant 0 : index
    %41 = vector.load %arg2[%c0_39, %c2_40, %c1_41, %c0_42] : memref<1x10x10x128xbf16, #tpu.memory_space<vmem>>, vector<1x8x8x128xbf16>
    %42 = vector.shape_cast %41 : vector<1x8x8x128xbf16> to vector<8x8x128xbf16>
    %43 = vector.shape_cast %42 : vector<8x8x128xbf16> to vector<64x128xbf16>
    %c896 = arith.constant 896 : index
    %c0_43 = arith.constant 0 : index
    %44 = vector.load %arg3[%c896, %c0_43] : memref<1152x128xbf16, #tpu.memory_space<vmem>>, vector<128x128xbf16>
    %cst_44 = arith.constant dense<0.000000e+00> : vector<64x128xf32>
    %45 = tpu.matmul %43, %44, %cst_44 {dimension_numbers = #tpu.dot_dimension_numbers<[1], [0], [0], [1], [0, 0, 1, 1], [], []>} : vector<64x128xbf16>, vector<128x128xbf16>, vector<64x128xf32> -> vector<64x128xf32>
    %46 = arith.addf %40, %45 : vector<64x128xf32>
    %c0_45 = arith.constant 0 : index
    %c2_46 = arith.constant 2 : index
    %c2_47 = arith.constant 2 : index
    %c0_48 = arith.constant 0 : index
    %47 = vector.load %arg2[%c0_45, %c2_46, %c2_47, %c0_48] : memref<1x10x10x128xbf16, #tpu.memory_space<vmem>>, vector<1x8x8x128xbf16>
    %48 = vector.shape_cast %47 : vector<1x8x8x128xbf16> to vector<8x8x128xbf16>
    %49 = vector.shape_cast %48 : vector<8x8x128xbf16> to vector<64x128xbf16>
    %c1024 = arith.constant 1024 : index
    %c0_49 = arith.constant 0 : index
    %50 = vector.load %arg3[%c1024, %c0_49] : memref<1152x128xbf16, #tpu.memory_space<vmem>>, vector<128x128xbf16>
    %cst_50 = arith.constant dense<0.000000e+00> : vector<64x128xf32>
    %51 = tpu.matmul %49, %50, %cst_50 {dimension_numbers = #tpu.dot_dimension_numbers<[1], [0], [0], [1], [0, 0, 1, 1], [], []>} : vector<64x128xbf16>, vector<128x128xbf16>, vector<64x128xf32> -> vector<64x128xf32>
    %52 = arith.addf %46, %51 : vector<64x128xf32>
    %53 = arith.truncf %52 : vector<64x128xf32> to vector<64x128xbf16>
    %c0_51 = arith.constant 0 : index
    %c0_52 = arith.constant 0 : index
    %c0_53 = arith.constant 0 : index
    %54 = vector.load %arg4[%c0_51, %c0_52, %c0_53] : memref<1x64x128xbf16, #tpu.memory_space<vmem>>, vector<1x64x128xbf16>
    %55 = vector.shape_cast %54 : vector<1x64x128xbf16> to vector<64x128xbf16>
    %56 = vector.shape_cast %53 : vector<64x128xbf16> to vector<1x64x128xbf16>
    tpu.vector_store %arg4[%c0_51, %c0_52, %c0_53], %56 {strides = array<i32>} : memref<1x64x128xbf16, #tpu.memory_space<vmem>>, vector<1x64x128xbf16>,
    %cst_54 = arith.constant dense<0.000000e+00> : vector<128xf32>
    %57 = vector.multi_reduction <add>, %52, %cst_54 [0] : vector<64x128xf32> to vector<128xf32>
    %58 = vector.shape_cast %57 : vector<128xf32> to vector<1x128xf32>
    %c0_55 = arith.constant 0 : index
    %c0_56 = arith.constant 0 : index
    %c0_57 = arith.constant 0 : index
    %59 = vector.load %arg5[%c0_55, %c0_56, %c0_57] : memref<1x2x128xf32, #tpu.memory_space<vmem>>, vector<1x1x128xf32>
    %60 = vector.shape_cast %59 : vector<1x1x128xf32> to vector<1x128xf32>
    %61 = vector.shape_cast %58 : vector<1x128xf32> to vector<1x1x128xf32>
    tpu.vector_store %arg5[%c0_55, %c0_56, %c0_57], %61 {strides = array<i32>} : memref<1x2x128xf32, #tpu.memory_space<vmem>>, vector<1x1x128xf32>,
    %62 = arith.mulf %52, %52 : vector<64x128xf32>
    %cst_58 = arith.constant dense<0.000000e+00> : vector<128xf32>
    %63 = vector.multi_reduction <add>, %62, %cst_58 [0] : vector<64x128xf32> to vector<128xf32>
    %64 = vector.shape_cast %63 : vector<128xf32> to vector<1x128xf32>
    %c0_59 = arith.constant 0 : index
    %c1_60 = arith.constant 1 : index
    %c0_61 = arith.constant 0 : index
    %65 = vector.load %arg5[%c0_59, %c1_60, %c0_61] : memref<1x2x128xf32, #tpu.memory_space<vmem>>, vector<1x1x128xf32>
    %66 = vector.shape_cast %65 : vector<1x1x128xf32> to vector<1x128xf32>
    %67 = vector.shape_cast %64 : vector<1x128xf32> to vector<1x1x128xf32>
    tpu.vector_store %arg5[%c0_59, %c1_60, %c0_61], %67 {strides = array<i32>} : memref<1x2x128xf32, #tpu.memory_space<vmem>>, vector<1x1x128xf32>,
    return
  }
  func.func @transform_0(%arg0: i32, %arg1: i32) -> (i32, i32, i32, i32) {
    %c0_i32 = arith.constant 0 : i32
    %c0_i32_0 = arith.constant 0 : i32
    %c0_i32_1 = arith.constant 0 : i32
    %c0_i32_2 = arith.constant 0 : i32
    return %arg0, %c0_i32, %c0_i32_0, %c0_i32_1 : i32, i32, i32, i32
  }
  func.func @transform_1(%arg0: i32, %arg1: i32) -> (i32, i32) {
    %c0_i32 = arith.constant 0 : i32
    %c0_i32_0 = arith.constant 0 : i32
    return %c0_i32, %arg1 : i32, i32
  }
  func.func @transform_2(%arg0: i32, %arg1: i32) -> (i32, i32, i32) {
    %c0_i32 = arith.constant 0 : i32
    %c0_i32_0 = arith.constant 0 : i32
    return %arg0, %c0_i32, %arg1 : i32, i32, i32
  }
  func.func @transform_3(%arg0: i32, %arg1: i32) -> (i32, i32, i32) {
    %c0_i32 = arith.constant 0 : i32
    %c0_i32_0 = arith.constant 0 : i32
    return %arg0, %c0_i32, %arg1 : i32, i32, i32
  }
}

module attributes {stable_mosaic.version = 11 : i64} {
  func.func @_conv_stats_kernel(%arg0: i32, %arg1: i32, %arg2: memref<1x8x8x128xbf16, #tpu.memory_space<vmem>>, %arg3: memref<128x128xbf16, #tpu.memory_space<vmem>>, %arg4: memref<1x64x128xbf16, #tpu.memory_space<vmem>>, %arg5: memref<1x2x128xf32, #tpu.memory_space<vmem>>) attributes {dimension_semantics = [#tpu.dimension_semantics<parallel>, #tpu.dimension_semantics<parallel>], iteration_bounds = array<i64: 2, 1>, scalar_prefetch = 0 : i64, scratch_operands = 0 : i64, tpu.core_type = #tpu.core_type<tc>, window_params = [{transform_indices = @transform_0, window_bounds = array<i64: 1, 8, 8, 128>}, {transform_indices = @transform_1, window_bounds = array<i64: 128, 128>}, {transform_indices = @transform_2, window_bounds = array<i64: 1, 64, 128>}, {transform_indices = @transform_3, window_bounds = array<i64: 1, 2, 128>}]} {
    %c0 = arith.constant 0 : index
    %c0_0 = arith.constant 0 : index
    %c0_1 = arith.constant 0 : index
    %c0_2 = arith.constant 0 : index
    %0 = vector.load %arg2[%c0, %c0_0, %c0_1, %c0_2] : memref<1x8x8x128xbf16, #tpu.memory_space<vmem>>, vector<1x8x8x128xbf16>
    %1 = vector.shape_cast %0 : vector<1x8x8x128xbf16> to vector<8x8x128xbf16>
    %2 = vector.shape_cast %1 : vector<8x8x128xbf16> to vector<64x128xbf16>
    %c0_3 = arith.constant 0 : index
    %c0_4 = arith.constant 0 : index
    %3 = vector.load %arg3[%c0_3, %c0_4] : memref<128x128xbf16, #tpu.memory_space<vmem>>, vector<128x128xbf16>
    %cst = arith.constant dense<0.000000e+00> : vector<64x128xf32>
    %4 = tpu.matmul %2, %3, %cst {dimension_numbers = #tpu.dot_dimension_numbers<[1], [0], [0], [1], [0, 0, 1, 1], [], []>} : vector<64x128xbf16>, vector<128x128xbf16>, vector<64x128xf32> -> vector<64x128xf32>
    %5 = arith.truncf %4 : vector<64x128xf32> to vector<64x128xbf16>
    %c0_5 = arith.constant 0 : index
    %c0_6 = arith.constant 0 : index
    %c0_7 = arith.constant 0 : index
    %6 = vector.load %arg4[%c0_5, %c0_6, %c0_7] : memref<1x64x128xbf16, #tpu.memory_space<vmem>>, vector<1x64x128xbf16>
    %7 = vector.shape_cast %6 : vector<1x64x128xbf16> to vector<64x128xbf16>
    %8 = vector.shape_cast %5 : vector<64x128xbf16> to vector<1x64x128xbf16>
    tpu.vector_store %arg4[%c0_5, %c0_6, %c0_7], %8 {strides = array<i32>} : memref<1x64x128xbf16, #tpu.memory_space<vmem>>, vector<1x64x128xbf16>,
    %cst_8 = arith.constant dense<0.000000e+00> : vector<128xf32>
    %9 = vector.multi_reduction <add>, %4, %cst_8 [0] : vector<64x128xf32> to vector<128xf32>
    %10 = vector.shape_cast %9 : vector<128xf32> to vector<1x128xf32>
    %c0_9 = arith.constant 0 : index
    %c0_10 = arith.constant 0 : index
    %c0_11 = arith.constant 0 : index
    %11 = vector.load %arg5[%c0_9, %c0_10, %c0_11] : memref<1x2x128xf32, #tpu.memory_space<vmem>>, vector<1x1x128xf32>
    %12 = vector.shape_cast %11 : vector<1x1x128xf32> to vector<1x128xf32>
    %13 = vector.shape_cast %10 : vector<1x128xf32> to vector<1x1x128xf32>
    tpu.vector_store %arg5[%c0_9, %c0_10, %c0_11], %13 {strides = array<i32>} : memref<1x2x128xf32, #tpu.memory_space<vmem>>, vector<1x1x128xf32>,
    %14 = arith.mulf %4, %4 : vector<64x128xf32>
    %cst_12 = arith.constant dense<0.000000e+00> : vector<128xf32>
    %15 = vector.multi_reduction <add>, %14, %cst_12 [0] : vector<64x128xf32> to vector<128xf32>
    %16 = vector.shape_cast %15 : vector<128xf32> to vector<1x128xf32>
    %c0_13 = arith.constant 0 : index
    %c1 = arith.constant 1 : index
    %c0_14 = arith.constant 0 : index
    %17 = vector.load %arg5[%c0_13, %c1, %c0_14] : memref<1x2x128xf32, #tpu.memory_space<vmem>>, vector<1x1x128xf32>
    %18 = vector.shape_cast %17 : vector<1x1x128xf32> to vector<1x128xf32>
    %19 = vector.shape_cast %16 : vector<1x128xf32> to vector<1x1x128xf32>
    tpu.vector_store %arg5[%c0_13, %c1, %c0_14], %19 {strides = array<i32>} : memref<1x2x128xf32, #tpu.memory_space<vmem>>, vector<1x1x128xf32>,
    return
  }
  func.func @transform_0(%arg0: i32, %arg1: i32) -> (i32, i32, i32, i32) {
    %c0_i32 = arith.constant 0 : i32
    %c0_i32_0 = arith.constant 0 : i32
    %c0_i32_1 = arith.constant 0 : i32
    %c0_i32_2 = arith.constant 0 : i32
    return %arg0, %c0_i32, %c0_i32_0, %c0_i32_1 : i32, i32, i32, i32
  }
  func.func @transform_1(%arg0: i32, %arg1: i32) -> (i32, i32) {
    %c0_i32 = arith.constant 0 : i32
    %c0_i32_0 = arith.constant 0 : i32
    return %c0_i32, %arg1 : i32, i32
  }
  func.func @transform_2(%arg0: i32, %arg1: i32) -> (i32, i32, i32) {
    %c0_i32 = arith.constant 0 : i32
    %c0_i32_0 = arith.constant 0 : i32
    return %arg0, %c0_i32, %arg1 : i32, i32, i32
  }
  func.func @transform_3(%arg0: i32, %arg1: i32) -> (i32, i32, i32) {
    %c0_i32 = arith.constant 0 : i32
    %c0_i32_0 = arith.constant 0 : i32
    return %arg0, %c0_i32, %arg1 : i32, i32, i32
  }
}

module attributes {stable_mosaic.version = 11 : i64} {
  func.func @_bn_add_relu_kernel(%arg0: i32, %arg1: i32, %arg2: memref<1x64x128xbf16, #tpu.memory_space<vmem>>, %arg3: memref<1x64x128xbf16, #tpu.memory_space<vmem>>, %arg4: memref<1x1x128xf32, #tpu.memory_space<vmem>>, %arg5: memref<1x1x128xf32, #tpu.memory_space<vmem>>, %arg6: memref<1x1x128xf32, #tpu.memory_space<vmem>>, %arg7: memref<1x1x128xf32, #tpu.memory_space<vmem>>, %arg8: memref<1x64x128xf32, #tpu.memory_space<vmem>>) attributes {dimension_semantics = [#tpu.dimension_semantics<parallel>, #tpu.dimension_semantics<parallel>], iteration_bounds = array<i64: 2, 1>, scalar_prefetch = 0 : i64, scratch_operands = 0 : i64, tpu.core_type = #tpu.core_type<tc>, window_params = [{transform_indices = @transform_0, window_bounds = array<i64: 1, 64, 128>}, {transform_indices = @transform_1, window_bounds = array<i64: 1, 64, 128>}, {transform_indices = @transform_2, window_bounds = array<i64: 1, 1, 128>}, {transform_indices = @transform_3, window_bounds = array<i64: 1, 1, 128>}, {transform_indices = @transform_4, window_bounds = array<i64: 1, 1, 128>}, {transform_indices = @transform_5, window_bounds = array<i64: 1, 1, 128>}, {transform_indices = @transform_6, window_bounds = array<i64: 1, 64, 128>}]} {
    %c0 = arith.constant 0 : index
    %c0_0 = arith.constant 0 : index
    %c0_1 = arith.constant 0 : index
    %0 = vector.load %arg2[%c0, %c0_0, %c0_1] : memref<1x64x128xbf16, #tpu.memory_space<vmem>>, vector<1x64x128xbf16>
    %1 = arith.extf %0 : vector<1x64x128xbf16> to vector<1x64x128xf32>
    %c0_2 = arith.constant 0 : index
    %c0_3 = arith.constant 0 : index
    %c0_4 = arith.constant 0 : index
    %2 = vector.load %arg3[%c0_2, %c0_3, %c0_4] : memref<1x64x128xbf16, #tpu.memory_space<vmem>>, vector<1x64x128xbf16>
    %3 = arith.extf %2 : vector<1x64x128xbf16> to vector<1x64x128xf32>
    %c0_5 = arith.constant 0 : index
    %c0_6 = arith.constant 0 : index
    %c0_7 = arith.constant 0 : index
    %4 = vector.load %arg4[%c0_5, %c0_6, %c0_7] : memref<1x1x128xf32, #tpu.memory_space<vmem>>, vector<1x1x128xf32>
    %5 = vector.broadcast %4 : vector<1x1x128xf32> to vector<1x64x128xf32>
    %6 = arith.mulf %1, %5 : vector<1x64x128xf32>
    %c0_8 = arith.constant 0 : index
    %c0_9 = arith.constant 0 : index
    %c0_10 = arith.constant 0 : index
    %7 = vector.load %arg5[%c0_8, %c0_9, %c0_10] : memref<1x1x128xf32, #tpu.memory_space<vmem>>, vector<1x1x128xf32>
    %8 = vector.broadcast %7 : vector<1x1x128xf32> to vector<1x64x128xf32>
    %9 = arith.addf %6, %8 : vector<1x64x128xf32>
    %c0_11 = arith.constant 0 : index
    %c0_12 = arith.constant 0 : index
    %c0_13 = arith.constant 0 : index
    %10 = vector.load %arg6[%c0_11, %c0_12, %c0_13] : memref<1x1x128xf32, #tpu.memory_space<vmem>>, vector<1x1x128xf32>
    %11 = vector.broadcast %10 : vector<1x1x128xf32> to vector<1x64x128xf32>
    %12 = arith.mulf %3, %11 : vector<1x64x128xf32>
    %13 = arith.addf %9, %12 : vector<1x64x128xf32>
    %c0_14 = arith.constant 0 : index
    %c0_15 = arith.constant 0 : index
    %c0_16 = arith.constant 0 : index
    %14 = vector.load %arg7[%c0_14, %c0_15, %c0_16] : memref<1x1x128xf32, #tpu.memory_space<vmem>>, vector<1x1x128xf32>
    %15 = vector.broadcast %14 : vector<1x1x128xf32> to vector<1x64x128xf32>
    %16 = arith.addf %13, %15 : vector<1x64x128xf32>
    %cst = arith.constant 0.000000e+00 : f32
    %17 = vector.broadcast %cst : f32 to vector<1x64x128xf32>
    %18 = arith.maximumf %16, %17 : vector<1x64x128xf32>
    %c0_17 = arith.constant 0 : index
    %c0_18 = arith.constant 0 : index
    %c0_19 = arith.constant 0 : index
    %19 = vector.load %arg8[%c0_17, %c0_18, %c0_19] : memref<1x64x128xf32, #tpu.memory_space<vmem>>, vector<1x64x128xf32>
    tpu.vector_store %arg8[%c0_17, %c0_18, %c0_19], %18 {strides = array<i32>} : memref<1x64x128xf32, #tpu.memory_space<vmem>>, vector<1x64x128xf32>,
    return
  }
  func.func @transform_0(%arg0: i32, %arg1: i32) -> (i32, i32, i32) {
    %c0_i32 = arith.constant 0 : i32
    %c0_i32_0 = arith.constant 0 : i32
    return %arg0, %c0_i32, %arg1 : i32, i32, i32
  }
  func.func @transform_1(%arg0: i32, %arg1: i32) -> (i32, i32, i32) {
    %c0_i32 = arith.constant 0 : i32
    %c0_i32_0 = arith.constant 0 : i32
    return %arg0, %c0_i32, %arg1 : i32, i32, i32
  }
  func.func @transform_2(%arg0: i32, %arg1: i32) -> (i32, i32, i32) {
    %c0_i32 = arith.constant 0 : i32
    %c0_i32_0 = arith.constant 0 : i32
    %c0_i32_1 = arith.constant 0 : i32
    return %c0_i32, %c0_i32_0, %arg1 : i32, i32, i32
  }
  func.func @transform_3(%arg0: i32, %arg1: i32) -> (i32, i32, i32) {
    %c0_i32 = arith.constant 0 : i32
    %c0_i32_0 = arith.constant 0 : i32
    %c0_i32_1 = arith.constant 0 : i32
    return %c0_i32, %c0_i32_0, %arg1 : i32, i32, i32
  }
  func.func @transform_4(%arg0: i32, %arg1: i32) -> (i32, i32, i32) {
    %c0_i32 = arith.constant 0 : i32
    %c0_i32_0 = arith.constant 0 : i32
    %c0_i32_1 = arith.constant 0 : i32
    return %c0_i32, %c0_i32_0, %arg1 : i32, i32, i32
  }
  func.func @transform_5(%arg0: i32, %arg1: i32) -> (i32, i32, i32) {
    %c0_i32 = arith.constant 0 : i32
    %c0_i32_0 = arith.constant 0 : i32
    %c0_i32_1 = arith.constant 0 : i32
    return %c0_i32, %c0_i32_0, %arg1 : i32, i32, i32
  }
  func.func @transform_6(%arg0: i32, %arg1: i32) -> (i32, i32, i32) {
    %c0_i32 = arith.constant 0 : i32
    %c0_i32_0 = arith.constant 0 : i32
    return %arg0, %c0_i32, %arg1 : i32, i32, i32
  }
}

</mosaic_0001>

<bundles_post_ra>
// kernel: resblock_forward.6
= control target key start
LH: loop header
LB: loop body
LE: loop exit
PB: predicated region body
PF: predicated region fallthrough
CT: control target
= control target key end

     0   :  { %s781_s12 = smov 0   ;;  %s783_s13 = smov 0   ;;  %s1021_s0 = inlined_call_operand.vmem [shape: bf16[2,64,128], index: 0, kind: input, shape index: {}]   ;;  %s1022_s1 = inlined_call_operand.vmem [shape: f32[1,1,128], index: 1, kind: input, shape index: {}]   ;;  %s1023_s2 = inlined_call_operand.vmem [shape: f32[1,1,128], index: 2, kind: input, shape index: {}]   ;;  %s1024_s3 = inlined_call_operand.vmem [shape: bf16[2,10,10,128], index: 3, kind: output, shape index: {}]  }
   0x1   :  { %s785_s14 = smov 0  }
   0x2 LB: > { %s25_s15 = sadd.s32 1, %s754_s13  ;;  %p632_p0 = scmp.ge.s32.totalorder %s758_s14, 1  ;;  %s758_s14 = sphi %s785_s14, %s13_s14   ;;  %s754_s13 = sphi %s783_s13, %s1032_s13   ;;  %s750_s12 = sphi %s781_s12, %s1031_s12  }
   0x3   : > { %p27_p1 = scmp.ge.s32.totalorder %s25_s15, 2  ;;  %p172_p2 = scmp.lt.s32.totalorder %s758_s14, 3 }
   0x5   : > { %s1034_s15 = smov (%p27_p1, %s25_s15), 0  ;;  %p173_p3 = pnand %p632_p0, %p172_p2 }
   0x6   : > { %p208_p4 = scmp.lt.s32.totalorder (!%p173_p3), %s750_s12, 1  ;;  %vm236_vm0 = vcmask (!%p173_p3), 1040384   ;;  %vm237_vm1 = vsmask.f32 (!%p173_p3), 256  ;;  %vm269_vm3 = vsmask.f32 (!%p173_p3), 7938 }
   0x7   : > { %176 = sbr.rel (%p173_p3) target bundleno = 59 (0x3b), region = 32  ;;  %vm800_vm2 = vmand (!%p173_p3), %vm236_vm0, %vm237_vm1  ;;  %v812_v1 = vld [vmem:[%s1022_s1] ss:$0 sm:$0xff] (!%p173_p3)  ;;  %v760_v6 = vmov (!%p173_p3), 0   ;;  %vm468_vm5 = vcmask (!%p173_p3), 1043456  }
   0x8   : > { %v823_v3 = vld [vmem:[%s1023_s2] ss:$0 sm:$0xff] (!%p173_p3)  ;;  %vm845_vm4 = vmand (!%p173_p3), %vm236_vm0, %vm269_vm3 }
   0x9   : > { %vm948_vm6 = vmand (!%p173_p3), %vm468_vm5, %vm269_vm3 }
   0xe   : > { %s1036_s12 = smov (!%p208_p4, %s750_s12), 1 }
   0xf   : > { %s710_s16 = smul.u32 80, %s1036_s12  ;;  %s682_s17 = sshll.u32 %s1036_s12, 5 }
  0x10   : > { %s807_s20 = scalar_lea.vmem %s1021_s0, %s682_s17 }
  0x11   : > { %s817_s25 = scalar_lea.vmem %s1024_s3, %s710_s16  ;;  %v692_v2 = vld [vmem:[%s807_s20] sm:$0xff]   ;;  %v707_v4 = vld [vmem:[%s807_s20 + $0x8] sm:$0xff]   ;;  %v827_v5 = vld [vmem:[%s807_s20 + $0x10] sm:$0xff]  }
  0x12   : > { %231 = vst [vmem:[%s817_s25] sm:$0xf] %v760_v6  ;;  %232 = vst [vmem:[%s817_s25 + $0x4] sm:$0x1] %v760_v6  ;;  %v242_v7 = vld [vmem:[%s817_s25 + $0x8] sm:$0x1]  ;;  %v693_v10 = vunpack.c.l.bf16 %v692_v2  ;;  %v694_v11 = vunpack.c.h.bf16 %v692_v2  ;;  %v697_v12 = vunpack.c.l.bf16 %v707_v4  ;;  %v698_v13 = vunpack.c.h.bf16 %v707_v4  ;;  %v861_v26 = vld [vmem:[%s807_s20 + $0x18] sm:$0xff]  }
  0x13   : > { %636 = vst [vmem:[%s817_s25 + $0x48] sm:$0xf] %v760_v6  ;;  %637 = vst [vmem:[%s817_s25 + $0x4c] sm:$0x1] %v760_v6  ;;  %v245_v8 = vld [vmem:[%s817_s25 + $0x10] sm:$0x1]  ;;  %v701_v19 = vunpack.c.l.bf16 %v827_v5  ;;  %v702_v49 = vunpack.c.h.bf16 %v827_v5  ;;  %v705_v55 = vunpack.c.l.bf16 %v861_v26  ;;  %v706_v61 = vunpack.c.h.bf16 %v861_v26 }
  0x14   : > { %v248_v9 = vld [vmem:[%s817_s25 + $0x18] sm:$0x1]  ;;  %v243_v14 = vsel %vm800_vm2, 0, %v242_v7  ;;  %v246_v15 = vsel %vm800_vm2, 0, %v245_v8  ;;  %v251_v17 = vld [vmem:[%s817_s25 + $0x20] sm:$0x1]  ;;  %v324_v23 = vmul.f32 %v693_v10, %v812_v1  ;;  %v325_v24 = vmul.f32 %v694_v11, %v812_v1 }
  0x15   : > { %v249_v16 = vsel %vm800_vm2, 0, %v248_v9  ;;  %244 = vst [vmem:[%s817_s25 + $0x8] sm:$0x1] %v243_v14  ;;  %247 = vst [vmem:[%s817_s25 + $0x10] sm:$0x1] %v246_v15  ;;  %v252_v20 = vsel %vm800_vm2, 0, %v251_v17  ;;  %v326_v25 = vmul.f32 %v697_v12, %v812_v1  ;;  %v327_v31 = vmul.f32 %v698_v13, %v812_v1 }
  0x16   : > { %250 = vst [vmem:[%s817_s25 + $0x18] sm:$0x1] %v249_v16  ;;  %v254_v21 = vld [vmem:[%s817_s25 + $0x28] sm:$0x1]  ;;  %v257_v22 = vld [vmem:[%s817_s25 + $0x30] sm:$0x1]  ;;  %v328_v32 = vmul.f32 %v701_v19, %v812_v1  ;;  %v339_v37 = vadd.f32 %v823_v3, %v324_v23  ;;  %v340_v42 = vadd.f32 %v823_v3, %v325_v24  ;;  %v329_v60 = vmul.f32 %v702_v49, %v812_v1 }
  0x17   : > { %253 = vst [vmem:[%s817_s25 + $0x20] sm:$0x1] %v252_v20  ;;  %v255_v27 = vsel %vm800_vm2, 0, %v254_v21  ;;  %v258_v28 = vsel %vm800_vm2, 0, %v257_v22  ;;  %v260_v29 = vld [vmem:[%s817_s25 + $0x38] sm:$0x1]  ;;  %v341_v43 = vadd.f32 %v823_v3, %v326_v25  ;;  %v342_v48 = vadd.f32 %v823_v3, %v327_v31 }
  0x18   : > { %v263_v30 = vld [vmem:[%s817_s25 + $0x40] sm:$0x1]  ;;  %256 = vst [vmem:[%s817_s25 + $0x28] sm:$0x1] %v255_v27  ;;  %259 = vst [vmem:[%s817_s25 + $0x30] sm:$0x1] %v258_v28  ;;  %v343_v54 = vadd.f32 %v823_v3, %v328_v32  ;;  %v330_v5 = vmul.f32 %v705_v55, %v812_v1  ;;  %v344_v12 = vadd.f32 %v823_v3, %v329_v60 }
  0x19   : > { %v261_v33 = vsel %vm800_vm2, 0, %v260_v29  ;;  %v264_v34 = vsel %vm800_vm2, 0, %v263_v30  ;;  %v274_v35 = vld [vmem:[%s817_s25 + $0xc] sm:$0x1]  ;;  %v277_v36 = vld [vmem:[%s817_s25 + $0x14] sm:$0x1]  ;;  %v331_v17 = vmul.f32 %v706_v61, %v812_v1 }
  0x1a   : > { %262 = vst [vmem:[%s817_s25 + $0x38] sm:$0x1] %v261_v33  ;;  %265 = vst [vmem:[%s817_s25 + $0x40] sm:$0x1] %v264_v34  ;;  %v275_v38 = vsel %vm845_vm4, 0, %v274_v35  ;;  %v278_v39 = vsel %vm845_vm4, 0, %v277_v36  ;;  %v345_v13 = vadd.f32 %v823_v3, %v330_v5 }
  0x1b   : > { %v280_v40 = vld [vmem:[%s817_s25 + $0x1c] sm:$0x1]  ;;  %v283_v41 = vld [vmem:[%s817_s25 + $0x24] sm:$0x1]  ;;  %276 = vst [vmem:[%s817_s25 + $0xc] sm:$0x1] %v275_v38  ;;  %v346_v36 = vadd.f32 %v823_v3, %v331_v17 }
  0x1c   : > { %279 = vst [vmem:[%s817_s25 + $0x14] sm:$0x1] %v278_v39  ;;  %v281_v44 = vsel %vm845_vm4, 0, %v280_v40  ;;  %v284_v45 = vsel %vm845_vm4, 0, %v283_v41  ;;  %v286_v46 = vld [vmem:[%s817_s25 + $0x2c] sm:$0x1] }
  0x1d   : > { %v289_v47 = vld [vmem:[%s817_s25 + $0x34] sm:$0x1]  ;;  %282 = vst [vmem:[%s817_s25 + $0x1c] sm:$0x1] %v281_v44  ;;  %285 = vst [vmem:[%s817_s25 + $0x24] sm:$0x1] %v284_v45 }
  0x1e   : > { %v287_v50 = vsel %vm845_vm4, 0, %v286_v46  ;;  %v290_v51 = vsel %vm845_vm4, 0, %v289_v47  ;;  %v292_v52 = vld [vmem:[%s817_s25 + $0x3c] sm:$0x1]  ;;  %v295_v53 = vld [vmem:[%s817_s25 + $0x44] sm:$0x1] }
  0x1f   : > { %288 = vst [vmem:[%s817_s25 + $0x2c] sm:$0x1] %v287_v50  ;;  %291 = vst [vmem:[%s817_s25 + $0x34] sm:$0x1] %v290_v51  ;;  %v293_v56 = vsel %vm845_vm4, 0, %v292_v52  ;;  %v296_v57 = vsel %vm845_vm4, 0, %v295_v53 }
  0x20   : > { %v239_v58 = vld [vmem:[%s817_s25] sm:$0x1]  ;;  %v266_v59 = vld [vmem:[%s817_s25 + $0x48] sm:$0x1]  ;;  %294 = vst [vmem:[%s817_s25 + $0x3c] sm:$0x1] %v293_v56 }
  0x21   : > { %297 = vst [vmem:[%s817_s25 + $0x44] sm:$0x1] %v296_v57  ;;  %v240_v62 = vsel %vm800_vm2, 0, %v239_v58  ;;  %v267_v63 = vsel %vm800_vm2, 0, %v266_v59  ;;  %v271_v2 = vld [vmem:[%s817_s25 + $0x4] sm:$0x1] }
  0x22   : > { %v298_v4 = vld [vmem:[%s817_s25 + $0x4c] sm:$0x1]  ;;  %241 = vst [vmem:[%s817_s25] sm:$0x1] %v240_v62  ;;  %268 = vst [vmem:[%s817_s25 + $0x48] sm:$0x1] %v267_v63  ;;  %v272_v6 = vsel %vm845_vm4, 0, %v271_v2 }
  0x23   : > { %v299_v7 = vsel %vm845_vm4, 0, %v298_v4  ;;  %v347_v8 = vmax.f32 %v339_v37, 0.0  ;;  %v348_v9 = vmax.f32 %v340_v42, 0.0  ;;  %273 = vst [vmem:[%s817_s25 + $0x4] sm:$0x1] %v272_v6  ;;  %v349_v10 = vmax.f32 %v341_v43, 0.0 }
  0x24   : > { %300 = vst [vmem:[%s817_s25 + $0x4c] sm:$0x1] %v299_v7  ;;  %v350_v11 = vmax.f32 %v342_v48, 0.0  ;;  %v351_v16 = vmax.f32 %v343_v54, 0.0  ;;  %v352_v20 = vmax.f32 %v344_v12, 0.0  ;;  %v353_v21 = vmax.f32 %v345_v13, 0.0 }
  0x25   : > { %v683_v14 = vpack.c.bf16 %v347_v8, %v347_v8  ;;  %v684_v15 = vpack.c.bf16 %v348_v9, %v348_v9  ;;  %v685_v19 = vpack.c.bf16 %v349_v10, %v349_v10  ;;  %v648_v26 = vld [vmem:[%s817_s25 + $0x8] sm:$0xf]  ;;  %v652_v27 = vld [vmem:[%s817_s25 + $0x10] sm:$0xf]  ;;  %v656_v33 = vld [vmem:[%s817_s25 + $0x18] sm:$0xf] }
  0x26   : > { %v686_v18 = vpack.c.bf16 %v350_v11, %v350_v11  ;;  %v660_v34 = vld [vmem:[%s817_s25 + $0x20] sm:$0xf]  ;;  %v687_v35 = vpack.c.bf16 %v351_v16, %v351_v16  ;;  %v650_v38 = vld [vmem:[%s817_s25 + $0xc] sm:$0x1]  ;;  %v654_v39 = vld [vmem:[%s817_s25 + $0x14] sm:$0x1]  ;;  %v688_v42 = vpack.c.bf16 %v352_v20, %v352_v20  ;;  %v689_v43 = vpack.c.bf16 %v353_v21, %v353_v21 }
  0x27   : > { %v388_v22 = vshrl.u32 %v683_v14, 16  ;;  %v391_v23 = vshll.u32 %v683_v14, 16  ;;  %v396_v24 = vshrl.u32 %v684_v15, 16  ;;  %v399_v25 = vshll.u32 %v684_v15, 16  ;;  %v658_v47 = vld [vmem:[%s817_s25 + $0x1c] sm:$0x1] }
  0x28   : > { %v404_v28 = vshrl.u32 %v685_v19, 16  ;;  %v407_v29 = vshll.u32 %v685_v19, 16  ;;  %v412_v30 = vshrl.u32 %v686_v18, 16  ;;  %v415_v31 = vshll.u32 %v686_v18, 16  ;;  %v662_v48 = vld [vmem:[%s817_s25 + $0x24] sm:$0x1] }
  0x29   : > { %v390_v32 = vrot.slane %v388_v22, 7  ;;  %v398_v1 = vrot.slane %v396_v24, 7  ;;  %v420_v61 = vshrl.u32 %v687_v35, 16  ;;  %v423_v62 = vshll.u32 %v687_v35, 16  ;;  %v664_v8 = vld [vmem:[%s817_s25 + $0x28] sm:$0xf] }
  0x2a   : > { %v406_v40 = vrot.slane %v404_v28, 7  ;;  %v414_v41 = vrot.slane %v412_v30, 7  ;;  %v428_v63 = vshrl.u32 %v688_v42, 16  ;;  %v431_v2 = vshll.u32 %v688_v42, 16  ;;  %v666_v9 = vld [vmem:[%s817_s25 + $0x2c] sm:$0x1] }
  0x2b   : > { %v393_v44 = vor.u32 %v391_v23, %v390_v32  ;;  %v394_v45 = vrot.slane %v390_v32, 4  ;;  %v401_v46 = vor.u32 %v399_v25, %v398_v1  ;;  %v402_v3 = vrot.slane %v398_v1, 4  ;;  %v668_v11 = vld [vmem:[%s817_s25 + $0x30] sm:$0xf]  ;;  %v670_v12 = vld [vmem:[%s817_s25 + $0x34] sm:$0x1] }
  0x2c   : > { %v409_v49 = vor.u32 %v407_v29, %v406_v40  ;;  %v410_v50 = vrot.slane %v406_v40, 4  ;;  %v417_v51 = vor.u32 %v415_v31, %v414_v41  ;;  %v418_v52 = vrot.slane %v414_v41, 4  ;;  %v672_v18 = vld [vmem:[%s817_s25 + $0x38] sm:$0xf]  ;;  %v674_v20 = vld [vmem:[%s817_s25 + $0x3c] sm:$0x1] }
  0x2d   : > { %v471_v53 = vsel %vm948_vm6, %v393_v44, %v648_v26  ;;  %v474_v54 = vsel %vm800_vm2, %v394_v45, %v650_v38  ;;  %v477_v55 = vsel %vm948_vm6, %v401_v46, %v652_v27  ;;  %v480_v56 = vsel %vm800_vm2, %v402_v3, %v654_v39  ;;  %v676_v32 = vld [vmem:[%s817_s25 + $0x40] sm:$0xf]  ;;  %v678_v1 = vld [vmem:[%s817_s25 + $0x44] sm:$0x1] }
  0x2e   : > { %649 = vst [vmem:[%s817_s25 + $0x8] sm:$0xf] %v471_v53  ;;  %651 = vst [vmem:[%s817_s25 + $0xc] sm:$0x1] %v474_v54  ;;  %v483_v57 = vsel %vm948_vm6, %v409_v49, %v656_v33  ;;  %v486_v58 = vsel %vm800_vm2, %v410_v50, %v658_v47  ;;  %v489_v59 = vsel %vm948_vm6, %v417_v51, %v660_v34  ;;  %v436_v4 = vshrl.u32 %v689_v43, 16 }
  0x2f   : > { %653 = vst [vmem:[%s817_s25 + $0x10] sm:$0xf] %v477_v55  ;;  %655 = vst [vmem:[%s817_s25 + $0x14] sm:$0x1] %v480_v56  ;;  %v492_v60 = vsel %vm800_vm2, %v418_v52, %v662_v48  ;;  %v439_v5 = vshll.u32 %v689_v43, 16  ;;  %v354_v6 = vmax.f32 %v346_v36, 0.0 }
  0x30   : > { %657 = vst [vmem:[%s817_s25 + $0x18] sm:$0xf] %v483_v57  ;;  %659 = vst [vmem:[%s817_s25 + $0x1c] sm:$0x1] %v486_v58  ;;  %v422_v7 = vrot.slane %v420_v61, 7  ;;  %v430_v10 = vrot.slane %v428_v63, 7 }
  0x31   : > { %661 = vst [vmem:[%s817_s25 + $0x20] sm:$0xf] %v489_v59  ;;  %663 = vst [vmem:[%s817_s25 + $0x24] sm:$0x1] %v492_v60  ;;  %v438_v13 = vrot.slane %v436_v4, 7  ;;  %v690_v14 = vpack.c.bf16 %v354_v6, %v354_v6 }
  0x32   : > { %v425_v15 = vor.u32 %v423_v62, %v422_v7  ;;  %v426_v16 = vrot.slane %v422_v7, 4  ;;  %v433_v17 = vor.u32 %v431_v2, %v430_v10  ;;  %v434_v19 = vrot.slane %v430_v10, 4 }
  0x33   : > { %v441_v21 = vor.u32 %v439_v5, %v438_v13  ;;  %v442_v22 = vrot.slane %v438_v13, 4  ;;  %v444_v23 = vshrl.u32 %v690_v14, 16  ;;  %v447_v24 = vshll.u32 %v690_v14, 16 }
  0x34   : > { %v495_v25 = vsel %vm948_vm6, %v425_v15, %v664_v8  ;;  %v498_v26 = vsel %vm800_vm2, %v426_v16, %v666_v9  ;;  %v501_v27 = vsel %vm948_vm6, %v433_v17, %v668_v11  ;;  %v504_v28 = vsel %vm800_vm2, %v434_v19, %v670_v12 }
  0x35   : > { %665 = vst [vmem:[%s817_s25 + $0x28] sm:$0xf] %v495_v25  ;;  %667 = vst [vmem:[%s817_s25 + $0x2c] sm:$0x1] %v498_v26  ;;  %v507_v29 = vsel %vm948_vm6, %v441_v21, %v672_v18  ;;  %v510_v30 = vsel %vm800_vm2, %v442_v22, %v674_v20  ;;  %v446_v31 = vrot.slane %v444_v23, 7 }
  0x36   : > { %669 = vst [vmem:[%s817_s25 + $0x30] sm:$0xf] %v501_v27  ;;  %671 = vst [vmem:[%s817_s25 + $0x34] sm:$0x1] %v504_v28 }
  0x37   : > { %673 = vst [vmem:[%s817_s25 + $0x38] sm:$0xf] %v507_v29  ;;  %675 = vst [vmem:[%s817_s25 + $0x3c] sm:$0x1] %v510_v30  ;;  %v449_v33 = vor.u32 %v447_v24, %v446_v31  ;;  %v450_v34 = vrot.slane %v446_v31, 4 }
  0x39   : > { %v513_v35 = vsel %vm948_vm6, %v449_v33, %v676_v32  ;;  %v516_v36 = vsel %vm800_vm2, %v450_v34, %v678_v1 }
  0x3a   : > { %677 = vst [vmem:[%s817_s25 + $0x40] sm:$0xf] %v513_v35  ;;  %679 = vst [vmem:[%s817_s25 + $0x44] sm:$0x1] %v516_v36 }
  0x3b PF: > { %s13_s14 = sadd.s32 1, %s758_s14   ;;  %s1031_s12 = smov %s754_s13 }
  0x3c   : > { %p10_p5 = scmp.ge.s32.totalorder %s13_s14, 4   ;;  %s1032_s13 = smov %s1034_s15 }
  0x3e   :  { %12 = sbr.rel (!%p10_p5) target bundleno = 2 (0x2), region = 70 }

// kernel: resblock_forward.8
= control target key start
LH: loop header
LB: loop body
LE: loop exit
PB: predicated region body
PF: predicated region fallthrough
CT: control target
= control target key end

     0   :  { %s797_s12 = smov 0   ;;  %s799_s13 = smov 0   ;;  %s871_s0 = inlined_call_operand.vmem [shape: bf16[2,8,8,128], index: 0, kind: input, shape index: {}]   ;;  %s872_s1 = inlined_call_operand.vmem [shape: bf16[128,128], index: 1, kind: input, shape index: {}]   ;;  %s873_s2 = inlined_call_operand.vmem [shape: bf16[2,64,128], index: 2, kind: output, shape index: {0}]   ;;  %s874_s3 = inlined_call_operand.vmem [shape: f32[2,2,128], index: 3, kind: output, shape index: {1}]  }
   0x1   :  { %s801_s14 = smov 0  }
   0x2 LB: > { %s26_s15 = sadd.s32 1, %s771_s13  ;;  %p604_p0 = scmp.ge.s32.totalorder %s775_s14, 1  ;;  %s775_s14 = sphi %s801_s14, %s14_s14   ;;  %s771_s13 = sphi %s799_s13, %s876_s13   ;;  %s767_s12 = sphi %s797_s12, %s875_s12  }
   0x3   : > { %p28_p1 = scmp.ge.s32.totalorder %s26_s15, 2  ;;  %p165_p2 = scmp.lt.s32.totalorder %s775_s14, 3 }
   0x5   : > { %s878_s15 = smov (%p28_p1, %s26_s15), 0  ;;  %p166_p3 = pnand %p604_p0, %p165_p2 }
   0x6   : > { %v741_v0 = vld [vmem:[%s872_s1] sm:$0xff] (!%p166_p3)   ;;  %p203_p4 = scmp.lt.s32.totalorder (!%p166_p3), %s767_s12, 1  ;;  %v742_v1 = vld [vmem:[%s872_s1 + $0x8] sm:$0xff] (!%p166_p3)   ;;  %v743_v2 = vld [vmem:[%s872_s1 + $0x10] sm:$0xff] (!%p166_p3)  }
   0x7   : > { %169 = sbr.rel (%p166_p3) target bundleno = 283 (0x11b), region = 28  ;;  %677 = vmatprep.subr.bf16.mxu0 (!%p166_p3), %v741_v0  ;;  %701 = vmatprep.subr.bf16.mxu1 (!%p166_p3), %v741_v0  ;;  %v744_v3 = vld [vmem:[%s872_s1 + $0x18] sm:$0xff] (!%p166_p3)   ;;  %v745_v6 = vld [vmem:[%s872_s1 + $0x20] sm:$0xff] (!%p166_p3)   ;;  %v746_v7 = vld [vmem:[%s872_s1 + $0x28] sm:$0xff] (!%p166_p3)  }
   0x8   : > { %678 = vmatpush3.bf16.msra.mxu0 (!%p166_p3), %v741_v0  ;;  %709 = vmatpush3.bf16.msra.mxu1 (!%p166_p3), %v741_v0  ;;  %v747_v8 = vld [vmem:[%s872_s1 + $0x30] sm:$0xff] (!%p166_p3)   ;;  %v748_v9 = vld [vmem:[%s872_s1 + $0x38] sm:$0xff] (!%p166_p3)  }
   0x9   : > { %679 = vmatprep.subr.bf16.mxu0 (!%p166_p3), %v742_v1  ;;  %702 = vmatprep.subr.bf16.mxu1 (!%p166_p3), %v742_v1 }
   0xc   : > { %680 = vmatpush3.bf16.msra.mxu0 (!%p166_p3), %v742_v1  ;;  %710 = vmatpush3.bf16.msra.mxu1 (!%p166_p3), %v742_v1 }
   0xd   : > { %681 = vmatprep.subr.bf16.mxu0 (!%p166_p3), %v743_v2  ;;  %703 = vmatprep.subr.bf16.mxu1 (!%p166_p3), %v743_v2 }
   0xe   : > { %s880_s12 = smov (!%p203_p4, %s767_s12), 1 }
   0xf   : > { %s632_s22 = sshll.u32 %s880_s12, 5  ;;  %s609_s16 = sshll.u32 %s880_s12, 1 }
  0x10   : > { %s832_s25 = scalar_lea.vmem %s871_s0, %s632_s22  ;;  %682 = vmatpush3.bf16.msra.mxu0 %v743_v2  ;;  %711 = vmatpush3.bf16.msra.mxu1 %v743_v2  ;;  %s219_s11 = scalar_lea.vmem %s873_s2, %s632_s22 }
  0x11   : > { %v749_v4 = vld [vmem:[%s832_s25] sm:$0xff]   ;;  %v751_v5 = vld [vmem:[%s832_s25 + $0x10] sm:$0xff]   ;;  %683 = vmatprep.subr.bf16.mxu0 %v744_v3  ;;  %704 = vmatprep.subr.bf16.mxu1 %v744_v3  ;;  %v750_v10 = vld [vmem:[%s832_s25 + $0x8] sm:$0xff]   ;;  %s226_s19 = scalar_lea.vmem %s874_s3, %s609_s16 }
  0x12   : > { %693 = vmatprep.mubr.bf16.mxu0 %v749_v4  ;;  %697 = vmatprep.mubr.bf16.mxu1 %v751_v5  ;;  %v752_v11 = vld [vmem:[%s832_s25 + $0x18] sm:$0xff]  }
  0x14   : > { %684 = vmatpush3.bf16.msra.mxu0 %v744_v3  ;;  %712 = vmatpush3.bf16.msra.mxu1 %v744_v3 }
  0x15   : > { %685 = vmatprep.subr.bf16.mxu0 %v745_v6  ;;  %705 = vmatprep.subr.bf16.mxu1 %v745_v6 }
  0x18   : > { %686 = vmatpush3.bf16.msra.mxu0 %v745_v6  ;;  %713 = vmatpush3.bf16.msra.mxu1 %v745_v6 }
  0x19   : > { %687 = vmatprep.subr.bf16.mxu0 %v746_v7  ;;  %706 = vmatprep.subr.bf16.mxu1 %v746_v7 }
  0x1c   : > { %688 = vmatpush3.bf16.msra.mxu0 %v746_v7  ;;  %714 = vmatpush3.bf16.msra.mxu1 %v746_v7 }
  0x1d   : > { %689 = vmatprep.subr.bf16.mxu0 %v747_v8  ;;  %707 = vmatprep.subr.bf16.mxu1 %v747_v8 }
  0x20   : > { %690 = vmatpush3.bf16.msra.mxu0 %v747_v8  ;;  %715 = vmatpush3.bf16.msra.mxu1 %v747_v8 }
  0x21   : > { %691 = vmatprep.subr.bf16.mxu0 %v748_v9  ;;  %708 = vmatprep.subr.bf16.mxu1 %v748_v9 }
  0x24   : > { %692 = vmatpush3.bf16.msra.mxu0 %v748_v9  ;;  %716 = vmatpush3.bf16.msra.mxu1 %v748_v9 }
  0x27   : > { %694 = vmatmul.mubr.bf16.vlgmr.msra.gmra.mrb[0].mxu0 %v750_v10  ;;  %698 = vmatmul.mubr.bf16.vlgmr.msra.gmra.mrb[0].mxu1 %v752_v11 }
  0xfa   : > { %v695_v12 = vpop.f32.mrb[0].mxu0  ;;  %v699_v13 = vpop.f32.mrb[0].mxu1 }
  0xfb   : > { %v358_v14 = vpop.f32.mrb[1].mxu0  ;;  %v374_v15 = vpop.f32.mrb[1].mxu1  ;;  %v445_v27 = vmul.f32 %v695_v12, %v695_v12  ;;  %v449_v39 = vmul.f32 %v699_v13, %v699_v13 }
  0xfc   : > { %v696_v16 = vpop.f32.mrb[2].mxu0  ;;  %v700_v17 = vpop.f32.mrb[2].mxu1  ;;  %v443_v18 = vmul.f32 %v358_v14, %v358_v14  ;;  %v447_v33 = vmul.f32 %v374_v15, %v374_v15 }
  0xfd   : > { %v650_v19 = vpack.c.bf16 %v696_v16, %v695_v12  ;;  %v361_v20 = vpop.f32.mrb[3].mxu0  ;;  %v660_v21 = vpack.c.bf16 %v700_v17, %v699_v13  ;;  %v377_v22 = vpop.f32.mrb[3].mxu1  ;;  %v446_v30 = vmul.f32 %v696_v16, %v696_v16  ;;  %v450_v42 = vmul.f32 %v700_v17, %v700_v17 }
  0xfe   : > { %v645_v23 = vpack.c.bf16 %v361_v20, %v358_v14  ;;  %v429_v24 = vadd.f32 %v361_v20, %v358_v14  ;;  %v444_v25 = vmul.f32 %v361_v20, %v361_v20  ;;  %v655_v26 = vpack.c.bf16 %v377_v22, %v374_v15 }
  0xff   : > { %662 = vst [vmem:[%s219_s11 + $0x8] sm:$0xff] %v650_v19   ;;  %664 = vst [vmem:[%s219_s11 + $0x18] sm:$0xff] %v660_v21   ;;  %v448_v38 = vmul.f32 %v377_v22, %v377_v22 }
 0x100   : > { %646 = vst [vmem:[%s219_s11] sm:$0xff] %v645_v23   ;;  %v430_v28 = vadd.f32 %v695_v12, %v429_v24  ;;  %v451_v29 = vadd.f32 %v444_v25, %v443_v18  ;;  %663 = vst [vmem:[%s219_s11 + $0x10] sm:$0xff] %v655_v26  }
 0x102   : > { %v452_v31 = vadd.f32 %v451_v29, %v445_v27  ;;  %v431_v32 = vadd.f32 %v696_v16, %v430_v28 }
 0x104   : > { %v432_v34 = vadd.f32 %v431_v32, %v374_v15  ;;  %v453_v35 = vadd.f32 %v452_v31, %v446_v30 }
 0x106   : > { %v454_v36 = vadd.f32 %v453_v35, %v447_v33  ;;  %v433_v37 = vadd.f32 %v432_v34, %v377_v22 }
 0x108   : > { %v434_v40 = vadd.f32 %v699_v13, %v433_v37  ;;  %v455_v41 = vadd.f32 %v454_v36, %v448_v38 }
 0x10a   : > { %v435_v43 = vadd.f32 %v700_v17, %v434_v40  ;;  %v456_v44 = vadd.f32 %v455_v41, %v449_v39 }
 0x10c   : > { %v436_v45 = vrot.slane %v435_v43, 4  ;;  %v457_v46 = vadd.f32 %v456_v44, %v450_v42 }
 0x10e   : > { %v437_v47 = vadd.f32 %v436_v45, %v435_v43  ;;  %v458_v48 = vrot.slane %v457_v46, 4 }
 0x110   : > { %v438_v49 = vrot.slane %v437_v47, 2  ;;  %v459_v50 = vadd.f32 %v458_v48, %v457_v46 }
 0x112   : > { %v439_v51 = vadd.f32 %v438_v49, %v437_v47  ;;  %v460_v52 = vrot.slane %v459_v50, 2 }
 0x114   : > { %v440_v53 = vrot.slane %v439_v51, 1  ;;  %v461_v54 = vadd.f32 %v460_v52, %v459_v50 }
 0x116   : > { %v441_v55 = vadd.f32 %v440_v53, %v439_v51  ;;  %v462_v56 = vrot.slane %v461_v54, 1 }
 0x118   : > { %442 = vst [vmem:[%s226_s19] sm:$0x1] %v441_v55  ;;  %v463_v57 = vadd.f32 %v462_v56, %v461_v54 }
 0x11a   : > { %464 = vst [vmem:[%s226_s19 + $0x1] sm:$0x1] %v463_v57 }
 0x11b PF: > { %s14_s14 = sadd.s32 1, %s775_s14   ;;  %s875_s12 = smov %s771_s13 }
 0x11c   : > { %p11_p5 = scmp.ge.s32.totalorder %s14_s14, 4   ;;  %s876_s13 = smov %s878_s15 }
 0x11e   :  { %13 = sbr.rel (!%p11_p5) target bundleno = 2 (0x2), region = 73 }

// kernel: resblock_forward.5
= control target key start
LH: loop header
LB: loop body
LE: loop exit
PB: predicated region body
PF: predicated region fallthrough
CT: control target
= control target key end

     0   :  { %s3240_s21 = smov 0   ;;  %s3242_s22 = smov 0   ;;  %s3646_s0 = inlined_call_operand.vmem [shape: bf16[2,9,9,128], index: 0, kind: input, shape index: {}]   ;;  %s3647_s1 = inlined_call_operand.vmem [shape: bf16[2,9,9,128], index: 1, kind: input, shape index: {}]   ;;  %s3648_s2 = inlined_call_operand.vmem [shape: bf16[2,9,9,128], index: 2, kind: input, shape index: {}]   ;;  %s3649_s3 = inlined_call_operand.vmem [shape: bf16[2,9,9,128], index: 3, kind: input, shape index: {}]   ;;  %s3650_s4 = inlined_call_operand.vmem [shape: bf16[1152,128], index: 4, kind: input, shape index: {}]   ;;  %s3651_s5 = inlined_call_operand.vmem [shape: bf16[2,64,128], index: 5, kind: output, shape index: {0}]   ;;  %s3652_s6 = inlined_call_operand.vmem [shape: f32[2,2,128], index: 6, kind: output, shape index: {1}]  }
   0x1   :  { %s3244_s23 = smov 0  }
   0x2 LB: > { %s29_s24 = sadd.s32 1, %s3199_s22  ;;  %p2466_p0 = scmp.ge.s32.totalorder %s3203_s23, 1  ;;  %s3203_s23 = sphi %s3244_s23, %s17_s23   ;;  %s3199_s22 = sphi %s3242_s22, %s3656_s22   ;;  %s3195_s21 = sphi %s3240_s21, %s3655_s21  }
   0x3   : > { %p31_p1 = scmp.ge.s32.totalorder %s29_s24, 2  ;;  %p270_p2 = scmp.lt.s32.totalorder %s3203_s23, 3 }
   0x5   : > { %s3658_s24 = smov (%p31_p1, %s29_s24), 0  ;;  %p271_p3 = pnand %p2466_p0, %p270_p2 }
   0x6   : > { %v3085_v0 = vld [vmem:[%s3650_s4 + $0x40] sm:$0xff] (!%p271_p3)   ;;  %p329_p4 = scmp.lt.s32.totalorder (!%p271_p3), %s3195_s21, 1  ;;  %v3087_v2 = vld [vmem:[%s3650_s4 + $0x48] sm:$0xff] (!%p271_p3)   ;;  %v3089_v4 = vld [vmem:[%s3650_s4 + $0x50] sm:$0xff] (!%p271_p3)   ;;  %vm707_vm0 = vsmask.f32 (!%p271_p3), 3328 }
   0x7   : > { %274 = sbr.rel (%p271_p3) target bundleno = 414 (0x19e), region = 40  ;;  %v3086_v1 = vld [vmem:[%s3650_s4 + $0x100] sm:$0xff] (!%p271_p3)   ;;  %2764 = vmatprep.subr.bf16.mxu1 (!%p271_p3), %v3085_v0  ;;  %v3088_v3 = vld [vmem:[%s3650_s4 + $0x108] sm:$0xff] (!%p271_p3)   ;;  %v3090_v5 = vld [vmem:[%s3650_s4 + $0x110] sm:$0xff] (!%p271_p3)   ;;  %vm708_vm1 = vsmask.f32 (!%p271_p3), 7440 }
   0x8   : > { %2860 = vmatprep.subr.bf16.mxu0 (!%p271_p3), %v3086_v1  ;;  %2765 = vmatpush3.bf16.msra.mxu1 (!%p271_p3), %v3085_v0  ;;  %v3091_v6 = vld [vmem:[%s3650_s4 + $0x58] sm:$0xff] (!%p271_p3)   ;;  %v3093_v8 = vld [vmem:[%s3650_s4 + $0x60] sm:$0xff] (!%p271_p3)   ;;  %v3095_v10 = vld [vmem:[%s3650_s4 + $0x68] sm:$0xff] (!%p271_p3)  }
   0x9   : > { %2861 = vmatpush3.bf16.msra.mxu0 (!%p271_p3), %v3086_v1  ;;  %2766 = vmatprep.subr.bf16.mxu1 (!%p271_p3), %v3087_v2  ;;  %v3092_v7 = vld [vmem:[%s3650_s4 + $0x118] sm:$0xff] (!%p271_p3)   ;;  %v3094_v9 = vld [vmem:[%s3650_s4 + $0x120] sm:$0xff] (!%p271_p3)   ;;  %v3096_v12 = vld [vmem:[%s3650_s4 + $0x128] sm:$0xff] (!%p271_p3)  }
   0xa   : > { %2862 = vmatprep.subr.bf16.mxu0 (!%p271_p3), %v3088_v3  ;;  %v3097_v14 = vld [vmem:[%s3650_s4 + $0x70] sm:$0xff] (!%p271_p3)   ;;  %v3099_v16 = vld [vmem:[%s3650_s4 + $0x78] sm:$0xff] (!%p271_p3)   ;;  %v3102_v18 = vld [vmem:[%s3650_s4] sm:$0xff] (!%p271_p3)  }
   0xb   : > { %v3098_v15 = vld [vmem:[%s3650_s4 + $0x130] sm:$0xff] (!%p271_p3)   ;;  %v3100_v17 = vld [vmem:[%s3650_s4 + $0x138] sm:$0xff] (!%p271_p3)   ;;  %v3104_v19 = vld [vmem:[%s3650_s4 + $0x140] sm:$0xff] (!%p271_p3)  }
   0xc   : > { %2767 = vmatpush3.bf16.msra.mxu1 (!%p271_p3), %v3087_v2  ;;  %v3107_v22 = vld [vmem:[%s3650_s4 + $0x8] sm:$0xff] (!%p271_p3)   ;;  %v3109_v26 = vld [vmem:[%s3650_s4 + $0x10] sm:$0xff] (!%p271_p3)   ;;  %v3111_v28 = vld [vmem:[%s3650_s4 + $0x18] sm:$0xff] (!%p271_p3)  }
   0xd   : > { %2863 = vmatpush3.bf16.msra.mxu0 (!%p271_p3), %v3088_v3  ;;  %2768 = vmatprep.subr.bf16.mxu1 (!%p271_p3), %v3089_v4  ;;  %v3108_v23 = vld [vmem:[%s3650_s4 + $0x148] sm:$0xff] (!%p271_p3)   ;;  %v3110_v27 = vld [vmem:[%s3650_s4 + $0x150] sm:$0xff] (!%p271_p3)   ;;  %v3112_v31 = vld [vmem:[%s3650_s4 + $0x158] sm:$0xff] (!%p271_p3)  }
   0xe   : > { %s3660_s21 = smov (!%p329_p4, %s3195_s21), 1  ;;  %2864 = vmatprep.subr.bf16.mxu0 %v3090_v5  ;;  %v3113_v38 = vld [vmem:[%s3650_s4 + $0x20] sm:$0xff]   ;;  %v3115_v47 = vld [vmem:[%s3650_s4 + $0x28] sm:$0xff]   ;;  %vm3386_vm2 = vmor %vm707_vm0, %vm708_vm1 }
   0xf   : > { %s3285_s17 = smul.u32 72, %s3660_s21  ;;  %v3114_v43 = vld [vmem:[%s3650_s4 + $0x160] sm:$0xff]   ;;  %v3116_v50 = vld [vmem:[%s3650_s4 + $0x168] sm:$0xff]   ;;  %v3118_v2 = vld [vmem:[%s3650_s4 + $0x30] sm:$0xff]   ;;  %s2624_s14 = sshll.u32 %s3660_s21, 5 }
  0x10   : > { %2769 = vmatpush3.bf16.msra.mxu1 %v3089_v4  ;;  %s360_s19 = scalar_lea.vmem %s3651_s5, %s2624_s14  ;;  %s2473_s20 = sshll.u32 %s3660_s21, 1 }
  0x11   : > { %2865 = vmatpush3.bf16.msra.mxu0 %v3090_v5  ;;  %2770 = vmatprep.subr.bf16.mxu1 %v3091_v6  ;;  %s3297_s28 = scalar_lea.vmem %s3647_s1, %s3285_s17  ;;  %s3306_s9 = scalar_lea.vmem %s3649_s3, %s3285_s17 }
  0x12   : > { %2866 = vmatprep.subr.bf16.mxu0 %v3092_v7  ;;  %v3101_v11 = vld [vmem:[%s3297_s28] ss:$8 sps:$4 sm:$0xff]   ;;  %v3105_v20 = vld [vmem:[%s3297_s28 + $0x10] ss:$8 sps:$4 sm:$0xff]   ;;  %s3351_s18 = scalar_lea.vmem %s3646_s0, %s3285_s17  ;;  %s3361_s27 = scalar_lea.vmem %s3648_s2, %s3285_s17 }
  0x13   : > { %2780 = vmatprep.mubr.bf16.mxu1 %v3101_v11  ;;  %v3103_v13 = vld [vmem:[%s3306_s9] ss:$8 sps:$4 sm:$0xff]   ;;  %v3106_v21 = vld [vmem:[%s3306_s9 + $0x10] ss:$8 sps:$4 sm:$0xff]   ;;  %v1314_v34 = vld [vmem:[%s3361_s27 + $0x4] sm:$0x1]  ;;  %s367_s29 = scalar_lea.vmem %s3652_s6, %s2473_s20 }
  0x14   : > { %2771 = vmatpush3.bf16.msra.mxu1 %v3091_v6  ;;  %2876 = vmatprep.mubr.bf16.mxu0 %v3103_v13  ;;  %v3117_v24 = vld [vmem:[%s3297_s28 + $0x20] ss:$8 sps:$4 sm:$0xff]   ;;  %v3121_v29 = vld [vmem:[%s3297_s28 + $0x30] ss:$8 sps:$4 sm:$0xff]   ;;  %v1316_v39 = vld [vmem:[%s3361_s27 + $0xc] sm:$0x1] }
  0x15   : > { %2867 = vmatpush3.bf16.msra.mxu0 %v3092_v7  ;;  %2772 = vmatprep.subr.bf16.mxu1 %v3093_v8  ;;  %v3119_v25 = vld [vmem:[%s3306_s9 + $0x20] ss:$8 sps:$4 sm:$0xff]   ;;  %v3122_v30 = vld [vmem:[%s3306_s9 + $0x30] ss:$8 sps:$4 sm:$0xff]   ;;  %v1339_v40 = vshll.u32 %v1314_v34, 16  ;;  %v1353_v46 = vshll.u32 %v1316_v39, 16 }
  0x16   : > { %2868 = vmatprep.subr.bf16.mxu0 %v3094_v9  ;;  %v3125_v32 = vld [vmem:[%s3351_s18] ss:$8 sps:$4 sm:$0xff]   ;;  %v1317_v56 = vld [vmem:[%s3361_s27 + $0x10] sm:$0xf]  ;;  %v1318_v57 = vld [vmem:[%s3361_s27 + $0x14] sm:$0x1] }
  0x17   : > { %v1313_v33 = vld [vmem:[%s3361_s27] sm:$0xf]  ;;  %v1315_v35 = vld [vmem:[%s3361_s27 + $0x8] sm:$0xf]  ;;  %v1341_v52 = vrot.slane %v1339_v40, 5  ;;  %v1355_v55 = vrot.slane %v1353_v46, 5 }
  0x18   : > { %2773 = vmatpush3.bf16.msra.mxu1 %v3093_v8  ;;  %v1330_v36 = vshrl.u32 %v1313_v33, 16  ;;  %v1333_v37 = vshll.u32 %v1313_v33, 16  ;;  %v1344_v41 = vshrl.u32 %v1315_v35, 16  ;;  %v1347_v42 = vshll.u32 %v1315_v35, 16  ;;  %v1319_v59 = vld [vmem:[%s3361_s27 + $0x18] sm:$0xf] }
  0x19   : > { %2869 = vmatpush3.bf16.msra.mxu0 %v3094_v9  ;;  %2774 = vmatprep.subr.bf16.mxu1 %v3095_v10  ;;  %v1320_v60 = vld [vmem:[%s3361_s27 + $0x1c] sm:$0x1]  ;;  %v1358_v61 = vshrl.u32 %v1317_v56, 16  ;;  %v1361_v63 = vshll.u32 %v1317_v56, 16  ;;  %v1367_v0 = vshll.u32 %v1318_v57, 16  ;;  %v1372_v1 = vshrl.u32 %v1319_v59, 16 }
  0x1a   : > { %2870 = vmatprep.subr.bf16.mxu0 %v3096_v12  ;;  %v1332_v44 = vrot.slane %v1330_v36, 4  ;;  %v1335_v45 = vrot.slane %v1333_v37, 5  ;;  %v1346_v48 = vrot.slane %v1344_v41, 4  ;;  %v1349_v49 = vrot.slane %v1347_v42, 5  ;;  %v3120_v6 = vld [vmem:[%s3650_s4 + $0x170] sm:$0xff]  }
  0x1b   : > { %v1360_v4 = vrot.slane %v1358_v61, 4  ;;  %v1375_v5 = vshll.u32 %v1319_v59, 16  ;;  %v1363_v8 = vrot.slane %v1361_v63, 5  ;;  %v1374_v9 = vrot.slane %v1372_v1, 4  ;;  %v3139_v37 = vld [vmem:[%s3351_s18 + $0x20] ss:$8 sps:$4 sm:$0xff]  }
  0x1c   : > { %2775 = vmatpush3.bf16.msra.mxu1 %v3095_v10  ;;  %v1336_v51 = vor.u32 %v1335_v45, %v1332_v44  ;;  %v1350_v54 = vor.u32 %v1349_v49, %v1346_v48  ;;  %v1381_v10 = vshll.u32 %v1320_v60, 16  ;;  %v3142_v48 = vld [vmem:[%s3351_s18 + $0x30] ss:$8 sps:$4 sm:$0xff]  }
  0x1d   : > { %2871 = vmatpush3.bf16.msra.mxu0 %v3096_v12  ;;  %2776 = vmatprep.subr.bf16.mxu1 %v3097_v14  ;;  %v1369_v12 = vrot.slane %v1367_v0, 5  ;;  %v1377_v13 = vrot.slane %v1375_v5, 5  ;;  %v1325_v49 = vld [vmem:[%s3361_s27 + $0x30] sm:$0xf]  ;;  %v3133_v59 = vld [vmem:[%s3650_s4 + $0x98] sm:$0xff]  }
  0x1e   : > { %2872 = vmatprep.subr.bf16.mxu0 %v3098_v15  ;;  %v1337_v58 = vrot.slane %v1336_v51, 4  ;;  %v1351_v62 = vrot.slane %v1350_v54, 4  ;;  %v1327_v51 = vld [vmem:[%s3361_s27 + $0x38] sm:$0xf]  ;;  %v1414_v56 = vshrl.u32 %v1325_v49, 16  ;;  %v1417_v57 = vshll.u32 %v1325_v49, 16 }
  0x1f   : > { %v1428_v61 = vshrl.u32 %v1327_v51, 16 }
  0x20   : > { %2777 = vmatpush3.bf16.msra.mxu1 %v3097_v14  ;;  %v1342_v3 = vsel %vm3386_vm2, %v1337_v58, %v1341_v52  ;;  %v1356_v7 = vsel %vm3386_vm2, %v1351_v62, %v1355_v55  ;;  %v3123_v14 = vld [vmem:[%s3650_s4 + $0x38] sm:$0xff]   ;;  %v3132_v52 = vld [vmem:[%s3650_s4 + $0x190] sm:$0xff]   ;;  %v1431_v62 = vshll.u32 %v1327_v51, 16  ;;  %v1416_v1 = vrot.slane %v1414_v56, 4 }
  0x21   : > { %2873 = vmatpush3.bf16.msra.mxu0 %v3098_v15  ;;  %2778 = vmatprep.subr.bf16.mxu1 %v3099_v16  ;;  %v2534_v11 = vcombine.low %v1342_v3, %v1356_v7  ;;  %v1364_v15 = vor.u32 %v1363_v8, %v1360_v4  ;;  %v1328_v55 = vld [vmem:[%s3361_s27 + $0x3c] sm:$0x1] }
  0x22   : > { %2874 = vmatprep.subr.bf16.mxu0 %v3100_v17  ;;  %v1437_v63 = vshll.u32 %v1328_v55, 16  ;;  %v3134_v4 = vld [vmem:[%s3650_s4 + $0x198] sm:$0xff]   ;;  %v1433_v7 = vrot.slane %v1431_v62, 5 }
  0x24   : > { %2779 = vmatpush3.bf16.msra.mxu1 %v3099_v16  ;;  %v1378_v16 = vor.u32 %v1377_v13, %v1374_v9  ;;  %v1439_v8 = vrot.slane %v1437_v63, 5  ;;  %v3135_v13 = vld [vmem:[%s3650_s4 + $0xa0] sm:$0xff]  }
  0x25   : > { %2875 = vmatpush3.bf16.msra.mxu0 %v3100_v17  ;;  %2788 = vmatprep.subr.bf16.mxu1 %v3102_v18  ;;  %v1365_v17 = vrot.slane %v1364_v15, 4 }
  0x26   : > { %2884 = vmatprep.subr.bf16.mxu0 %v3104_v19 }
  0x27   : > { %2781 = vmatmul.mubr.bf16.vlgmr.msra.gmra.mrb[0].mxu1 %v3105_v20  ;;  %v1379_v20 = vrot.slane %v1378_v16, 4  ;;  %v693_v16 = vld [vmem:[%s3351_s18 + $0x8] sm:$0xf] }
  0x28   : > { %2789 = vmatpush3.bf16.msra.mxu1 %v3102_v18  ;;  %2877 = vmatmul.mubr.bf16.vlgmr.msra.gmra.mrb[0].mxu0 %v3106_v21  ;;  %v1383_v18 = vrot.slane %v1381_v10, 5  ;;  %v3126_v21 = vld [vmem:[%s3650_s4 + $0x80] sm:$0xff]  }
  0x29   : > { %2885 = vmatpush3.bf16.msra.mxu0 %v3104_v19  ;;  %2790 = vmatprep.subr.bf16.mxu1 %v3107_v22  ;;  %v3124_v19 = vld [vmem:[%s3650_s4 + $0x178] sm:$0xff]  }
  0x2a   : > { %2886 = vmatprep.subr.bf16.mxu0 %v3108_v23  ;;  %2784 = vmatprep.mubr.bf16.mxu1 %v3117_v24  ;;  %v3127_v24 = vld [vmem:[%s3650_s4 + $0x180] sm:$0xff]  }
  0x2b   : > { %2880 = vmatprep.mubr.bf16.mxu0 %v3119_v25  ;;  %v3128_v25 = vld [vmem:[%s3351_s18 + $0x10] ss:$8 sps:$4 sm:$0xff]  }
  0x2c   : > { %2791 = vmatpush3.bf16.msra.mxu1 %v3107_v22  ;;  %v1370_v22 = vsel %vm3386_vm2, %v1365_v17, %v1369_v12  ;;  %v692_v12 = vld [vmem:[%s3351_s18 + $0x4] sm:$0x1]  ;;  %v694_v17 = vld [vmem:[%s3351_s18 + $0xc] sm:$0x1] }
  0x2d   : > { %2887 = vmatpush3.bf16.msra.mxu0 %v3108_v23  ;;  %2792 = vmatprep.subr.bf16.mxu1 %v3109_v26  ;;  %v1384_v23 = vsel %vm3386_vm2, %v1379_v20, %v1383_v18 }
  0x2e   : > { %2888 = vmatprep.subr.bf16.mxu0 %v3110_v27 }
  0x2f   : > { %2785 = vmatmul.mubr.bf16.gmra.mrb[4].mxu1 %v3121_v29  ;;  %v3130_v29 = vld [vmem:[%s3650_s4 + $0x188] sm:$0xff]  }
  0x30   : > { %2793 = vmatpush3.bf16.msra.mxu1 %v3109_v26  ;;  %2881 = vmatmul.mubr.bf16.gmra.mrb[4].mxu0 %v3122_v30  ;;  %v3129_v26 = vld [vmem:[%s3650_s4 + $0x88] sm:$0xff]   ;;  %v1322_v30 = vld [vmem:[%s3361_s27 + $0x24] sm:$0x1] }
  0x31   : > { %2889 = vmatpush3.bf16.msra.mxu0 %v3110_v27  ;;  %2794 = vmatprep.subr.bf16.mxu1 %v3111_v28  ;;  %v1321_v27 = vld [vmem:[%s3361_s27 + $0x20] sm:$0xf]  ;;  %v1395_v35 = vshll.u32 %v1322_v30, 16 }
  0x32   : > { %2890 = vmatprep.subr.bf16.mxu0 %v3112_v31  ;;  %2804 = vmatprep.mubr.bf16.mxu1 %v3125_v32  ;;  %v1324_v32 = vld [vmem:[%s3361_s27 + $0x2c] sm:$0x1]  ;;  %v1386_v33 = vshrl.u32 %v1321_v27, 16  ;;  %v1389_v34 = vshll.u32 %v1321_v27, 16  ;;  %v734_v27 = vshll.u32 %v694_v17, 16 }
  0x33   : > { %2900 = vmatprep.mubr.bf16.mxu0 %v2534_v11  ;;  %v1409_v39 = vshll.u32 %v1324_v32, 16  ;;  %v1397_v44 = vrot.slane %v1395_v35, 5  ;;  %v691_v11 = vld [vmem:[%s3351_s18] sm:$0xf]  ;;  %v3137_v32 = vld [vmem:[%s3650_s4 + $0xa8] sm:$0xff]  }
  0x34   : > { %2795 = vmatpush3.bf16.msra.mxu1 %v3111_v28  ;;  %v2535_v28 = vcombine.low %v1370_v22, %v1384_v23  ;;  %v1388_v40 = vrot.slane %v1386_v33, 4  ;;  %v1391_v41 = vrot.slane %v1389_v34, 5  ;;  %v711_v18 = vshrl.u32 %v691_v11, 16  ;;  %v702_v17 = vld [vmem:[%s3351_s18 + $0x2c] sm:$0x1] }
  0x35   : > { %2891 = vmatpush3.bf16.msra.mxu0 %v3112_v31  ;;  %2796 = vmatprep.subr.bf16.mxu1 %v3113_v38  ;;  %v1323_v31 = vld [vmem:[%s3361_s27 + $0x28] sm:$0xf]  ;;  %v1411_v46 = vrot.slane %v1409_v39, 5  ;;  %v725_v22 = vshrl.u32 %v693_v16, 16  ;;  %v728_v23 = vshll.u32 %v693_v16, 16 }
  0x36   : > { %2892 = vmatprep.subr.bf16.mxu0 %v3114_v43  ;;  %v1400_v36 = vshrl.u32 %v1323_v31, 16  ;;  %v701_v16 = vld [vmem:[%s3351_s18 + $0x28] sm:$0xf] }
  0x37   : > { %v727_v30 = vrot.slane %v725_v22, 4  ;;  %v781_v22 = vshrl.u32 %v701_v16, 16 }
  0x38   : > { %2797 = vmatpush3.bf16.msra.mxu1 %v3113_v38  ;;  %v1403_v38 = vshll.u32 %v1323_v31, 16  ;;  %v1402_v42 = vrot.slane %v1400_v36, 4  ;;  %v730_v31 = vrot.slane %v728_v23, 5  ;;  %v736_v36 = vrot.slane %v734_v27, 5 }
  0x39   : > { %2893 = vmatpush3.bf16.msra.mxu0 %v3114_v43  ;;  %2798 = vmatprep.subr.bf16.mxu1 %v3115_v47  ;;  %v3131_v43 = vld [vmem:[%s3650_s4 + $0x90] sm:$0xff]   ;;  %v784_v23 = vshll.u32 %v701_v16, 16  ;;  %v2587_v16 = vld [vmem:[%s3351_s18 + $0xc] sm:$0x1] }
  0x3a   : > { %2894 = vmatprep.subr.bf16.mxu0 %v3116_v50  ;;  %v1405_v45 = vrot.slane %v1403_v38, 5  ;;  %v3138_v38 = vld [vmem:[%s3650_s4 + $0x1a8] sm:$0xff]  }
  0x3c   : > { %2799 = vmatpush3.bf16.msra.mxu1 %v3115_v47  ;;  %v1392_v47 = vor.u32 %v1391_v41, %v1388_v40  ;;  %v1406_v54 = vor.u32 %v1405_v45, %v1402_v42  ;;  %v731_v40 = vor.u32 %v730_v31, %v727_v30  ;;  %v695_v41 = vld [vmem:[%s3351_s18 + $0x10] sm:$0xf]  ;;  %v786_v31 = vrot.slane %v784_v23, 5 }
  0x3d   : > { %2895 = vmatpush3.bf16.msra.mxu0 %v3116_v50  ;;  %2800 = vmatprep.subr.bf16.mxu1 %v3118_v2  ;;  %v1326_v50 = vld [vmem:[%s3361_s27 + $0x34] sm:$0x1]  ;;  %v739_v45 = vshrl.u32 %v695_v41, 16  ;;  %v703_v30 = vld [vmem:[%s3351_s18 + $0x30] sm:$0xf] }
  0x3e   : > { %2896 = vmatprep.subr.bf16.mxu0 %v3120_v6  ;;  %v1423_v58 = vshll.u32 %v1326_v50, 16  ;;  %v1393_v60 = vrot.slane %v1392_v47, 4  ;;  %v1407_v0 = vrot.slane %v1406_v54, 4  ;;  %v698_v47 = vld [vmem:[%s3351_s18 + $0x1c] sm:$0x1] }
  0x40   : > { %2801 = vmatpush3.bf16.msra.mxu1 %v3118_v2  ;;  %v1419_v2 = vrot.slane %v1417_v57, 5  ;;  %v1425_v3 = vrot.slane %v1423_v58, 5  ;;  %v1398_v5 = vsel %vm3386_vm2, %v1393_v60, %v1397_v44  ;;  %v1412_v9 = vsel %vm3386_vm2, %v1407_v0, %v1411_v46  ;;  %v697_v44 = vld [vmem:[%s3351_s18 + $0x18] sm:$0xf]  ;;  %v3141_v60 = vld [vmem:[%s3650_s4 + $0x1b0] sm:$0xff]  }
  0x41   : > { %2897 = vmatpush3.bf16.msra.mxu0 %v3120_v6  ;;  %2802 = vmatprep.subr.bf16.mxu1 %v3123_v14  ;;  %v1430_v6 = vrot.slane %v1428_v61, 4  ;;  %v732_v46 = vrot.slane %v731_v40, 4  ;;  %v753_v50 = vshrl.u32 %v697_v44, 16  ;;  %v756_v54 = vshll.u32 %v697_v44, 16 }
  0x42   : > { %2898 = vmatprep.subr.bf16.mxu0 %v3124_v19  ;;  %v1420_v10 = vor.u32 %v1419_v2, %v1416_v1  ;;  %v762_v58 = vshll.u32 %v698_v47, 16 }
  0x43   : > { %v1434_v15 = vor.u32 %v1433_v7, %v1430_v6  ;;  %v737_v55 = vsel %vm3386_vm2, %v732_v46, %v736_v36  ;;  %v755_v57 = vrot.slane %v753_v50, 4  ;;  %v758_v63 = vrot.slane %v756_v54, 5  ;;  %v3144_v6 = vld [vmem:[%s3650_s4 + $0x1b8] sm:$0xff]   ;;  %v3145_v7 = vld [vmem:[%s3650_s4 + $0xc0] sm:$0xff]  }
  0x44   : > { %2803 = vmatpush3.bf16.msra.mxu1 %v3123_v14  ;;  %v2536_v14 = vcombine.low %v1398_v5, %v1412_v9  ;;  %v1421_v20 = vrot.slane %v1420_v10, 4  ;;  %v3147_v10 = vld [vmem:[%s3650_s4 + $0x1c0] sm:$0xff]   ;;  %v3153_v50 = vld [vmem:[%s3650_s4 + $0xd8] sm:$0xff]  }
  0x45   : > { %2899 = vmatpush3.bf16.msra.mxu0 %v3124_v19  ;;  %2812 = vmatprep.subr.bf16.mxu1 %v3126_v21  ;;  %v714_v19 = vshll.u32 %v691_v11, 16  ;;  %v759_v1 = vor.u32 %v758_v63, %v755_v57  ;;  %v3148_v11 = vld [vmem:[%s3351_s18 + $0x18] ss:$8 sps:$4 sm:$0xff]  }
  0x46   : > { %2908 = vmatprep.subr.bf16.mxu0 %v3127_v24 }
  0x47   : > { %2805 = vmatmul.mubr.bf16.vlgmr.msra.gmra.mrb[0].mxu1 %v3128_v25  ;;  %v713_v25 = vrot.slane %v711_v18, 4  ;;  %v760_v5 = vrot.slane %v759_v1, 4  ;;  %v3150_v18 = vld [vmem:[%s3650_s4 + $0x1c8] sm:$0xff]   ;;  %v3155_v1 = vld [vmem:[%s3650_s4 + $0xe0] sm:$0xff]  }
  0x48   : > { %2813 = vmatpush3.bf16.msra.mxu1 %v3126_v21  ;;  %2901 = vmatmul.mubr.bf16.vlgmr.msra.gmra.mrb[0].mxu0 %v2535_v28  ;;  %v720_v21 = vshll.u32 %v692_v12, 16  ;;  %v3136_v28 = vld [vmem:[%s3650_s4 + $0x1a0] sm:$0xff]  }
  0x49   : > { %2909 = vmatpush3.bf16.msra.mxu0 %v3127_v24  ;;  %2814 = vmatprep.subr.bf16.mxu1 %v3129_v26  ;;  %v1435_v24 = vrot.slane %v1434_v15, 4  ;;  %v699_v12 = vld [vmem:[%s3351_s18 + $0x20] sm:$0xf]  ;;  %v700_v15 = vld [vmem:[%s3351_s18 + $0x24] sm:$0x1] }
  0x4a   : > { %2910 = vmatprep.subr.bf16.mxu0 %v3130_v29  ;;  %2808 = vmatprep.mubr.bf16.mxu1 %v3139_v37  ;;  %v722_v35 = vrot.slane %v720_v21, 5  ;;  %v3146_v37 = vld [vmem:[%s3351_s18 + $0x8] ss:$8 sps:$4 sm:$0xff]   ;;  %v776_v21 = vshll.u32 %v700_v15, 16 }
  0x4b   : > { %2904 = vmatprep.mubr.bf16.mxu0 %v2536_v14  ;;  %v1440_v33 = vsel %vm3386_vm2, %v1435_v24, %v1439_v8  ;;  %v3149_v14 = vld [vmem:[%s3650_s4 + $0xc8] sm:$0xff]   ;;  %v790_v24 = vshll.u32 %v702_v17, 16  ;;  %v2588_v17 = vld [vmem:[%s3351_s18 + $0x10] sm:$0xf] }
  0x4c   : > { %2815 = vmatpush3.bf16.msra.mxu1 %v3129_v26  ;;  %v716_v26 = vrot.slane %v714_v19, 5  ;;  %v767_v19 = vshrl.u32 %v699_v12, 16  ;;  %v2586_v15 = vld [vmem:[%s3351_s18 + $0x8] sm:$0xf]  ;;  %v1968_v23 = vshll.u32 %v2588_v17, 16 }
  0x4d   : > { %2911 = vmatpush3.bf16.msra.mxu0 %v3130_v29  ;;  %2816 = vmatprep.subr.bf16.mxu1 %v3131_v43  ;;  %v1426_v29 = vsel %vm3386_vm2, %v1421_v20, %v1425_v3  ;;  %v764_v3 = vrot.slane %v762_v58, 5  ;;  %v770_v20 = vshll.u32 %v699_v12, 16  ;;  %v3161_v58 = vld [vmem:[%s3351_s18 + $0x38] ss:$8 sps:$4 sm:$0xff]  }
  0x4e   : > { %2912 = vmatprep.subr.bf16.mxu0 %v3132_v52  ;;  %v717_v34 = vor.u32 %v716_v26, %v713_v25  ;;  %v2537_v39 = vcombine.low %v1426_v29, %v1440_v33  ;;  %v3159_v25 = vld [vmem:[%s3351_s18 + $0x28] ss:$8 sps:$4 sm:$0xff]   ;;  %v769_v26 = vrot.slane %v767_v19, 4  ;;  %v783_v29 = vrot.slane %v781_v22, 4  ;;  %v704_v33 = vld [vmem:[%s3351_s18 + $0x34] sm:$0x1] }
  0x4f   : > { %2809 = vmatmul.mubr.bf16.gmra.mrb[4].mxu1 %v3142_v48  ;;  %v742_v48 = vshll.u32 %v695_v41, 16  ;;  %v765_v9 = vsel %vm3386_vm2, %v760_v5, %v764_v3  ;;  %v772_v27 = vrot.slane %v770_v20, 5  ;;  %v804_v40 = vshll.u32 %v704_v33, 16  ;;  %v3152_v41 = vld [vmem:[%s3650_s4 + $0x1d0] sm:$0xff]   ;;  %v3156_v5 = vld [vmem:[%s3650_s4 + $0x1e0] sm:$0xff]   ;;  %v3163_v12 = vld [vmem:[%s3650_s4 + $0xf8] sm:$0xff]  }
  0x50   : > { %2817 = vmatpush3.bf16.msra.mxu1 %v3131_v43  ;;  %v718_v42 = vrot.slane %v717_v34, 4  ;;  %v696_v43 = vld [vmem:[%s3351_s18 + $0x14] sm:$0x1]  ;;  %2905 = vmatmul.mubr.bf16.gmra.mrb[4].mxu0 %v2537_v39  ;;  %v705_v34 = vld [vmem:[%s3351_s18 + $0x38] sm:$0xf]  ;;  %v798_v39 = vshll.u32 %v703_v30, 16 }
  0x51   : > { %2913 = vmatpush3.bf16.msra.mxu0 %v3132_v52  ;;  %2818 = vmatprep.subr.bf16.mxu1 %v3133_v59  ;;  %v748_v49 = vshll.u32 %v696_v43, 16  ;;  %v741_v52 = vrot.slane %v739_v45, 4  ;;  %v744_v56 = vrot.slane %v742_v48, 5  ;;  %v773_v36 = vor.u32 %v772_v27, %v769_v26  ;;  %v2597_v33 = vld [vmem:[%s3351_s18 + $0x34] sm:$0x1] }
  0x52   : > { %2914 = vmatprep.subr.bf16.mxu0 %v3134_v4  ;;  %v723_v51 = vsel %vm3386_vm2, %v718_v42, %v722_v35  ;;  %2924 = vmatprep.mubr.bf16.mxu0 %v3146_v37  ;;  %v3151_v35 = vld [vmem:[%s3650_s4 + $0xd0] sm:$0xff]   ;;  %v706_v37 = vld [vmem:[%s3351_s18 + $0x3c] sm:$0x1]  ;;  %v787_v42 = vor.u32 %v786_v31, %v783_v29  ;;  %v809_v43 = vshrl.u32 %v705_v34, 16  ;;  %v812_v44 = vshll.u32 %v705_v34, 16 }
  0x53   : > { %v2498_v61 = vcombine.low %v723_v51, %v737_v55  ;;  %v750_v62 = vrot.slane %v748_v49, 5  ;;  %v745_v0 = vor.u32 %v744_v56, %v741_v52  ;;  %v818_v45 = vshll.u32 %v706_v37, 16  ;;  %v2596_v29 = vld [vmem:[%s3351_s18 + $0x30] sm:$0xf]  ;;  %v3168_v34 = vld [vmem:[%s3297_s28 + $0x18] ss:$8 sps:$4 sm:$0xff]  }
  0x54   : > { %2819 = vmatpush3.bf16.msra.mxu1 %v3133_v59  ;;  %v3140_v59 = vld [vmem:[%s3650_s4 + $0xb0] sm:$0xff]   ;;  %v774_v46 = vrot.slane %v773_v36, 4  ;;  %v800_v48 = vrot.slane %v798_v39, 5  ;;  %v806_v49 = vrot.slane %v804_v40, 5  ;;  %v788_v51 = vrot.slane %v787_v42, 4  ;;  %v3170_v39 = vld [vmem:[%s3650_s4 + $0x208] sm:$0xff]  }
  0x55   : > { %2915 = vmatpush3.bf16.msra.mxu0 %v3134_v4  ;;  %2820 = vmatprep.subr.bf16.mxu1 %v3135_v13  ;;  %v746_v2 = vrot.slane %v745_v0, 4  ;;  %v3143_v4 = vld [vmem:[%s3650_s4 + $0xb8] sm:$0xff]   ;;  %v811_v52 = vrot.slane %v809_v43, 4  ;;  %v814_v54 = vrot.slane %v812_v44, 5  ;;  %v820_v55 = vrot.slane %v818_v45, 5 }
  0x56   : > { %2916 = vmatprep.subr.bf16.mxu0 %v3136_v28  ;;  %2828 = vmatprep.mubr.bf16.mxu1 %v2498_v61  ;;  %v3154_v61 = vld [vmem:[%s3650_s4 + $0x1d8] sm:$0xff]   ;;  %v1951_v19 = vshrl.u32 %v2586_v15, 16  ;;  %v1954_v20 = vshll.u32 %v2586_v15, 16  ;;  %v1965_v22 = vshrl.u32 %v2588_v17, 16  ;;  %v2024_v42 = vshll.u32 %v2596_v29, 16  ;;  %v3177_v15 = vld [vmem:[%s3650_s4 + $0x220] sm:$0xff]  }
  0x57   : > { %v751_v8 = vsel %vm3386_vm2, %v746_v2, %v750_v62  ;;  %v2030_v43 = vshll.u32 %v2597_v33, 16  ;;  %v3171_v44 = vld [vmem:[%s3361_s27 + $0x20] ss:$8 sps:$4 sm:$0xff]  }
  0x58   : > { %2821 = vmatpush3.bf16.msra.mxu1 %v3135_v13  ;;  %v2499_v13 = vcombine.low %v751_v8, %v765_v9  ;;  %v3157_v8 = vld [vmem:[%s3650_s4 + $0xe8] sm:$0xff]   ;;  %v1953_v26 = vrot.slane %v1951_v19, 4  ;;  %v1956_v27 = vrot.slane %v1954_v20, 5  ;;  %v1967_v31 = vrot.slane %v1965_v22, 4 }
  0x59   : > { %2917 = vmatpush3.bf16.msra.mxu0 %v3136_v28  ;;  %2822 = vmatprep.subr.bf16.mxu1 %v3137_v32  ;;  %v778_v28 = vrot.slane %v776_v21, 5  ;;  %v3158_v9 = vld [vmem:[%s3650_s4 + $0x1e8] sm:$0xff]   ;;  %v1960_v21 = vshll.u32 %v2587_v16, 16 }
  0x5a   : > { %2918 = vmatprep.subr.bf16.mxu0 %v3138_v38  ;;  %v3178_v20 = vld [vmem:[%s3650_s4 + $0x228] sm:$0xff]  }
  0x5b   : > { %v779_v56 = vsel %vm3386_vm2, %v774_v46, %v778_v28  ;;  %v2595_v28 = vld [vmem:[%s3351_s18 + $0x2c] sm:$0x1]  ;;  %v1962_v45 = vrot.slane %v1960_v21, 5  ;;  %v2599_v21 = vld [vmem:[%s3351_s18 + $0x3c] sm:$0x1] }
  0x5c   : > { %2823 = vmatpush3.bf16.msra.mxu1 %v3137_v32  ;;  %v792_v32 = vrot.slane %v790_v24, 5 }
  0x5d   : > { %2919 = vmatpush3.bf16.msra.mxu0 %v3138_v38  ;;  %2824 = vmatprep.subr.bf16.mxu1 %v3140_v59  ;;  %v795_v38 = vshrl.u32 %v703_v30, 16  ;;  %v3167_v30 = vld [vmem:[%s3361_s27 + $0x10] ss:$8 sps:$4 sm:$0xff]  }
  0x5e   : > { %2920 = vmatprep.subr.bf16.mxu0 %v3141_v60 }
  0x5f   : > { %v797_v47 = vrot.slane %v795_v38, 4  ;;  %v2016_v38 = vshll.u32 %v2595_v28, 16 }
  0x60   : > { %2825 = vmatpush3.bf16.msra.mxu1 %v3140_v59  ;;  %v793_v59 = vsel %vm3386_vm2, %v788_v51, %v792_v32  ;;  %v1970_v32 = vrot.slane %v1968_v23, 5 }
  0x61   : > { %2921 = vmatpush3.bf16.msra.mxu0 %v3141_v60  ;;  %2826 = vmatprep.subr.bf16.mxu1 %v3143_v4  ;;  %v801_v57 = vor.u32 %v800_v48, %v797_v47  ;;  %v815_v60 = vor.u32 %v814_v54, %v811_v52  ;;  %v2500_v62 = vcombine.low %v779_v56, %v793_v59  ;;  %v2026_v54 = vrot.slane %v2024_v42, 5 }
  0x62   : > { %2922 = vmatprep.subr.bf16.mxu0 %v3144_v6  ;;  %v1971_v40 = vor.u32 %v1970_v32, %v1967_v31  ;;  %v2018_v56 = vrot.slane %v2016_v38, 5  ;;  %v2032_v59 = vrot.slane %v2030_v43, 5  ;;  %v2591_v31 = vld [vmem:[%s3351_s18 + $0x1c] sm:$0x1]  ;;  %v2593_v32 = vld [vmem:[%s3351_s18 + $0x24] sm:$0x1] }
  0x63   : > { %v802_v63 = vrot.slane %v801_v57, 4  ;;  %v816_v0 = vrot.slane %v815_v60, 4  ;;  %v3175_v57 = vld [vmem:[%s3650_s4 + $0x210] sm:$0xff]  }
  0x64   : > { %2827 = vmatpush3.bf16.msra.mxu1 %v3143_v4  ;;  %v3166_v4 = vld [vmem:[%s3297_s28 + $0x8] ss:$8 sps:$4 sm:$0xff]   ;;  %v1972_v51 = vrot.slane %v1971_v40, 4 }
  0x65   : > { %2923 = vmatpush3.bf16.msra.mxu0 %v3144_v6  ;;  %2836 = vmatprep.subr.bf16.mxu1 %v3145_v7  ;;  %v807_v2 = vsel %vm3386_vm2, %v802_v63, %v806_v49  ;;  %v821_v3 = vsel %vm3386_vm2, %v816_v0, %v820_v55  ;;  %v3172_v49 = vld [vmem:[%s3297_s28 + $0x28] ss:$8 sps:$4 sm:$0xff]  }
  0x66   : > { %2932 = vmatprep.subr.bf16.mxu0 %v3147_v10  ;;  %v2501_v6 = vcombine.low %v807_v2, %v821_v3  ;;  %v3176_v3 = vld [vmem:[%s3650_s4 + $0x218] sm:$0xff]  }
  0x67   : > { %2829 = vmatmul.mubr.bf16.vlgmr.msra.gmra.mrb[0].mxu1 %v2499_v13  ;;  %v3164_v13 = vld [vmem:[%s3650_s4 + $0x1f8] sm:$0xff]  }
  0x68   : > { %2837 = vmatpush3.bf16.msra.mxu1 %v3145_v7  ;;  %2925 = vmatmul.mubr.bf16.vlgmr.msra.gmra.mrb[0].mxu0 %v3148_v11  ;;  %v3165_v7 = vld [vmem:[%s3361_s27] ss:$8 sps:$4 sm:$0xff]   ;;  %v3162_v11 = vld [vmem:[%s3650_s4 + $0x1f0] sm:$0xff]  }
  0x69   : > { %2933 = vmatpush3.bf16.msra.mxu0 %v3147_v10  ;;  %2838 = vmatprep.subr.bf16.mxu1 %v3149_v14  ;;  %v3160_v10 = vld [vmem:[%s3650_s4 + $0xf0] sm:$0xff]  }
  0x6a   : > { %2934 = vmatprep.subr.bf16.mxu0 %v3150_v18  ;;  %2928 = vmatprep.mubr.bf16.mxu0 %v3159_v25  ;;  %v2594_v25 = vld [vmem:[%s3351_s18 + $0x28] sm:$0xf] }
  0x6b   : > { %2832 = vmatprep.mubr.bf16.mxu1 %v2500_v62  ;;  %v2007_v36 = vshrl.u32 %v2594_v25, 16  ;;  %v2010_v37 = vshll.u32 %v2594_v25, 16 }
  0x6c   : > { %2839 = vmatpush3.bf16.msra.mxu1 %v3149_v14  ;;  %v3169_v14 = vld [vmem:[%s3650_s4 + $0x200] sm:$0xff]  }
  0x6d   : > { %2935 = vmatpush3.bf16.msra.mxu0 %v3150_v18  ;;  %2840 = vmatprep.subr.bf16.mxu1 %v3151_v35  ;;  %v2589_v18 = vld [vmem:[%s3351_s18 + $0x14] sm:$0x1]  ;;  %v2009_v47 = vrot.slane %v2007_v36, 4  ;;  %v2012_v48 = vrot.slane %v2010_v37, 5 }
  0x6e   : > { %2936 = vmatprep.subr.bf16.mxu0 %v3152_v41  ;;  %v1974_v24 = vshll.u32 %v2589_v18, 16  ;;  %v3179_v37 = vld [vmem:[%s3650_s4 + $0x230] sm:$0xff]  }
  0x6f   : > { %2833 = vmatmul.mubr.bf16.gmra.mrb[4].mxu1 %v2501_v6  ;;  %v2013_v55 = vor.u32 %v2012_v48, %v2009_v47  ;;  %v2600_v6 = vld [vmem:[%s3351_s18 + $0x40] sm:$0xf] }
  0x70   : > { %2841 = vmatpush3.bf16.msra.mxu1 %v3151_v35  ;;  %2929 = vmatmul.mubr.bf16.gmra.mrb[4].mxu0 %v3161_v58  ;;  %v1957_v35 = vor.u32 %v1956_v27, %v1953_v26  ;;  %v1976_v46 = vrot.slane %v1974_v24, 5 }
  0x71   : > { %2937 = vmatpush3.bf16.msra.mxu0 %v3152_v41  ;;  %2842 = vmatprep.subr.bf16.mxu1 %v3153_v50  ;;  %v2021_v41 = vshrl.u32 %v2596_v29, 16  ;;  %v2014_v60 = vrot.slane %v2013_v55, 4 }
  0x72   : > { %2938 = vmatprep.subr.bf16.mxu0 %v3154_v61  ;;  %2948 = vmatprep.mubr.bf16.mxu0 %v3166_v4  ;;  %v1977_v63 = vsel %vm3386_vm2, %v1972_v51, %v1976_v46  ;;  %v3180_v46 = vld [vmem:[%s3650_s4 + $0x238] sm:$0xff]  }
  0x73   : > { %2852 = vmatprep.mubr.bf16.mxu1 %v3165_v7  ;;  %v2023_v52 = vrot.slane %v2021_v41, 4  ;;  %v2019_v2 = vsel %vm3386_vm2, %v2014_v60, %v2018_v56  ;;  %v2002_v41 = vshll.u32 %v2593_v32, 16 }
  0x74   : > { %2843 = vmatpush3.bf16.msra.mxu1 %v3153_v50  ;;  %v1958_v50 = vrot.slane %v1957_v35, 4 }
  0x75   : > { %2939 = vmatpush3.bf16.msra.mxu0 %v3154_v61  ;;  %2844 = vmatprep.subr.bf16.mxu1 %v3155_v1  ;;  %v2027_v58 = vor.u32 %v2026_v54, %v2023_v52  ;;  %v3173_v61 = vld [vmem:[%s3361_s27 + $0x30] ss:$8 sps:$4 sm:$0xff]  }
  0x76   : > { %2940 = vmatprep.subr.bf16.mxu0 %v3156_v5  ;;  %v1963_v62 = vsel %vm3386_vm2, %v1958_v50, %v1962_v45  ;;  %v2004_v50 = vrot.slane %v2002_v41, 5 }
  0x77   : > { %v2028_v0 = vrot.slane %v2027_v58, 4  ;;  %v2602_v7 = vcombine.low %v1963_v62, %v1977_v63 }
  0x78   : > { %2845 = vmatpush3.bf16.msra.mxu1 %v3155_v1  ;;  %v3174_v1 = vld [vmem:[%s3297_s28 + $0x38] ss:$8 sps:$4 sm:$0xff]  }
  0x79   : > { %2941 = vmatpush3.bf16.msra.mxu0 %v3156_v5  ;;  %2846 = vmatprep.subr.bf16.mxu1 %v3157_v8  ;;  %v2033_v4 = vsel %vm3386_vm2, %v2028_v0, %v2032_v59  ;;  %v2598_v5 = vld [vmem:[%s3351_s18 + $0x38] sm:$0xf] }
  0x7a   : > { %2942 = vmatprep.subr.bf16.mxu0 %v3158_v9 }
  0x7c   : > { %2847 = vmatpush3.bf16.msra.mxu1 %v3157_v8  ;;  %v2590_v8 = vld [vmem:[%s3351_s18 + $0x18] sm:$0xf] }
  0x7d   : > { %2943 = vmatpush3.bf16.msra.mxu0 %v3158_v9  ;;  %2848 = vmatprep.subr.bf16.mxu1 %v3160_v10  ;;  %v2592_v9 = vld [vmem:[%s3351_s18 + $0x20] sm:$0xf]  ;;  %v1979_v16 = vshrl.u32 %v2590_v8, 16  ;;  %v1982_v17 = vshll.u32 %v2590_v8, 16 }
  0x7e   : > { %2944 = vmatprep.subr.bf16.mxu0 %v3162_v11  ;;  %v1993_v18 = vshrl.u32 %v2592_v9, 16  ;;  %v1996_v19 = vshll.u32 %v2592_v9, 16 }
  0x7f   : > { %v1981_v26 = vrot.slane %v1979_v16, 4  ;;  %v1984_v27 = vrot.slane %v1982_v17, 5 }
  0x80   : > { %2849 = vmatpush3.bf16.msra.mxu1 %v3160_v10  ;;  %v2604_v10 = vcombine.low %v2019_v2, %v2033_v4  ;;  %v1995_v28 = vrot.slane %v1993_v18, 4  ;;  %v1998_v29 = vrot.slane %v1996_v19, 5 }
  0x81   : > { %2945 = vmatpush3.bf16.msra.mxu0 %v3162_v11  ;;  %2850 = vmatprep.subr.bf16.mxu1 %v3163_v12  ;;  %v2035_v11 = vshrl.u32 %v2598_v5, 16  ;;  %v1985_v38 = vor.u32 %v1984_v27, %v1981_v26 }
  0x82   : > { %2946 = vmatprep.subr.bf16.mxu0 %v3164_v13  ;;  %v1999_v40 = vor.u32 %v1998_v29, %v1995_v28 }
  0x83   : > { %v2037_v22 = vrot.slane %v2035_v11, 4  ;;  %v1986_v47 = vrot.slane %v1985_v38, 4 }
  0x84   : > { %2851 = vmatpush3.bf16.msra.mxu1 %v3163_v12  ;;  %v2038_v12 = vshll.u32 %v2598_v5, 16 }
  0x85   : > { %2947 = vmatpush3.bf16.msra.mxu0 %v3164_v13  ;;  %2980 = vmatprep.subr.bf16.mxu1 %v3169_v14  ;;  %v2049_v13 = vshrl.u32 %v2600_v6, 16 }
  0x86   : > { %2956 = vmatprep.subr.bf16.mxu0 %v3169_v14  ;;  %v2040_v23 = vrot.slane %v2038_v12, 5 }
  0x87   : > { %2853 = vmatmul.mubr.bf16.vlgmr.msra.gmra.mrb[0].mxu1 %v3167_v30  ;;  %v2051_v24 = vrot.slane %v2049_v13, 4  ;;  %v2601_v30 = vld [vmem:[%s3351_s18 + $0x44] sm:$0x1] }
  0x88   : > { %2949 = vmatmul.mubr.bf16.vlgmr.msra.gmra.mrb[0].mxu0 %v3168_v34  ;;  %2988 = vmatpush3.bf16.msra.mxu1 %v3169_v14  ;;  %v2041_v33 = vor.u32 %v2040_v23, %v2037_v22  ;;  %v2044_v34 = vshll.u32 %v2599_v21, 16  ;;  %v2058_v36 = vshll.u32 %v2601_v30, 16 }
  0x89   : > { %2957 = vmatpush3.bf16.msra.mxu0 %v3169_v14  ;;  %2981 = vmatprep.subr.bf16.mxu1 %v3170_v39  ;;  %v2052_v14 = vshll.u32 %v2600_v6, 16 }
  0x8a   : > { %2958 = vmatprep.subr.bf16.mxu0 %v3170_v39  ;;  %2856 = vmatprep.mubr.bf16.mxu1 %v3171_v44  ;;  %v2042_v42 = vrot.slane %v2041_v33, 4  ;;  %v2046_v43 = vrot.slane %v2044_v34, 5  ;;  %v2060_v45 = vrot.slane %v2058_v36, 5 }
  0x8b   : > { %2952 = vmatprep.mubr.bf16.mxu0 %v3172_v49  ;;  %v2054_v25 = vrot.slane %v2052_v14, 5  ;;  %v2000_v49 = vrot.slane %v1999_v40, 4 }
  0x8c   : > { %2989 = vmatpush3.bf16.msra.mxu1 %v3170_v39  ;;  %v2047_v51 = vsel %vm3386_vm2, %v2042_v42, %v2046_v43 }
  0x8d   : > { %2959 = vmatpush3.bf16.msra.mxu0 %v3170_v39  ;;  %2982 = vmatprep.subr.bf16.mxu1 %v3175_v57  ;;  %v2055_v35 = vor.u32 %v2054_v25, %v2051_v24  ;;  %v1988_v39 = vshll.u32 %v2591_v31, 16  ;;  %v2005_v55 = vsel %vm3386_vm2, %v2000_v49, %v2004_v50 }
  0x8e   : > { %2960 = vmatprep.subr.bf16.mxu0 %v3175_v57 }
  0x8f   : > { %2857 = vmatmul.mubr.bf16.gmra.mrb[4].mxu1 %v3173_v61  ;;  %v2056_v44 = vrot.slane %v2055_v35, 4  ;;  %v1990_v48 = vrot.slane %v1988_v39, 5 }
  0x90   : > { %2953 = vmatmul.mubr.bf16.gmra.mrb[4].mxu0 %v3174_v1  ;;  %2990 = vmatpush3.bf16.msra.mxu1 %v3175_v57 }
  0x91   : > { %2961 = vmatpush3.bf16.msra.mxu0 %v3175_v57  ;;  %2983 = vmatprep.subr.bf16.mxu1 %v3176_v3  ;;  %v2061_v52 = vsel %vm3386_vm2, %v2056_v44, %v2060_v45  ;;  %v1991_v54 = vsel %vm3386_vm2, %v1986_v47, %v1990_v48 }
  0x92   : > { %2962 = vmatprep.subr.bf16.mxu0 %v3176_v3  ;;  %2972 = vmatprep.mubr.bf16.mxu0 %v2602_v7  ;;  %v2605_v56 = vcombine.low %v2047_v51, %v2061_v52  ;;  %v2603_v57 = vcombine.low %v1991_v54, %v2005_v55 }
  0x93   : > { %2976 = vmatprep.mubr.bf16.mxu1 %v2604_v10 }
  0x94   : > { %2991 = vmatpush3.bf16.msra.mxu1 %v3176_v3 }
  0x95   : > { %2963 = vmatpush3.bf16.msra.mxu0 %v3176_v3  ;;  %2984 = vmatprep.subr.bf16.mxu1 %v3177_v15 }
  0x96   : > { %2964 = vmatprep.subr.bf16.mxu0 %v3177_v15 }
  0x98   : > { %2992 = vmatpush3.bf16.msra.mxu1 %v3177_v15 }
  0x99   : > { %2965 = vmatpush3.bf16.msra.mxu0 %v3177_v15  ;;  %2985 = vmatprep.subr.bf16.mxu1 %v3178_v20 }
  0x9a   : > { %2966 = vmatprep.subr.bf16.mxu0 %v3178_v20 }
  0x9c   : > { %2993 = vmatpush3.bf16.msra.mxu1 %v3178_v20 }
  0x9d   : > { %2967 = vmatpush3.bf16.msra.mxu0 %v3178_v20  ;;  %2986 = vmatprep.subr.bf16.mxu1 %v3179_v37 }
  0x9e   : > { %2968 = vmatprep.subr.bf16.mxu0 %v3179_v37 }
  0xa0   : > { %2994 = vmatpush3.bf16.msra.mxu1 %v3179_v37 }
  0xa1   : > { %2969 = vmatpush3.bf16.msra.mxu0 %v3179_v37  ;;  %2987 = vmatprep.subr.bf16.mxu1 %v3180_v46 }
  0xa2   : > { %2970 = vmatprep.subr.bf16.mxu0 %v3180_v46 }
  0xa4   : > { %2995 = vmatpush3.bf16.msra.mxu1 %v3180_v46 }
  0xa5   : > { %2971 = vmatpush3.bf16.msra.mxu0 %v3180_v46 }
  0xa7   : > { %2977 = vmatmul.mubr.bf16.vlgmr.msra.gmra.mrb[8].mxu1 %v2605_v56 }
  0xa8   : > { %2973 = vmatmul.mubr.bf16.vlgmr.msra.gmra.mrb[0].mxu0 %v2603_v57 }
 0x15a   : > { %v2854_v58 = vpop.f32.mrb[0].mxu1 }
 0x15b   : > { %v1105_v59 = vpop.f32.mrb[1].mxu1 }
 0x15c   : > { %v2855_v60 = vpop.f32.mrb[2].mxu1 }
 0x15d   : > { %v1108_v61 = vpop.f32.mrb[3].mxu1 }
 0x162   : > { %v2858_v62 = vpop.f32.mrb[4].mxu1 }
 0x163   : > { %v2954_v63 = vpop.f32.mrb[4].mxu0  ;;  %v1121_v0 = vpop.f32.mrb[5].mxu1 }
 0x164   : > { %v3000_v1 = vadd.f32 %v2954_v63, %v2858_v62  ;;  %v1911_v2 = vpop.f32.mrb[5].mxu0  ;;  %v2859_v3 = vpop.f32.mrb[6].mxu1 }
 0x165   : > { %v3002_v53 = vadd.f32 %v1911_v2, %v1121_v0  ;;  %v2955_v4 = vpop.f32.mrb[6].mxu0  ;;  %v1124_v5 = vpop.f32.mrb[7].mxu1 }
 0x166   : > { %v3004_v6 = vadd.f32 %v2955_v4, %v2859_v3  ;;  %v1914_v7 = vpop.f32.mrb[7].mxu0 }
 0x167   : > { %v3006_v8 = vadd.f32 %v1914_v7, %v1124_v5 }
 0x17a   : > { %v2978_v9 = vpop.f32.mrb[8].mxu1 }
 0x17b   : > { %v2974_v10 = vpop.f32.mrb[0].mxu0  ;;  %v3001_v11 = vadd.f32 %v3000_v1, %v2978_v9  ;;  %v2192_v12 = vpop.f32.mrb[9].mxu1 }
 0x17c   : > { %v2996_v13 = vadd.f32 %v2974_v10, %v2854_v58  ;;  %v2176_v14 = vpop.f32.mrb[1].mxu0  ;;  %v3003_v15 = vadd.f32 %v3002_v53, %v2192_v12  ;;  %v2979_v16 = vpop.f32.mrb[10].mxu1 }
 0x17d   : > { %v2997_v17 = vadd.f32 %v2176_v14, %v1105_v59  ;;  %v2975_v18 = vpop.f32.mrb[2].mxu0  ;;  %v3005_v19 = vadd.f32 %v3004_v6, %v2979_v16  ;;  %v2195_v20 = vpop.f32.mrb[11].mxu1  ;;  %v2275_v44 = vmul.f32 %v3001_v11, %v3001_v11 }
 0x17e   : > { %v2998_v21 = vadd.f32 %v2975_v18, %v2855_v60  ;;  %v2179_v22 = vpop.f32.mrb[3].mxu0  ;;  %v3007_v23 = vadd.f32 %v3006_v8, %v2195_v20  ;;  %v2271_v32 = vmul.f32 %v2996_v13, %v2996_v13  ;;  %v2273_v38 = vmul.f32 %v3003_v15, %v3003_v15 }
 0x17f   : > { %v2651_v24 = vpack.c.bf16 %v3005_v19, %v3001_v11  ;;  %v2999_v25 = vadd.f32 %v2179_v22, %v1108_v61  ;;  %v2269_v28 = vmul.f32 %v2997_v17, %v2997_v17  ;;  %v2276_v47 = vmul.f32 %v3005_v19, %v3005_v19 }
 0x180   : > { %v2641_v26 = vpack.c.bf16 %v2998_v21, %v2996_v13  ;;  %v2646_v27 = vpack.c.bf16 %v3007_v23, %v3003_v15  ;;  %v2272_v35 = vmul.f32 %v2998_v21, %v2998_v21  ;;  %v2274_v42 = vmul.f32 %v3007_v23, %v3007_v23 }
 0x181   : > { %2655 = vst [vmem:[%s360_s19 + $0x18] sm:$0xff] %v2651_v24   ;;  %v2636_v29 = vpack.c.bf16 %v2999_v25, %v2997_v17  ;;  %v2255_v30 = vadd.f32 %v2999_v25, %v2997_v17  ;;  %v2270_v31 = vmul.f32 %v2999_v25, %v2999_v25 }
 0x182   : > { %2653 = vst [vmem:[%s360_s19 + $0x8] sm:$0xff] %v2641_v26   ;;  %2654 = vst [vmem:[%s360_s19 + $0x10] sm:$0xff] %v2646_v27  }
 0x183   : > { %2637 = vst [vmem:[%s360_s19] sm:$0xff] %v2636_v29   ;;  %v2256_v33 = vadd.f32 %v2996_v13, %v2255_v30  ;;  %v2277_v34 = vadd.f32 %v2270_v31, %v2269_v28 }
 0x185   : > { %v2278_v36 = vadd.f32 %v2277_v34, %v2271_v32  ;;  %v2257_v37 = vadd.f32 %v2998_v21, %v2256_v33 }
 0x187   : > { %v2258_v39 = vadd.f32 %v3003_v15, %v2257_v37  ;;  %v2279_v40 = vadd.f32 %v2278_v36, %v2272_v35 }
 0x189   : > { %v2259_v41 = vadd.f32 %v3007_v23, %v2258_v39  ;;  %v2280_v43 = vadd.f32 %v2279_v40, %v2273_v38 }
 0x18b   : > { %v2260_v45 = vadd.f32 %v3001_v11, %v2259_v41  ;;  %v2281_v46 = vadd.f32 %v2280_v43, %v2274_v42 }
 0x18d   : > { %v2261_v48 = vadd.f32 %v3005_v19, %v2260_v45  ;;  %v2282_v49 = vadd.f32 %v2281_v46, %v2275_v44 }
 0x18f   : > { %v2262_v50 = vrot.slane %v2261_v48, 4  ;;  %v2283_v51 = vadd.f32 %v2282_v49, %v2276_v47 }
 0x191   : > { %v2263_v52 = vadd.f32 %v2262_v50, %v2261_v48  ;;  %v2284_v54 = vrot.slane %v2283_v51, 4 }
 0x193   : > { %v2264_v55 = vrot.slane %v2263_v52, 2  ;;  %v2285_v56 = vadd.f32 %v2284_v54, %v2283_v51 }
 0x195   : > { %v2265_v57 = vadd.f32 %v2264_v55, %v2263_v52  ;;  %v2286_v58 = vrot.slane %v2285_v56, 2 }
 0x197   : > { %v2266_v59 = vrot.slane %v2265_v57, 1  ;;  %v2287_v60 = vadd.f32 %v2286_v58, %v2285_v56 }
 0x199   : > { %v2267_v61 = vadd.f32 %v2266_v59, %v2265_v57  ;;  %v2288_v62 = vrot.slane %v2287_v60, 1 }
 0x19b   : > { %2268 = vst [vmem:[%s367_s29] sm:$0x1] %v2267_v61  ;;  %v2289_v63 = vadd.f32 %v2288_v62, %v2287_v60 }
 0x19d   : > { %2290 = vst [vmem:[%s367_s29 + $0x1] sm:$0x1] %v2289_v63 }
 0x19e PF: > { %s17_s23 = sadd.s32 1, %s3203_s23   ;;  %s3655_s21 = smov %s3199_s22 }
 0x19f   : > { %p14_p5 = scmp.ge.s32.totalorder %s17_s23, 4   ;;  %s3656_s22 = smov %s3658_s24 }
 0x1a1   :  { %16 = sbr.rel (!%p14_p5) target bundleno = 2 (0x2), region = 96 }

// kernel: resblock_forward.9
= control target key start
LH: loop header
LB: loop body
LE: loop exit
PB: predicated region body
PF: predicated region fallthrough
CT: control target
= control target key end

     0   :  { %s781_s21 = smov 0   ;;  %s783_s22 = smov 0   ;;  %s885_s0 = inlined_call_operand.vmem [shape: bf16[2,64,128], index: 0, kind: input, shape index: {}]   ;;  %s886_s1 = inlined_call_operand.vmem [shape: bf16[2,64,128], index: 1, kind: input, shape index: {}]   ;;  %s887_s2 = inlined_call_operand.vmem [shape: f32[1,1,128], index: 2, kind: input, shape index: {}]   ;;  %s888_s3 = inlined_call_operand.vmem [shape: f32[1,1,128], index: 3, kind: input, shape index: {}]   ;;  %s889_s4 = inlined_call_operand.vmem [shape: f32[1,1,128], index: 4, kind: input, shape index: {}]   ;;  %s890_s5 = inlined_call_operand.vmem [shape: f32[1,1,128], index: 5, kind: input, shape index: {}]   ;;  %s891_s6 = inlined_call_operand.vmem [shape: f32[2,64,128], index: 6, kind: output, shape index: {}]  }
   0x1   :  { %s785_s23 = smov 0  }
   0x2 LB: > { %s28_s24 = sadd.s32 1, %s740_s22  ;;  %p644_p0 = scmp.ge.s32.totalorder %s744_s23, 1  ;;  %s744_s23 = sphi %s785_s23, %s16_s23   ;;  %s740_s22 = sphi %s783_s22, %s893_s22   ;;  %s736_s21 = sphi %s781_s21, %s892_s21  }
   0x3   : > { %p30_p1 = scmp.ge.s32.totalorder %s28_s24, 2  ;;  %p278_p2 = scmp.lt.s32.totalorder %s744_s23, 3 }
   0x5   : > { %s895_s24 = smov (%p30_p1, %s28_s24), 0  ;;  %p279_p3 = pnand %p644_p0, %p278_p2 }
   0x6   : > { %p334_p4 = scmp.lt.s32.totalorder (!%p279_p3), %s736_s21, 1  ;;  %v815_v0 = vld [vmem:[%s887_s2] ss:$0 sm:$0xff] (!%p279_p3) }
   0x7   : > { %282 = sbr.rel (%p279_p3) target bundleno = 43 (0x2b), region = 44  ;;  %v820_v1 = vld [vmem:[%s889_s4] ss:$0 sm:$0xff] (!%p279_p3) }
   0x8   : > { %v829_v10 = vld [vmem:[%s888_s3] ss:$0 sm:$0xff] (!%p279_p3) }
   0x9   : > { %v654_v29 = vld [vmem:[%s890_s5] ss:$0 sm:$0xff] (!%p279_p3) }
   0xe   : > { %s897_s21 = smov (!%p334_p4, %s736_s21), 1 }
   0xf   : > { %s657_s25 = sshll.u32 %s897_s21, 5  ;;  %s659_s16 = sshll.u32 %s897_s21, 6 }
  0x10   : > { %s805_s28 = scalar_lea.vmem %s885_s0, %s657_s25  ;;  %s810_s7 = scalar_lea.vmem %s886_s1, %s657_s25 }
  0x11   : > { %v661_v2 = vld [vmem:[%s805_s28] sm:$0xff]   ;;  %v692_v4 = vld [vmem:[%s805_s28 + $0x8] sm:$0xff]   ;;  %v693_v15 = vld [vmem:[%s805_s28 + $0x10] sm:$0xff]   ;;  %s859_s19 = scalar_lea.vmem %s891_s6, %s659_s16 }
  0x12   : > { %v677_v3 = vld [vmem:[%s810_s7] sm:$0xff]   ;;  %v662_v5 = vunpack.c.l.bf16 %v661_v2  ;;  %v663_v7 = vunpack.c.h.bf16 %v661_v2  ;;  %v695_v9 = vld [vmem:[%s810_s7 + $0x8] sm:$0xff]   ;;  %v666_v11 = vunpack.c.l.bf16 %v692_v4  ;;  %v667_v13 = vunpack.c.h.bf16 %v692_v4  ;;  %v696_v16 = vld [vmem:[%s810_s7 + $0x10] sm:$0xff]  }
  0x13   : > { %v678_v6 = vunpack.c.l.bf16 %v677_v3  ;;  %v679_v8 = vunpack.c.h.bf16 %v677_v3  ;;  %v682_v12 = vunpack.c.l.bf16 %v695_v9  ;;  %v683_v14 = vunpack.c.h.bf16 %v695_v9  ;;  %v694_v34 = vld [vmem:[%s805_s28 + $0x18] sm:$0xff]  }
  0x14   : > { %v409_v17 = vmul.f32 %v662_v5, %v815_v0  ;;  %v410_v19 = vmul.f32 %v663_v7, %v815_v0  ;;  %v411_v21 = vmul.f32 %v666_v11, %v815_v0  ;;  %v412_v23 = vmul.f32 %v667_v13, %v815_v0  ;;  %v697_v39 = vld [vmem:[%s810_s7 + $0x18] sm:$0xff]  }
  0x15   : > { %v439_v18 = vmul.f32 %v678_v6, %v820_v1  ;;  %v440_v20 = vmul.f32 %v679_v8, %v820_v1  ;;  %v441_v22 = vmul.f32 %v682_v12, %v820_v1  ;;  %v442_v24 = vmul.f32 %v683_v14, %v820_v1 }
  0x16   : > { %v424_v25 = vadd.f32 %v829_v10, %v409_v17  ;;  %v425_v26 = vadd.f32 %v829_v10, %v410_v19  ;;  %v670_v27 = vunpack.c.l.bf16 %v693_v15  ;;  %v686_v28 = vunpack.c.l.bf16 %v696_v16 }
  0x17   : > { %v426_v30 = vadd.f32 %v829_v10, %v411_v21  ;;  %v427_v31 = vadd.f32 %v829_v10, %v412_v23  ;;  %v671_v32 = vunpack.c.h.bf16 %v693_v15  ;;  %v687_v33 = vunpack.c.h.bf16 %v696_v16 }
  0x18   : > { %v447_v35 = vadd.f32 %v439_v18, %v424_v25  ;;  %v448_v36 = vadd.f32 %v440_v20, %v425_v26  ;;  %v413_v37 = vmul.f32 %v670_v27, %v815_v0  ;;  %v443_v38 = vmul.f32 %v686_v28, %v820_v1 }
  0x19   : > { %v449_v40 = vadd.f32 %v441_v22, %v426_v30  ;;  %v450_v41 = vadd.f32 %v442_v24, %v427_v31  ;;  %v414_v42 = vmul.f32 %v671_v32, %v815_v0  ;;  %v444_v43 = vmul.f32 %v687_v33, %v820_v1 }
  0x1a   : > { %v462_v44 = vadd.f32 %v654_v29, %v447_v35  ;;  %v463_v45 = vadd.f32 %v654_v29, %v448_v36  ;;  %v428_v46 = vadd.f32 %v829_v10, %v413_v37  ;;  %v674_v47 = vunpack.c.l.bf16 %v694_v34 }
  0x1b   : > { %v464_v48 = vadd.f32 %v654_v29, %v449_v40  ;;  %v465_v49 = vadd.f32 %v654_v29, %v450_v41  ;;  %v429_v50 = vadd.f32 %v829_v10, %v414_v42  ;;  %v690_v51 = vunpack.c.l.bf16 %v697_v39 }
  0x1c   : > { %v470_v52 = vmax.f32 %v462_v44, 0.0  ;;  %v471_v53 = vmax.f32 %v463_v45, 0.0  ;;  %v451_v54 = vadd.f32 %v443_v38, %v428_v46  ;;  %v415_v55 = vmul.f32 %v674_v47, %v815_v0 }
  0x1d   : > { %v472_v56 = vmax.f32 %v464_v48, 0.0  ;;  %v473_v57 = vmax.f32 %v465_v49, 0.0  ;;  %v452_v58 = vadd.f32 %v444_v43, %v429_v50  ;;  %v445_v59 = vmul.f32 %v690_v51, %v820_v1 }
  0x1e   : > { %478 = vst [vmem:[%s859_s19] sm:$0xff] %v470_v52  ;;  %479 = vst [vmem:[%s859_s19 + $0x8] sm:$0xff] %v471_v53  ;;  %v466_v60 = vadd.f32 %v654_v29, %v451_v54  ;;  %v430_v61 = vadd.f32 %v829_v10, %v415_v55  ;;  %v675_v62 = vunpack.c.h.bf16 %v694_v34  ;;  %v691_v63 = vunpack.c.h.bf16 %v697_v39 }
  0x1f   : > { %480 = vst [vmem:[%s859_s19 + $0x10] sm:$0xff] %v472_v56  ;;  %481 = vst [vmem:[%s859_s19 + $0x18] sm:$0xff] %v473_v57  ;;  %v467_v2 = vadd.f32 %v654_v29, %v452_v58 }
  0x20   : > { %v474_v3 = vmax.f32 %v466_v60, 0.0  ;;  %v453_v4 = vadd.f32 %v445_v59, %v430_v61  ;;  %v416_v5 = vmul.f32 %v675_v62, %v815_v0  ;;  %v446_v6 = vmul.f32 %v691_v63, %v820_v1 }
  0x21   : > { %v475_v7 = vmax.f32 %v467_v2, 0.0 }
  0x22   : > { %482 = vst [vmem:[%s859_s19 + $0x20] sm:$0xff] %v474_v3  ;;  %v468_v8 = vadd.f32 %v654_v29, %v453_v4  ;;  %v431_v9 = vadd.f32 %v829_v10, %v416_v5 }
  0x23   : > { %483 = vst [vmem:[%s859_s19 + $0x28] sm:$0xff] %v475_v7 }
  0x24   : > { %v476_v11 = vmax.f32 %v468_v8, 0.0  ;;  %v454_v12 = vadd.f32 %v446_v6, %v431_v9 }
  0x26   : > { %484 = vst [vmem:[%s859_s19 + $0x30] sm:$0xff] %v476_v11  ;;  %v469_v13 = vadd.f32 %v654_v29, %v454_v12 }
  0x28   : > { %v477_v14 = vmax.f32 %v469_v13, 0.0 }
  0x2a   : > { %485 = vst [vmem:[%s859_s19 + $0x38] sm:$0xff] %v477_v14 }
  0x2b PF: > { %s16_s23 = sadd.s32 1, %s744_s23   ;;  %s892_s21 = smov %s740_s22 }
  0x2c   : > { %p13_p5 = scmp.ge.s32.totalorder %s16_s23, 4   ;;  %s893_s22 = smov %s895_s24 }
  0x2e   :  { %15 = sbr.rel (!%p13_p5) target bundleno = 2 (0x2), region = 89 }

// kernel: resblock_forward.7
= control target key start
LH: loop header
LB: loop body
LE: loop exit
PB: predicated region body
PF: predicated region fallthrough
CT: control target
= control target key end

     0   :  { %s3204_s12 = smov 0   ;;  %s3206_s13 = smov 0   ;;  %s3793_s0 = inlined_call_operand.vmem [shape: bf16[2,10,10,128], index: 0, kind: input, shape index: {}]   ;;  %s3794_s1 = inlined_call_operand.vmem [shape: bf16[1152,128], index: 1, kind: input, shape index: {}]   ;;  %s3795_s2 = inlined_call_operand.vmem [shape: bf16[2,64,128], index: 2, kind: output, shape index: {0}]   ;;  %s3796_s3 = inlined_call_operand.vmem [shape: f32[2,2,128], index: 3, kind: output, shape index: {1}]  }
   0x1   :  { %s3208_s14 = smov 0  }
   0x2 LB: > { %s26_s15 = sadd.s32 1, %s3178_s13  ;;  %p2404_p0 = scmp.ge.s32.totalorder %s3182_s14, 1  ;;  %s3182_s14 = sphi %s3208_s14, %s14_s14   ;;  %s3178_s13 = sphi %s3206_s13, %s3802_s13   ;;  %s3174_s12 = sphi %s3204_s12, %s3801_s12  }
   0x3   : > { %p28_p1 = scmp.ge.s32.totalorder %s26_s15, 2  ;;  %p165_p2 = scmp.lt.s32.totalorder %s3182_s14, 3 }
   0x5   : > { %s3804_s15 = smov (%p28_p1, %s26_s15), 0  ;;  %p166_p3 = pnand %p2404_p0, %p165_p2 }
   0x6   : > { %v3076_v0 = vld [vmem:[%s3794_s1 + $0x40] sm:$0xff] (!%p166_p3)   ;;  %p203_p4 = scmp.lt.s32.totalorder (!%p166_p3), %s3174_s12, 1  ;;  %v3078_v2 = vld [vmem:[%s3794_s1 + $0x48] sm:$0xff] (!%p166_p3)   ;;  %v3080_v4 = vld [vmem:[%s3794_s1 + $0x50] sm:$0xff] (!%p166_p3)   ;;  %vm260_vm0 = vsmask.f32 (!%p166_p3), 3328 }
   0x7   : > { %169 = sbr.rel (%p166_p3) target bundleno = 419 (0x1a3), region = 28  ;;  %v3077_v1 = vld [vmem:[%s3794_s1 + $0x100] sm:$0xff] (!%p166_p3)   ;;  %2755 = vmatprep.subr.bf16.mxu1 (!%p166_p3), %v3076_v0  ;;  %v3079_v3 = vld [vmem:[%s3794_s1 + $0x108] sm:$0xff] (!%p166_p3)   ;;  %v3081_v5 = vld [vmem:[%s3794_s1 + $0x110] sm:$0xff] (!%p166_p3)   ;;  %vm261_vm1 = vsmask.f32 (!%p166_p3), 7440 }
   0x8   : > { %2851 = vmatprep.subr.bf16.mxu0 (!%p166_p3), %v3077_v1  ;;  %2756 = vmatpush3.bf16.msra.mxu1 (!%p166_p3), %v3076_v0  ;;  %v3082_v6 = vld [vmem:[%s3794_s1 + $0x58] sm:$0xff] (!%p166_p3)   ;;  %v3084_v8 = vld [vmem:[%s3794_s1 + $0x60] sm:$0xff] (!%p166_p3)   ;;  %v3086_v10 = vld [vmem:[%s3794_s1 + $0x68] sm:$0xff] (!%p166_p3)   ;;  %vm681_vm3 = vcmask (!%p166_p3), 1042432   ;;  %vm682_vm4 = vcmask (!%p166_p3), 1046532  }
   0x9   : > { %2852 = vmatpush3.bf16.msra.mxu0 (!%p166_p3), %v3077_v1  ;;  %2757 = vmatprep.subr.bf16.mxu1 (!%p166_p3), %v3078_v2  ;;  %v3083_v7 = vld [vmem:[%s3794_s1 + $0x118] sm:$0xff] (!%p166_p3)   ;;  %v3085_v9 = vld [vmem:[%s3794_s1 + $0x120] sm:$0xff] (!%p166_p3)   ;;  %v3087_v14 = vld [vmem:[%s3794_s1 + $0x128] sm:$0xff] (!%p166_p3)  }
   0xa   : > { %2853 = vmatprep.subr.bf16.mxu0 (!%p166_p3), %v3079_v3  ;;  %v3088_v22 = vld [vmem:[%s3794_s1 + $0x70] sm:$0xff] (!%p166_p3)   ;;  %v3090_v37 = vld [vmem:[%s3794_s1 + $0x78] sm:$0xff] (!%p166_p3)   ;;  %vm3303_vm2 = vmor (!%p166_p3), %vm260_vm0, %vm261_vm1 }
   0xb   : > { %v3089_v23 = vld [vmem:[%s3794_s1 + $0x130] sm:$0xff] (!%p166_p3)   ;;  %v3091_v47 = vld [vmem:[%s3794_s1 + $0x138] sm:$0xff] (!%p166_p3)   ;;  %v3092_v63 = vld [vmem:[%s3794_s1] sm:$0xff] (!%p166_p3)  }
   0xc   : > { %2758 = vmatpush3.bf16.msra.mxu1 (!%p166_p3), %v3078_v2  ;;  %v3335_v1 = vld [vmem:[%s3794_s1 + $0x140] sm:$0xff] (!%p166_p3)   ;;  %vm3477_vm5 = vmor (!%p166_p3), %vm681_vm3, %vm682_vm4 }
   0xd   : > { %2854 = vmatpush3.bf16.msra.mxu0 (!%p166_p3), %v3079_v3  ;;  %2759 = vmatprep.subr.bf16.mxu1 (!%p166_p3), %v3080_v4  ;;  %v3156_v38 = vld [vmem:[%s3794_s1 + $0x220] sm:$0xff] (!%p166_p3)  }
   0xe   : > { %s3806_s12 = smov (!%p203_p4, %s3174_s12), 1  ;;  %2855 = vmatprep.subr.bf16.mxu0 %v3081_v5 }
   0xf   : > { %s3051_s5 = smul.u32 80, %s3806_s12  ;;  %s2408_s7 = sshll.u32 %s3806_s12, 1 }
  0x10   : > { %2760 = vmatpush3.bf16.msra.mxu1 %v3080_v4  ;;  %s226_s10 = scalar_lea.vmem %s3796_s3, %s2408_s7 }
  0x11   : > { %2856 = vmatpush3.bf16.msra.mxu0 %v3081_v5  ;;  %2761 = vmatprep.subr.bf16.mxu1 %v3082_v6  ;;  %s3258_s16 = scalar_lea.vmem %s3793_s0, %s3051_s5 }
  0x12   : > { %2857 = vmatprep.subr.bf16.mxu0 %v3083_v7  ;;  %v3264_v11 = vld [vmem:[%s3258_s16] sm:$0xf]  ;;  %v3267_v12 = vld [vmem:[%s3258_s16 + $0x8] sm:$0xf]  ;;  %v3270_v13 = vld [vmem:[%s3258_s16 + $0x4] sm:$0x1] }
  0x13   : > { %v3276_v15 = vld [vmem:[%s3258_s16 + $0xc] sm:$0x1]  ;;  %v264_v16 = vshrl.u32 %v3264_v11, 16  ;;  %v267_v17 = vshll.u32 %v3264_v11, 16  ;;  %v273_v18 = vshll.u32 %v3270_v13, 16  ;;  %v278_v19 = vshrl.u32 %v3267_v12, 16 }
  0x14   : > { %2762 = vmatpush3.bf16.msra.mxu1 %v3082_v6  ;;  %v281_v20 = vshll.u32 %v3267_v12, 16  ;;  %v287_v21 = vshll.u32 %v3276_v15, 16  ;;  %v2473_v30 = vld [vmem:[%s3258_s16 + $0x8] sm:$0xf]  ;;  %v3292_v31 = vld [vmem:[%s3258_s16 + $0xc] sm:$0x1] }
  0x15   : > { %2858 = vmatpush3.bf16.msra.mxu0 %v3083_v7  ;;  %2763 = vmatprep.subr.bf16.mxu1 %v3084_v8  ;;  %v266_v24 = vrot.slane %v264_v16, 4  ;;  %v269_v25 = vrot.slane %v267_v17, 5  ;;  %v275_v26 = vrot.slane %v273_v18, 5  ;;  %v280_v27 = vrot.slane %v278_v19, 4  ;;  %v2475_v33 = vld [vmem:[%s3258_s16 + $0x10] sm:$0xf] }
  0x16   : > { %2859 = vmatprep.subr.bf16.mxu0 %v3085_v9  ;;  %v283_v28 = vrot.slane %v281_v20, 5  ;;  %v289_v29 = vrot.slane %v287_v21, 5  ;;  %v3296_v34 = vld [vmem:[%s3258_s16 + $0x14] sm:$0x1]  ;;  %v1056_v35 = vshrl.u32 %v2473_v30, 16  ;;  %v1059_v36 = vshll.u32 %v2473_v30, 16 }
  0x17   : > { %v270_v32 = vor.u32 %v269_v25, %v266_v24  ;;  %v1065_v40 = vshll.u32 %v3292_v31, 16  ;;  %v1070_v41 = vshrl.u32 %v2475_v33, 16  ;;  %v1073_v42 = vshll.u32 %v2475_v33, 16  ;;  %v3313_v51 = vld [vmem:[%s3258_s16 + $0x10] sm:$0xf] }
  0x18   : > { %2764 = vmatpush3.bf16.msra.mxu1 %v3084_v8  ;;  %v284_v39 = vor.u32 %v283_v28, %v280_v27  ;;  %v1058_v44 = vrot.slane %v1056_v35, 4  ;;  %v1061_v45 = vrot.slane %v1059_v36, 5  ;;  %v1079_v46 = vshll.u32 %v3296_v34, 16  ;;  %v3318_v55 = vld [vmem:[%s3258_s16 + $0x18] sm:$0xf] }
  0x19   : > { %2860 = vmatpush3.bf16.msra.mxu0 %v3085_v9  ;;  %2765 = vmatprep.subr.bf16.mxu1 %v3086_v10  ;;  %v271_v43 = vrot.slane %v270_v32, 4  ;;  %v1072_v49 = vrot.slane %v1070_v41, 4  ;;  %v1075_v50 = vrot.slane %v1073_v42, 5  ;;  %v1067_v54 = vrot.slane %v1065_v40, 5  ;;  %v3321_v56 = vld [vmem:[%s3258_s16 + $0x14] sm:$0x1] }
  0x1a   : > { %2861 = vmatprep.subr.bf16.mxu0 %v3087_v14  ;;  %v285_v48 = vrot.slane %v284_v39, 4  ;;  %v1062_v53 = vor.u32 %v1061_v45, %v1058_v44  ;;  %v1081_v59 = vrot.slane %v1079_v46, 5  ;;  %v3326_v60 = vld [vmem:[%s3258_s16 + $0x1c] sm:$0x1]  ;;  %v292_v61 = vshrl.u32 %v3313_v51, 16 }
  0x1b   : > { %v276_v52 = vsel %vm3303_vm2, %v271_v43, %v275_v26  ;;  %v1076_v58 = vor.u32 %v1075_v50, %v1072_v49  ;;  %v295_v2 = vshll.u32 %v3313_v51, 16  ;;  %v301_v3 = vshll.u32 %v3321_v56, 16  ;;  %v2477_v8 = vld [vmem:[%s3258_s16 + $0x18] sm:$0xf]  ;;  %v3346_v16 = vld [vmem:[%s3258_s16 + $0x1c] sm:$0x1] }
  0x1c   : > { %2766 = vmatpush3.bf16.msra.mxu1 %v3086_v10  ;;  %v290_v57 = vsel %vm3303_vm2, %v285_v48, %v289_v29  ;;  %v1063_v0 = vrot.slane %v1062_v53, 4  ;;  %v294_v5 = vrot.slane %v292_v61, 4  ;;  %v306_v6 = vshrl.u32 %v3318_v55, 16  ;;  %v2479_v17 = vld [vmem:[%s3258_s16 + $0x20] sm:$0xf]  ;;  %v3094_v43 = vld [vmem:[%s3794_s1 + $0x8] sm:$0xff]  }
  0x1d   : > { %2862 = vmatpush3.bf16.msra.mxu0 %v3087_v14  ;;  %2767 = vmatprep.subr.bf16.mxu1 %v3088_v22  ;;  %v2409_v62 = vcombine.low %v276_v52, %v290_v57  ;;  %v1077_v4 = vrot.slane %v1076_v58, 4  ;;  %v309_v7 = vshll.u32 %v3318_v55, 16  ;;  %v297_v10 = vrot.slane %v295_v2, 5  ;;  %v3352_v21 = vld [vmem:[%s3258_s16 + $0x24] sm:$0x1] }
  0x1e   : > { %2863 = vmatprep.subr.bf16.mxu0 %v3089_v23  ;;  %v1068_v9 = vsel %vm3303_vm2, %v1063_v0, %v1067_v54  ;;  %v315_v14 = vshll.u32 %v3326_v60, 16  ;;  %v308_v19 = vrot.slane %v306_v6, 4  ;;  %v303_v24 = vrot.slane %v301_v3, 5  ;;  %v3095_v54 = vld [vmem:[%s3794_s1 + $0x148] sm:$0xff]   ;;  %v3382_v0 = vld [vmem:[%s3258_s16 + $0x24] sm:$0x1] }
  0x1f   : > { %2771 = vmatprep.mubr.bf16.mxu1 %v2409_v62  ;;  %v1082_v18 = vsel %vm3303_vm2, %v1077_v4, %v1081_v59  ;;  %v311_v20 = vrot.slane %v309_v7, 5  ;;  %v1084_v27 = vshrl.u32 %v2477_v8, 16  ;;  %v1087_v28 = vshll.u32 %v2477_v8, 16  ;;  %v3096_v59 = vld [vmem:[%s3794_s1 + $0x10] sm:$0xff]   ;;  %v3376_v62 = vld [vmem:[%s3258_s16 + $0x20] sm:$0xf] }
  0x20   : > { %2768 = vmatpush3.bf16.msra.mxu1 %v3088_v22  ;;  %v2489_v22 = vcombine.low %v1068_v9, %v1082_v18  ;;  %v317_v25 = vrot.slane %v315_v14, 5  ;;  %v1093_v29 = vshll.u32 %v3346_v16, 16  ;;  %v1098_v32 = vshrl.u32 %v2479_v17, 16  ;;  %v3385_v2 = vld [vmem:[%s3258_s16 + $0x2c] sm:$0x1]  ;;  %v3097_v9 = vld [vmem:[%s3794_s1 + $0x150] sm:$0xff]  }
  0x21   : > { %2864 = vmatpush3.bf16.msra.mxu0 %v3089_v23  ;;  %2769 = vmatprep.subr.bf16.mxu1 %v3090_v37  ;;  %v298_v23 = vor.u32 %v297_v10, %v294_v5  ;;  %v312_v26 = vor.u32 %v311_v20, %v308_v19  ;;  %v1101_v33 = vshll.u32 %v2479_v17, 16  ;;  %v1107_v35 = vshll.u32 %v3352_v21, 16  ;;  %v3098_v10 = vld [vmem:[%s3794_s1 + $0x18] sm:$0xff]  }
  0x22   : > { %2865 = vmatprep.subr.bf16.mxu0 %v3091_v47  ;;  %2867 = vmatprep.mubr.bf16.mxu0 %v2489_v22  ;;  %v1089_v39 = vrot.slane %v1087_v28, 5  ;;  %v1100_v41 = vrot.slane %v1098_v32, 4  ;;  %v1095_v46 = vrot.slane %v1093_v29, 5  ;;  %v1346_v57 = vrot.slane %v3292_v31, 5  ;;  %v3099_v29 = vld [vmem:[%s3794_s1 + $0x158] sm:$0xff]  }
  0x23   : > { %v299_v30 = vrot.slane %v298_v23, 4  ;;  %v313_v36 = vrot.slane %v312_v26, 4  ;;  %v1103_v42 = vrot.slane %v1101_v33, 5  ;;  %v320_v3 = vshrl.u32 %v3376_v62, 16  ;;  %v2481_v23 = vld [vmem:[%s3258_s16 + $0x28] sm:$0xf] }
  0x24   : > { %2770 = vmatpush3.bf16.msra.mxu1 %v3090_v37  ;;  %v1086_v37 = vrot.slane %v1084_v27, 4  ;;  %v323_v4 = vshll.u32 %v3376_v62, 16  ;;  %v329_v5 = vshll.u32 %v3382_v0, 16  ;;  %v343_v8 = vshll.u32 %v3385_v2, 16  ;;  %v3406_v26 = vld [vmem:[%s3258_s16 + $0x34] sm:$0x1] }
  0x25   : > { %2866 = vmatpush3.bf16.msra.mxu0 %v3091_v47  ;;  %2779 = vmatprep.subr.bf16.mxu1 %v3092_v63  ;;  %v304_v40 = vsel %vm3303_vm2, %v299_v30, %v303_v24  ;;  %v318_v44 = vsel %vm3303_vm2, %v313_v36, %v317_v25  ;;  %v1109_v47 = vrot.slane %v1107_v35, 5  ;;  %v1104_v49 = vor.u32 %v1103_v42, %v1100_v41  ;;  %v3402_v24 = vld [vmem:[%s3258_s16 + $0x2c] sm:$0x1]  ;;  %v2483_v25 = vld [vmem:[%s3258_s16 + $0x30] sm:$0xf]  ;;  %v3100_v30 = vld [vmem:[%s3794_s1 + $0x20] sm:$0xff]  }
  0x26   : > { %2875 = vmatprep.subr.bf16.mxu0 %v3335_v1  ;;  %v1090_v45 = vor.u32 %v1089_v39, %v1086_v37  ;;  %v2410_v48 = vcombine.low %v304_v40, %v318_v44  ;;  %v322_v14 = vrot.slane %v320_v3, 4  ;;  %v325_v17 = vrot.slane %v323_v4, 5 }
  0x27   : > { %v1105_v52 = vrot.slane %v1104_v49, 4  ;;  %v331_v18 = vrot.slane %v329_v5, 5  ;;  %v345_v22 = vrot.slane %v343_v8, 5  ;;  %v1112_v27 = vshrl.u32 %v2481_v23, 16  ;;  %v2485_v5 = vld [vmem:[%s3258_s16 + $0x38] sm:$0xf] }
  0x28   : > { %v1091_v50 = vrot.slane %v1090_v45, 4  ;;  %2772 = vmatmul.mubr.bf16.vlgmr.msra.gmra.mrb[0].mxu1 %v2410_v48  ;;  %v1115_v28 = vshll.u32 %v2481_v23, 16  ;;  %v1121_v33 = vshll.u32 %v3402_v24, 16  ;;  %v1126_v35 = vshrl.u32 %v2483_v25, 16 }
  0x29   : > { %2780 = vmatpush3.bf16.msra.mxu1 %v3092_v63  ;;  %v1110_v58 = vsel %vm3303_vm2, %v1105_v52, %v1109_v47  ;;  %v3379_v63 = vld [vmem:[%s3258_s16 + $0x28] sm:$0xf]  ;;  %v1129_v36 = vshll.u32 %v2483_v25, 16  ;;  %v1114_v39 = vrot.slane %v1112_v27, 4  ;;  %v1135_v41 = vshll.u32 %v3406_v26, 16 }
  0x2a   : > { %v1096_v53 = vsel %vm3303_vm2, %v1091_v50, %v1095_v46  ;;  %2781 = vmatprep.subr.bf16.mxu1 %v3094_v43  ;;  %v334_v6 = vshrl.u32 %v3379_v63, 16  ;;  %v337_v7 = vshll.u32 %v3379_v63, 16  ;;  %v1117_v40 = vrot.slane %v1115_v28, 5  ;;  %v3417_v46 = vld [vmem:[%s3258_s16 + $0x30] sm:$0xf] }
  0x2b   : > { %v2490_v61 = vcombine.low %v1096_v53, %v1110_v58  ;;  %v1128_v44 = vrot.slane %v1126_v35, 4  ;;  %v1131_v45 = vrot.slane %v1129_v36, 5  ;;  %v1137_v49 = vrot.slane %v1135_v41, 5  ;;  %v3422_v50 = vld [vmem:[%s3258_s16 + $0x38] sm:$0xf] }
  0x2c   : > { %v336_v19 = vrot.slane %v334_v6, 4  ;;  %v339_v20 = vrot.slane %v337_v7, 5  ;;  %v1118_v48 = vor.u32 %v1117_v40, %v1114_v39  ;;  %v3425_v52 = vld [vmem:[%s3258_s16 + $0x34] sm:$0x1]  ;;  %v348_v53 = vshrl.u32 %v3417_v46, 16  ;;  %v3102_v6 = vld [vmem:[%s3794_s1 + $0x28] sm:$0xff]  }
  0x2d   : > { %2868 = vmatmul.mubr.bf16.vlgmr.msra.gmra.mrb[0].mxu0 %v2490_v61  ;;  %2782 = vmatpush3.bf16.msra.mxu1 %v3094_v43  ;;  %v1123_v43 = vrot.slane %v1121_v33, 5  ;;  %v3434_v61 = vld [vmem:[%s3258_s16 + $0x3c] sm:$0x1]  ;;  %v351_v3 = vshll.u32 %v3417_v46, 16  ;;  %v357_v4 = vshll.u32 %v3425_v52, 16  ;;  %v1140_v28 = vshrl.u32 %v2485_v5, 16 }
  0x2e   : > { %2876 = vmatpush3.bf16.msra.mxu0 %v3335_v1  ;;  %2783 = vmatprep.subr.bf16.mxu1 %v3096_v59  ;;  %v326_v1 = vor.u32 %v325_v17, %v322_v14  ;;  %v340_v32 = vor.u32 %v339_v20, %v336_v19  ;;  %v1119_v8 = vrot.slane %v1118_v48, 4  ;;  %v362_v14 = vshrl.u32 %v3422_v50, 16  ;;  %v3444_v17 = vld [vmem:[%s3258_s16 + $0x3c] sm:$0x1]  ;;  %v3452_v27 = vld [vmem:[%s3258_s16 + $0x44] sm:$0x1] }
  0x2f   : > { %2877 = vmatprep.subr.bf16.mxu0 %v3095_v54  ;;  %v353_v19 = vrot.slane %v351_v3, 5  ;;  %v359_v20 = vrot.slane %v357_v4, 5  ;;  %v371_v25 = vshll.u32 %v3434_v61, 16  ;;  %v1143_v36 = vshll.u32 %v2485_v5, 16 }
  0x30   : > { %v327_v37 = vrot.slane %v326_v1, 4  ;;  %v341_v42 = vrot.slane %v340_v32, 4  ;;  %v1124_v23 = vsel %vm3303_vm2, %v1119_v8, %v1123_v43  ;;  %v364_v1 = vrot.slane %v362_v14, 4 }
  0x31   : > { %2784 = vmatpush3.bf16.msra.mxu1 %v3096_v59  ;;  %v1132_v59 = vor.u32 %v1131_v45, %v1128_v44  ;;  %v373_v40 = vrot.slane %v371_v25, 5  ;;  %v1142_v41 = vrot.slane %v1140_v28, 4  ;;  %v1145_v45 = vrot.slane %v1143_v36, 5  ;;  %v2503_v25 = vld [vmem:[%s3258_s16 + $0x18] sm:$0xe] }
  0x32   : > { %2878 = vmatpush3.bf16.msra.mxu0 %v3095_v54  ;;  %2785 = vmatprep.subr.bf16.mxu1 %v3098_v10  ;;  %v332_v47 = vsel %vm3303_vm2, %v327_v37, %v331_v18  ;;  %v3101_v54 = vld [vmem:[%s3794_s1 + $0x160] sm:$0xff]   ;;  %v346_v58 = vsel %vm3303_vm2, %v341_v42, %v345_v22  ;;  %v365_v22 = vshll.u32 %v3422_v50, 16  ;;  %v3104_v37 = vld [vmem:[%s3794_s1 + $0x30] sm:$0xff]   ;;  %v1149_v42 = vshll.u32 %v3444_v17, 16  ;;  %v3107_v28 = vld [vmem:[%s3794_s1 + $0x178] sm:$0xff]  }
  0x33   : > { %2879 = vmatprep.subr.bf16.mxu0 %v3097_v9  ;;  %v2411_v7 = vcombine.low %v332_v47, %v346_v58  ;;  %v1133_v18 = vrot.slane %v1132_v59, 4  ;;  %v1350_v47 = vrot.slane %v3296_v34, 5  ;;  %v1354_v48 = vrot.slane %v3346_v16, 5  ;;  %v3105_v58 = vld [vmem:[%s3794_s1 + $0x170] sm:$0xff]  }
  0x34   : > { %v367_v35 = vrot.slane %v365_v22, 5  ;;  %v1146_v4 = vor.u32 %v1145_v45, %v1142_v41  ;;  %v1151_v34 = vrot.slane %v1149_v42, 5  ;;  %v1358_v22 = vrot.slane %v3352_v21, 5  ;;  %v3110_v41 = vld [vmem:[%s3794_s1 + $0x180] sm:$0xff]  }
  0x35   : > { %2786 = vmatpush3.bf16.msra.mxu1 %v3098_v10  ;;  %v350_v10 = vrot.slane %v348_v53, 4  ;;  %2775 = vmatprep.mubr.bf16.mxu1 %v2411_v7  ;;  %v1138_v32 = vsel %vm3303_vm2, %v1133_v18, %v1137_v49  ;;  %v1163_v53 = vshll.u32 %v3452_v27, 16  ;;  %v2501_v7 = vld [vmem:[%s3258_s16 + $0x8] sm:$0xe]  ;;  %v2511_v36 = vrot.slane %v2503_v25, 9 }
  0x36   : > { %2880 = vmatpush3.bf16.msra.mxu0 %v3097_v9  ;;  %2787 = vmatprep.subr.bf16.mxu1 %v3100_v30  ;;  %v2487_v9 = vld [vmem:[%s3258_s16 + $0x40] sm:$0xf]  ;;  %v2491_v39 = vcombine.low %v1124_v23, %v1138_v32  ;;  %v368_v44 = vor.u32 %v367_v35, %v364_v1  ;;  %v2509_v14 = vrot.slane %v2501_v7, 9  ;;  %v1147_v18 = vrot.slane %v1146_v4, 4 }
  0x37   : > { %2881 = vmatprep.subr.bf16.mxu0 %v3099_v29  ;;  %v354_v33 = vor.u32 %v353_v19, %v350_v10  ;;  %v1157_v49 = vshll.u32 %v2487_v9, 16  ;;  %v2502_v10 = vld [vmem:[%s3258_s16 + $0x10] sm:$0xe]  ;;  %v2421_v19 = vcombine.low %v3264_v11, %v3267_v12  ;;  %v1165_v1 = vrot.slane %v1163_v53, 5  ;;  %v2504_v12 = vld [vmem:[%s3258_s16 + $0x20] sm:$0xe] }
  0x38   : > { %2871 = vmatprep.mubr.bf16.mxu0 %v2491_v39  ;;  %v369_v3 = vrot.slane %v368_v44, 4  ;;  %v1347_v32 = vsel %vm3477_vm5, %v2509_v14, %v1346_v57  ;;  %v1152_v21 = vsel %vm3303_vm2, %v1147_v18, %v1151_v34  ;;  %v3109_v35 = vld [vmem:[%s3794_s1 + $0x80] sm:$0xff]   ;;  %v1355_v42 = vsel %vm3477_vm5, %v2511_v36, %v1354_v48  ;;  %v3114_v44 = vld [vmem:[%s3794_s1 + $0x90] sm:$0xff]  }
  0x39   : > { %2788 = vmatpush3.bf16.msra.mxu1 %v3100_v30  ;;  %v3103_v30 = vld [vmem:[%s3794_s1 + $0x168] sm:$0xff]   ;;  %v355_v43 = vrot.slane %v354_v33, 4  ;;  %v1159_v16 = vrot.slane %v1157_v49, 5  ;;  %v1362_v45 = vrot.slane %v3402_v24, 5  ;;  %v1370_v53 = vrot.slane %v3444_v17, 5  ;;  %v3118_v18 = vld [vmem:[%s3794_s1 + $0xa0] sm:$0xff]  }
  0x3a   : > { %2882 = vmatpush3.bf16.msra.mxu0 %v3099_v29  ;;  %2789 = vmatprep.subr.bf16.mxu1 %v3102_v6  ;;  %v1154_v29 = vshrl.u32 %v2487_v9, 16  ;;  %v1374_v24 = vrot.slane %v3452_v27, 5  ;;  %v690_v34 = vrot.slane %v3276_v15, 5  ;;  %v694_v17 = vrot.slane %v3321_v56, 5  ;;  %v658_v15 = vld [vmem:[%s3258_s16 + $0x8] sm:$0xe] }
  0x3b   : > { %2883 = vmatprep.subr.bf16.mxu0 %v3101_v54  ;;  %v360_v59 = vsel %vm3303_vm2, %v355_v43, %v359_v20  ;;  %v2510_v20 = vrot.slane %v2502_v10, 9  ;;  %v3112_v43 = vld [vmem:[%s3794_s1 + $0x88] sm:$0xff]   ;;  %v3115_v10 = vld [vmem:[%s3794_s1 + $0x190] sm:$0xff]   ;;  %v2434_v14 = vrot.slane %v658_v15, 9  ;;  %v702_v36 = vrot.slane %v3382_v0, 5  ;;  %v3128_v0 = vld [vmem:[%s3794_s1 + $0xc0] sm:$0xff]  }
  0x3c   : > { %v1156_v5 = vrot.slane %v1154_v29, 4  ;;  %v1366_v29 = vrot.slane %v3406_v26, 5  ;;  %v2424_v26 = vcombine.low %v3417_v46, %v3422_v50  ;;  %v3116_v46 = vld [vmem:[%s3794_s1 + $0x98] sm:$0xff]   ;;  %v3133_v15 = vld [vmem:[%s3794_s1 + $0x1c8] sm:$0xff]  }
  0x3d   : > { %2790 = vmatpush3.bf16.msra.mxu1 %v3102_v6  ;;  %v3106_v6 = vld [vmem:[%s3794_s1 + $0x38] sm:$0xff]   ;;  %v1351_v11 = vsel %vm3477_vm5, %v2510_v20, %v1350_v47 }
  0x3e   : > { %2884 = vmatpush3.bf16.msra.mxu0 %v3101_v54  ;;  %2791 = vmatprep.subr.bf16.mxu1 %v3104_v37  ;;  %v374_v54 = vsel %vm3303_vm2, %v369_v3, %v373_v40  ;;  %v1160_v23 = vor.u32 %v1159_v16, %v1156_v5  ;;  %v2517_v57 = vcombine.low %v1347_v32, %v1351_v11  ;;  %v657_v16 = vld [vmem:[%s3258_s16] sm:$0xe]  ;;  %v3117_v20 = vld [vmem:[%s3794_s1 + $0x198] sm:$0xff]  }
  0x3f   : > { %2885 = vmatprep.subr.bf16.mxu0 %v3103_v30  ;;  %v2412_v9 = vcombine.low %v360_v59, %v374_v54  ;;  %v2422_v40 = vcombine.low %v3313_v51, %v3318_v55  ;;  %v2423_v51 = vcombine.low %v3376_v62, %v3379_v63  ;;  %v686_v55 = vrot.slane %v3270_v13, 5  ;;  %v3113_v62 = vld [vmem:[%s3794_s1 + $0x188] sm:$0xff]   ;;  %v2506_v63 = vld [vmem:[%s3258_s16 + $0x30] sm:$0xe]  ;;  %v2508_v59 = vld [vmem:[%s3258_s16 + $0x40] sm:$0xe] }
  0x40   : > { %v1161_v33 = vrot.slane %v1160_v23, 4  ;;  %v2505_v13 = vld [vmem:[%s3258_s16 + $0x28] sm:$0xe]  ;;  %v2514_v49 = vrot.slane %v2506_v63, 9  ;;  %v2516_v7 = vrot.slane %v2508_v59, 9  ;;  %v2433_v56 = vrot.slane %v657_v16, 9 }
  0x41   : > { %2792 = vmatpush3.bf16.msra.mxu1 %v3104_v37  ;;  %v2512_v37 = vrot.slane %v2504_v12, 9  ;;  %v2513_v48 = vrot.slane %v2505_v13, 9  ;;  %v698_v54 = vrot.slane %v3326_v60, 5  ;;  %v659_v23 = vld [vmem:[%s3258_s16 + $0x10] sm:$0xe] }
  0x42   : > { %2886 = vmatpush3.bf16.msra.mxu0 %v3103_v30  ;;  %2776 = vmatmul.mubr.bf16.gmra.mrb[4].mxu1 %v2412_v9  ;;  %v1166_v31 = vsel %vm3303_vm2, %v1161_v33, %v1165_v1  ;;  %v1367_v4 = vsel %vm3477_vm5, %v2514_v49, %v1366_v29  ;;  %v691_v9 = vsel %vm3477_vm5, %v2434_v14, %v690_v34  ;;  %v660_v60 = vld [vmem:[%s3258_s16 + $0x18] sm:$0xe]  ;;  %v2435_v25 = vrot.slane %v659_v23, 9  ;;  %v3120_v33 = vld [vmem:[%s3794_s1 + $0xa8] sm:$0xff]  }
  0x43   : > { %2887 = vmatprep.subr.bf16.mxu0 %v3105_v58  ;;  %2793 = vmatprep.subr.bf16.mxu1 %v3106_v6  ;;  %v2492_v39 = vcombine.low %v1152_v21, %v1166_v31  ;;  %v1359_v30 = vsel %vm3477_vm5, %v2512_v37, %v1358_v22  ;;  %v1363_v3 = vsel %vm3477_vm5, %v2513_v48, %v1362_v45  ;;  %v3129_v32 = vld [vmem:[%s3258_s16 + $0x10] ss:$8 sps:$4 sm:$0xff]   ;;  %v710_v29 = vrot.slane %v3425_v52, 5  ;;  %v3132_v49 = vld [vmem:[%s3794_s1 + $0xc8] sm:$0xff]  }
  0x44   : > { %2795 = vmatprep.mubr.bf16.mxu1 %v2421_v19  ;;  %v2518_v47 = vcombine.low %v1355_v42, %v1359_v30  ;;  %v2519_v27 = vcombine.low %v1363_v3, %v1367_v4  ;;  %v687_v19 = vsel %vm3477_vm5, %v2433_v56, %v686_v55  ;;  %v695_v11 = vsel %vm3477_vm5, %v2435_v25, %v694_v17  ;;  %v3123_v31 = vld [vmem:[%s3794_s1 + $0xb0] sm:$0xff]   ;;  %v3126_v37 = vld [vmem:[%s3794_s1 + $0xb8] sm:$0xff]   ;;  %v2555_v25 = vld [vmem:[%s3258_s16 + $0x28] sm:$0xf] }
  0x45   : > { %2794 = vmatpush3.bf16.msra.mxu1 %v3106_v6  ;;  %2872 = vmatmul.mubr.bf16.gmra.mrb[4].mxu0 %v2492_v39  ;;  %v1375_v6 = vsel %vm3477_vm5, %v2516_v7, %v1374_v24  ;;  %v2441_v1 = vcombine.low %v687_v19, %v691_v9  ;;  %v661_v39 = vld [vmem:[%s3258_s16 + $0x20] sm:$0xe]  ;;  %v3127_v45 = vld [vmem:[%s3794_s1 + $0x1b8] sm:$0xff]   ;;  %v3616_v24 = vld [vmem:[%s3258_s16 + $0x14] sm:$0x1] }
  0x46   : > { %2888 = vmatpush3.bf16.msra.mxu0 %v3105_v58  ;;  %2803 = vmatprep.subr.bf16.mxu1 %v3109_v35  ;;  %v2507_v58 = vld [vmem:[%s3258_s16 + $0x38] sm:$0xe]  ;;  %v2437_v42 = vrot.slane %v661_v39, 9  ;;  %v1725_v59 = vshll.u32 %v3616_v24, 16  ;;  %v3131_v7 = vld [vmem:[%s3258_s16 + $0x20] ss:$8 sps:$4 sm:$0xff]  }
  0x47   : > { %2889 = vmatprep.subr.bf16.mxu0 %v3107_v28  ;;  %2891 = vmatprep.mubr.bf16.mxu0 %v2517_v57  ;;  %v2515_v5 = vrot.slane %v2507_v58, 9  ;;  %v3121_v57 = vld [vmem:[%s3794_s1 + $0x1a8] sm:$0xff]   ;;  %v2551_v52 = vld [vmem:[%s3258_s16 + $0x18] sm:$0xf]  ;;  %v3135_v9 = vld [vmem:[%s3794_s1 + $0x1d0] sm:$0xff]  }
  0x48   : > { %v1730_v3 = vshrl.u32 %v2551_v52, 16  ;;  %v1733_v4 = vshll.u32 %v2551_v52, 16  ;;  %v3142_v56 = vld [vmem:[%s3258_s16 + $0x30] ss:$8 sps:$4 sm:$0xff]   ;;  %v3141_v52 = vld [vmem:[%s3794_s1 + $0x1e8] sm:$0xff]  }
  0x49   : > { %v1371_v50 = vsel %vm3477_vm5, %v2515_v5, %v1370_v53  ;;  %v2549_v53 = vld [vmem:[%s3258_s16 + $0x10] sm:$0xf]  ;;  %v3136_v23 = vld [vmem:[%s3794_s1 + $0xd8] sm:$0xff]  }
  0x4a   : > { %2890 = vmatpush3.bf16.msra.mxu0 %v3107_v28  ;;  %2796 = vmatmul.mubr.bf16.vlgmr.msra.gmra.mrb[0].mxu1 %v2422_v40  ;;  %v2520_v22 = vcombine.low %v1371_v50, %v1375_v6  ;;  %v2436_v28 = vrot.slane %v660_v60, 9  ;;  %v662_v40 = vld [vmem:[%s3258_s16 + $0x28] sm:$0xe]  ;;  %v1719_v58 = vshll.u32 %v2549_v53, 16  ;;  %v1732_v50 = vrot.slane %v1730_v3, 4 }
  0x4b   : > { %2899 = vmatprep.subr.bf16.mxu0 %v3110_v41  ;;  %2804 = vmatpush3.bf16.msra.mxu1 %v3109_v35  ;;  %v3119_v35 = vld [vmem:[%s3794_s1 + $0x1a0] sm:$0xff]   ;;  %v2438_v30 = vrot.slane %v662_v40, 9  ;;  %v1735_v6 = vrot.slane %v1733_v4, 5 }
  0x4c   : > { %2805 = vmatprep.subr.bf16.mxu1 %v3112_v43  ;;  %2799 = vmatprep.mubr.bf16.mxu1 %v2423_v51  ;;  %v699_v12 = vsel %vm3477_vm5, %v2436_v28, %v698_v54  ;;  %v663_v51 = vld [vmem:[%s3258_s16 + $0x30] sm:$0xe]  ;;  %v1721_v16 = vrot.slane %v1719_v58, 5  ;;  %v1727_v54 = vrot.slane %v1725_v59, 5 }
  0x4d   : > { %2892 = vmatmul.mubr.bf16.vlgmr.msra.gmra.mrb[0].mxu0 %v2518_v47  ;;  %v2442_v21 = vcombine.low %v695_v11, %v699_v12  ;;  %v714_v47 = vrot.slane %v3434_v61, 5  ;;  %v2439_v63 = vrot.slane %v663_v51, 9  ;;  %v3620_v61 = vld [vmem:[%s3258_s16 + $0x1c] sm:$0x1]  ;;  %v3144_v11 = vld [vmem:[%s3258_s16 + $0x40] ss:$8 sps:$4 sm:$0xff]  }
  0x4e   : > { %2900 = vmatpush3.bf16.msra.mxu0 %v3110_v41  ;;  %2895 = vmatprep.mubr.bf16.mxu0 %v2519_v27  ;;  %v706_v41 = vrot.slane %v3385_v2, 5  ;;  %v703_v2 = vsel %vm3477_vm5, %v2437_v42, %v702_v36  ;;  %v1739_v5 = vshll.u32 %v3620_v61, 16  ;;  %v2557_v12 = vld [vmem:[%s3258_s16 + $0x30] sm:$0xf]  ;;  %v1761_v36 = vshll.u32 %v2555_v25, 16 }
  0x4f   : > { %2806 = vmatpush3.bf16.msra.mxu1 %v3112_v43  ;;  %2901 = vmatprep.subr.bf16.mxu0 %v3113_v62  ;;  %v3124_v43 = vld [vmem:[%s3794_s1 + $0x1b0] sm:$0xff]   ;;  %v711_v34 = vsel %vm3477_vm5, %v2439_v63, %v710_v29  ;;  %v1772_v40 = vshrl.u32 %v2557_v12, 16  ;;  %v3665_v51 = vld [vmem:[%s3258_s16 + $0x24] sm:$0x1] }
  0x50   : > { %2807 = vmatprep.subr.bf16.mxu1 %v3114_v44  ;;  %v707_v55 = vsel %vm3477_vm5, %v2438_v30, %v706_v41  ;;  %v1741_v19 = vrot.slane %v1739_v5, 5  ;;  %v1775_v41 = vshll.u32 %v2557_v12, 16  ;;  %v1763_v29 = vrot.slane %v1761_v36, 5  ;;  %v2563_v5 = vld [vmem:[%s3258_s16 + $0x48] sm:$0xf]  ;;  %v3147_v12 = vld [vmem:[%s3794_s1 + $0x1f8] sm:$0xff]  }
  0x51   : > { %v2443_v13 = vcombine.low %v703_v2, %v707_v55  ;;  %v3668_v2 = vld [vmem:[%s3258_s16 + $0x2c] sm:$0x1]  ;;  %v1753_v58 = vshll.u32 %v3665_v51, 16 }
  0x52   : > { %2800 = vmatmul.mubr.bf16.gmra.mrb[4].mxu1 %v2424_v26  ;;  %2902 = vmatpush3.bf16.msra.mxu0 %v3113_v62  ;;  %v3130_v62 = vld [vmem:[%s3794_s1 + $0x1c0] sm:$0xff]   ;;  %v1716_v26 = vshrl.u32 %v2549_v53, 16  ;;  %v1777_v63 = vrot.slane %v1775_v41, 5  ;;  %v1767_v59 = vshll.u32 %v3668_v2, 16 }
  0x53   : > { %2808 = vmatpush3.bf16.msra.mxu1 %v3114_v44  ;;  %2903 = vmatprep.subr.bf16.mxu0 %v3115_v10  ;;  %v664_v44 = vld [vmem:[%s3258_s16 + $0x38] sm:$0xe]  ;;  %v2561_v53 = vld [vmem:[%s3258_s16 + $0x40] sm:$0xf] }
  0x54   : > { %2809 = vmatprep.subr.bf16.mxu1 %v3116_v46  ;;  %2819 = vmatprep.mubr.bf16.mxu1 %v2441_v1  ;;  %v2440_v48 = vrot.slane %v664_v44, 9  ;;  %v1718_v27 = vrot.slane %v1716_v26, 4  ;;  %v2553_v1 = vld [vmem:[%s3258_s16 + $0x20] sm:$0xf]  ;;  %v3143_v26 = vld [vmem:[%s3794_s1 + $0xf0] sm:$0xff]  }
  0x55   : > { %2896 = vmatmul.mubr.bf16.gmra.mrb[4].mxu0 %v2520_v22 }
  0x56   : > { %2904 = vmatpush3.bf16.msra.mxu0 %v3115_v10  ;;  %2915 = vmatprep.mubr.bf16.mxu0 %v3129_v32  ;;  %v715_v17 = vsel %vm3477_vm5, %v2440_v48, %v714_v47  ;;  %v1722_v10 = vor.u32 %v1721_v16, %v1718_v27  ;;  %v3671_v47 = vld [vmem:[%s3258_s16 + $0x34] sm:$0x1]  ;;  %v1803_v27 = vshll.u32 %v2561_v53, 16 }
  0x57   : > { %2810 = vmatpush3.bf16.msra.mxu1 %v3116_v46  ;;  %2905 = vmatprep.subr.bf16.mxu0 %v3117_v20  ;;  %v3134_v46 = vld [vmem:[%s3794_s1 + $0xd0] sm:$0xff]   ;;  %v2444_v14 = vcombine.low %v711_v34, %v715_v17  ;;  %v1781_v3 = vshll.u32 %v3671_v47, 16  ;;  %v1800_v17 = vshrl.u32 %v2561_v53, 16  ;;  %v2578_v53 = vld [vmem:[%s3258_s16 + $0x18] sm:$0xe] }
  0x58   : > { %2811 = vmatprep.subr.bf16.mxu1 %v3118_v18  ;;  %v1723_v22 = vrot.slane %v1722_v10, 4 }
  0x5a   : > { %2906 = vmatpush3.bf16.msra.mxu0 %v3117_v20  ;;  %v3148_v20 = vld [vmem:[%s3258_s16 + $0x8] ss:$8 sps:$4 sm:$0xff]   ;;  %v1728_v28 = vsel %vm3303_vm2, %v1723_v22, %v1727_v54 }
  0x5b   : > { %2812 = vmatpush3.bf16.msra.mxu1 %v3118_v18  ;;  %2907 = vmatprep.subr.bf16.mxu0 %v3119_v35  ;;  %v1736_v18 = vor.u32 %v1735_v6, %v1732_v50  ;;  %v1814_v50 = vshrl.u32 %v2563_v5, 16  ;;  %v1817_v6 = vshll.u32 %v2563_v5, 16  ;;  %v2586_v5 = vrot.slane %v2578_v53, 9 }
  0x5c   : > { %2813 = vmatprep.subr.bf16.mxu1 %v3120_v33 }
  0x5d   : > { %v1737_v60 = vrot.slane %v1736_v18, 4  ;;  %v1769_v18 = vrot.slane %v1767_v59, 5  ;;  %v3153_v59 = vld [vmem:[%s3258_s16 + $0x38] ss:$8 sps:$4 sm:$0xff]  }
  0x5e   : > { %2908 = vmatpush3.bf16.msra.mxu0 %v3119_v35  ;;  %v1744_v35 = vshrl.u32 %v2553_v1, 16 }
  0x5f   : > { %2814 = vmatpush3.bf16.msra.mxu1 %v3120_v33  ;;  %2909 = vmatprep.subr.bf16.mxu0 %v3121_v57  ;;  %v1742_v32 = vsel %vm3303_vm2, %v1737_v60, %v1741_v19  ;;  %v3138_v33 = vld [vmem:[%s3794_s1 + $0xe0] sm:$0xff]   ;;  %v3698_v60 = vld [vmem:[%s3258_s16 + $0x4c] sm:$0x1] }
  0x60   : > { %2815 = vmatprep.subr.bf16.mxu1 %v3123_v31  ;;  %v2565_v39 = vcombine.low %v1728_v28, %v1742_v32  ;;  %v1746_v55 = vrot.slane %v1744_v35, 4  ;;  %v1816_v28 = vrot.slane %v1814_v50, 4  ;;  %v1819_v32 = vrot.slane %v1817_v6, 5  ;;  %v3149_v35 = vld [vmem:[%s3258_s16 + $0x18] ss:$8 sps:$4 sm:$0xff]   ;;  %v3157_v6 = vld [vmem:[%s3794_s1 + $0x228] sm:$0xff]  }
  0x62   : > { %2910 = vmatpush3.bf16.msra.mxu0 %v3121_v57  ;;  %v1758_v57 = vshrl.u32 %v2555_v25, 16  ;;  %v1805_v25 = vrot.slane %v1803_v27, 5 }
  0x63   : > { %2816 = vmatpush3.bf16.msra.mxu1 %v3123_v31  ;;  %2911 = vmatprep.subr.bf16.mxu0 %v3124_v43  ;;  %v1747_v31 = vshll.u32 %v2553_v1, 16  ;;  %v1802_v1 = vrot.slane %v1800_v17, 4 }
  0x64   : > { %2817 = vmatprep.subr.bf16.mxu1 %v3126_v37 }
  0x65   : > { %v1749_v44 = vrot.slane %v1747_v31, 5 }
  0x66   : > { %2912 = vmatpush3.bf16.msra.mxu0 %v3124_v43  ;;  %v3139_v43 = vld [vmem:[%s3794_s1 + $0x1e0] sm:$0xff]  }
  0x67   : > { %2818 = vmatpush3.bf16.msra.mxu1 %v3126_v37  ;;  %2913 = vmatprep.subr.bf16.mxu0 %v3127_v45  ;;  %v3137_v37 = vld [vmem:[%s3794_s1 + $0x1d8] sm:$0xff]  }
  0x68   : > { %2827 = vmatprep.subr.bf16.mxu1 %v3128_v0 }
  0x6a   : > { %2820 = vmatmul.mubr.bf16.vlgmr.msra.gmra.mrb[0].mxu1 %v2442_v21  ;;  %2914 = vmatpush3.bf16.msra.mxu0 %v3127_v45  ;;  %v2559_v21 = vld [vmem:[%s3258_s16 + $0x38] sm:$0xf]  ;;  %v1760_v45 = vrot.slane %v1758_v57, 4 }
  0x6b   : > { %2828 = vmatpush3.bf16.msra.mxu1 %v3128_v0  ;;  %2823 = vmatprep.mubr.bf16.mxu1 %v2443_v13  ;;  %v1786_v42 = vshrl.u32 %v2559_v21, 16  ;;  %v1789_v30 = vshll.u32 %v2559_v21, 16  ;;  %v3140_v0 = vld [vmem:[%s3794_s1 + $0xe8] sm:$0xff]   ;;  %v1774_v13 = vrot.slane %v1772_v40, 4  ;;  %v2581_v21 = vld [vmem:[%s3258_s16 + $0x30] sm:$0xe] }
  0x6c   : > { %2829 = vmatprep.subr.bf16.mxu1 %v3132_v49  ;;  %2923 = vmatprep.subr.bf16.mxu0 %v3130_v62  ;;  %v1764_v34 = vor.u32 %v1763_v29, %v1760_v45 }
  0x6d   : > { %2916 = vmatmul.mubr.bf16.vlgmr.msra.gmra.mrb[0].mxu0 %v3131_v7  ;;  %v1788_v48 = vrot.slane %v1786_v42, 4  ;;  %v1750_v7 = vor.u32 %v1749_v44, %v1746_v55  ;;  %v1778_v16 = vor.u32 %v1777_v63, %v1774_v13  ;;  %v1806_v42 = vor.u32 %v1805_v25, %v1802_v1 }
  0x6e   : > { %2924 = vmatpush3.bf16.msra.mxu0 %v3130_v62  ;;  %2919 = vmatprep.mubr.bf16.mxu0 %v3142_v56  ;;  %v3674_v62 = vld [vmem:[%s3258_s16 + $0x3c] sm:$0x1]  ;;  %v3145_v56 = vld [vmem:[%s3794_s1 + $0x1f0] sm:$0xff]   ;;  %v1765_v54 = vrot.slane %v1764_v34, 4  ;;  %v2022_v55 = vrot.slane %v3671_v47, 5  ;;  %v2014_v25 = vrot.slane %v3665_v51, 5 }
  0x6f   : > { %2830 = vmatpush3.bf16.msra.mxu1 %v3132_v49  ;;  %2925 = vmatprep.subr.bf16.mxu0 %v3133_v15  ;;  %v1791_v49 = vrot.slane %v1789_v30, 5  ;;  %v1795_v4 = vshll.u32 %v3674_v62, 16  ;;  %v1751_v10 = vrot.slane %v1750_v7, 4  ;;  %v1779_v19 = vrot.slane %v1778_v16, 4  ;;  %v3155_v16 = vld [vmem:[%s3794_s1 + $0x218] sm:$0xff]  }
  0x70   : > { %2831 = vmatprep.subr.bf16.mxu1 %v3134_v46  ;;  %v1770_v57 = vsel %vm3303_vm2, %v1765_v54, %v1769_v18  ;;  %v1820_v30 = vor.u32 %v1819_v32, %v1816_v28  ;;  %v2026_v45 = vrot.slane %v3674_v62, 5  ;;  %v2010_v7 = vrot.slane %v3620_v61, 5 }
  0x71   : > { %v2034_v54 = vrot.slane %v3698_v60, 5  ;;  %v2018_v32 = vrot.slane %v3668_v2, 5 }
  0x72   : > { %2824 = vmatmul.mubr.bf16.gmra.mrb[4].mxu1 %v2444_v14  ;;  %2926 = vmatpush3.bf16.msra.mxu0 %v3133_v15  ;;  %v3146_v15 = vld [vmem:[%s3794_s1 + $0xf8] sm:$0xff]   ;;  %v1755_v14 = vrot.slane %v1753_v58, 5  ;;  %v3154_v58 = vld [vmem:[%s3794_s1 + $0x210] sm:$0xff]   ;;  %v2011_v61 = vsel %vm3477_vm5, %v2586_v5, %v2010_v7 }
  0x73   : > { %2832 = vmatpush3.bf16.msra.mxu1 %v3134_v46  ;;  %2843 = vmatprep.mubr.bf16.mxu1 %v3148_v20  ;;  %v1792_v46 = vor.u32 %v1791_v49, %v1788_v48  ;;  %v1783_v20 = vrot.slane %v1781_v3, 5  ;;  %v2577_v49 = vld [vmem:[%s3258_s16 + $0x10] sm:$0xe] }
  0x74   : > { %2833 = vmatprep.subr.bf16.mxu1 %v3136_v23  ;;  %2927 = vmatprep.subr.bf16.mxu0 %v3135_v9  ;;  %v1756_v31 = vsel %vm3303_vm2, %v1751_v10, %v1755_v14  ;;  %v2585_v3 = vrot.slane %v2577_v49, 9  ;;  %v2584_v10 = vld [vmem:[%s3258_s16 + $0x48] sm:$0xe] }
  0x75   : > { %2920 = vmatmul.mubr.bf16.gmra.mrb[4].mxu0 %v3144_v11  ;;  %v1793_v22 = vrot.slane %v1792_v46, 4  ;;  %v3150_v11 = vld [vmem:[%s3794_s1 + $0x200] sm:$0xff]   ;;  %v1784_v40 = vsel %vm3303_vm2, %v1779_v19, %v1783_v20  ;;  %v2566_v29 = vcombine.low %v1756_v31, %v1770_v57  ;;  %v2592_v19 = vrot.slane %v2584_v10, 9  ;;  %v3159_v20 = vld [vmem:[%s3794_s1 + $0x238] sm:$0xff]  }
  0x76   : > { %2928 = vmatpush3.bf16.msra.mxu0 %v3135_v9  ;;  %2939 = vmatprep.mubr.bf16.mxu0 %v2565_v39  ;;  %v1797_v9 = vrot.slane %v1795_v4, 5  ;;  %v3152_v39 = vld [vmem:[%s3258_s16 + $0x28] ss:$8 sps:$4 sm:$0xff]   ;;  %v2006_v4 = vrot.slane %v3616_v24, 5 }
  0x77   : > { %2834 = vmatpush3.bf16.msra.mxu1 %v3136_v23  ;;  %2929 = vmatprep.subr.bf16.mxu0 %v3137_v37  ;;  %v3695_v23 = vld [vmem:[%s3258_s16 + $0x44] sm:$0x1] }
  0x78   : > { %2835 = vmatprep.subr.bf16.mxu1 %v3138_v33  ;;  %v1809_v36 = vshll.u32 %v3695_v23, 16  ;;  %v1798_v41 = vsel %vm3303_vm2, %v1793_v22, %v1797_v9  ;;  %v2007_v24 = vsel %vm3477_vm5, %v2585_v3, %v2006_v4  ;;  %v2030_v14 = vrot.slane %v3695_v23, 5  ;;  %v2579_v22 = vld [vmem:[%s3258_s16 + $0x20] sm:$0xe]  ;;  %v2580_v9 = vld [vmem:[%s3258_s16 + $0x28] sm:$0xe] }
  0x79   : > { %v2567_v13 = vcombine.low %v1784_v40, %v1798_v41  ;;  %v2593_v50 = vcombine.low %v2007_v24, %v2011_v61  ;;  %v2035_v23 = vsel %vm3477_vm5, %v2592_v19, %v2034_v54  ;;  %v2588_v28 = vrot.slane %v2580_v9, 9 }
  0x7a   : > { %2930 = vmatpush3.bf16.msra.mxu0 %v3137_v37  ;;  %v1823_v37 = vshll.u32 %v3698_v60, 16  ;;  %v1811_v63 = vrot.slane %v1809_v36, 5  ;;  %v2587_v60 = vrot.slane %v2579_v22, 9 }
  0x7b   : > { %2836 = vmatpush3.bf16.msra.mxu1 %v3138_v33  ;;  %2931 = vmatprep.subr.bf16.mxu0 %v3139_v43  ;;  %v2582_v33 = vld [vmem:[%s3258_s16 + $0x38] sm:$0xe] }
  0x7c   : > { %2837 = vmatprep.subr.bf16.mxu1 %v3140_v0  ;;  %v2590_v44 = vrot.slane %v2582_v33, 9  ;;  %v1825_v48 = vrot.slane %v1823_v37, 5 }
  0x7e   : > { %2932 = vmatpush3.bf16.msra.mxu0 %v3139_v43  ;;  %v3151_v43 = vld [vmem:[%s3794_s1 + $0x208] sm:$0xff]   ;;  %v2027_v62 = vsel %vm3477_vm5, %v2590_v44, %v2026_v45 }
  0x7f   : > { %2838 = vmatpush3.bf16.msra.mxu1 %v3140_v0  ;;  %2933 = vmatprep.subr.bf16.mxu0 %v3141_v52  ;;  %v2589_v0 = vrot.slane %v2581_v21, 9  ;;  %v2019_v21 = vsel %vm3477_vm5, %v2588_v28, %v2018_v32 }
  0x80   : > { %2839 = vmatprep.subr.bf16.mxu1 %v3143_v26 }
  0x81   : > { %v2023_v47 = vsel %vm3477_vm5, %v2589_v0, %v2022_v55 }
  0x82   : > { %2934 = vmatpush3.bf16.msra.mxu0 %v3141_v52  ;;  %v1807_v52 = vrot.slane %v1806_v42, 4  ;;  %v2595_v34 = vcombine.low %v2023_v47, %v2027_v62 }
  0x83   : > { %2840 = vmatpush3.bf16.msra.mxu1 %v3143_v26  ;;  %2935 = vmatprep.subr.bf16.mxu0 %v3145_v56  ;;  %v1821_v26 = vrot.slane %v1820_v30, 4 }
  0x84   : > { %2841 = vmatprep.subr.bf16.mxu1 %v3146_v15  ;;  %v1812_v17 = vsel %vm3303_vm2, %v1807_v52, %v1811_v63 }
  0x85   : > { %v1826_v27 = vsel %vm3303_vm2, %v1821_v26, %v1825_v48 }
  0x86   : > { %2936 = vmatpush3.bf16.msra.mxu0 %v3145_v56  ;;  %v2568_v46 = vcombine.low %v1812_v17, %v1826_v27  ;;  %v2583_v56 = vld [vmem:[%s3258_s16 + $0x40] sm:$0xe]  ;;  %s2615_s16 = sshll.u32 %s3806_s12, 5 }
  0x87   : > { %2842 = vmatpush3.bf16.msra.mxu1 %v3146_v15  ;;  %2937 = vmatprep.subr.bf16.mxu0 %v3147_v12  ;;  %v3158_v15 = vld [vmem:[%s3794_s1 + $0x230] sm:$0xff]   ;;  %v2591_v18 = vrot.slane %v2583_v56, 9  ;;  %s219_s6 = scalar_lea.vmem %s3795_s2, %s2615_s16 }
  0x88   : > { %2971 = vmatprep.subr.bf16.mxu1 %v3150_v11 }
  0x89   : > { %v2031_v1 = vsel %vm3477_vm5, %v2591_v18, %v2030_v14 }
  0x8a   : > { %2844 = vmatmul.mubr.bf16.vlgmr.msra.gmra.mrb[0].mxu1 %v3149_v35  ;;  %2938 = vmatpush3.bf16.msra.mxu0 %v3147_v12  ;;  %v2015_v12 = vsel %vm3477_vm5, %v2587_v60, %v2014_v25 }
  0x8b   : > { %2979 = vmatpush3.bf16.msra.mxu1 %v3150_v11  ;;  %2847 = vmatprep.mubr.bf16.mxu1 %v3152_v39  ;;  %v2594_v33 = vcombine.low %v2015_v12, %v2019_v21 }
  0x8c   : > { %2972 = vmatprep.subr.bf16.mxu1 %v3151_v43  ;;  %2947 = vmatprep.subr.bf16.mxu0 %v3150_v11 }
  0x8d   : > { %2940 = vmatmul.mubr.bf16.vlgmr.msra.gmra.mrb[0].mxu0 %v2566_v29 }
  0x8e   : > { %2948 = vmatpush3.bf16.msra.mxu0 %v3150_v11  ;;  %2943 = vmatprep.mubr.bf16.mxu0 %v2567_v13  ;;  %v2596_v11 = vcombine.low %v2031_v1, %v2035_v23 }
  0x8f   : > { %2980 = vmatpush3.bf16.msra.mxu1 %v3151_v43  ;;  %2949 = vmatprep.subr.bf16.mxu0 %v3151_v43 }
  0x90   : > { %2973 = vmatprep.subr.bf16.mxu1 %v3154_v58 }
  0x92   : > { %2848 = vmatmul.mubr.bf16.gmra.mrb[4].mxu1 %v3153_v59  ;;  %2950 = vmatpush3.bf16.msra.mxu0 %v3151_v43 }
  0x93   : > { %2981 = vmatpush3.bf16.msra.mxu1 %v3154_v58  ;;  %2967 = vmatprep.mubr.bf16.mxu1 %v2595_v34 }
  0x94   : > { %2974 = vmatprep.subr.bf16.mxu1 %v3155_v16  ;;  %2951 = vmatprep.subr.bf16.mxu0 %v3154_v58 }
  0x95   : > { %2944 = vmatmul.mubr.bf16.gmra.mrb[4].mxu0 %v2568_v46 }
  0x96   : > { %2952 = vmatpush3.bf16.msra.mxu0 %v3154_v58  ;;  %2963 = vmatprep.mubr.bf16.mxu0 %v2593_v50 }
  0x97   : > { %2982 = vmatpush3.bf16.msra.mxu1 %v3155_v16  ;;  %2953 = vmatprep.subr.bf16.mxu0 %v3155_v16 }
  0x98   : > { %2975 = vmatprep.subr.bf16.mxu1 %v3156_v38 }
  0x9a   : > { %2954 = vmatpush3.bf16.msra.mxu0 %v3155_v16 }
  0x9b   : > { %2983 = vmatpush3.bf16.msra.mxu1 %v3156_v38  ;;  %2955 = vmatprep.subr.bf16.mxu0 %v3156_v38 }
  0x9c   : > { %2976 = vmatprep.subr.bf16.mxu1 %v3157_v6 }
  0x9e   : > { %2956 = vmatpush3.bf16.msra.mxu0 %v3156_v38 }
  0x9f   : > { %2984 = vmatpush3.bf16.msra.mxu1 %v3157_v6  ;;  %2957 = vmatprep.subr.bf16.mxu0 %v3157_v6 }
  0xa0   : > { %2977 = vmatprep.subr.bf16.mxu1 %v3158_v15 }
  0xa2   : > { %2958 = vmatpush3.bf16.msra.mxu0 %v3157_v6 }
  0xa3   : > { %2985 = vmatpush3.bf16.msra.mxu1 %v3158_v15  ;;  %2959 = vmatprep.subr.bf16.mxu0 %v3158_v15 }
  0xa4   : > { %2978 = vmatprep.subr.bf16.mxu1 %v3159_v20 }
  0xa6   : > { %2960 = vmatpush3.bf16.msra.mxu0 %v3158_v15 }
  0xa7   : > { %2986 = vmatpush3.bf16.msra.mxu1 %v3159_v20  ;;  %2961 = vmatprep.subr.bf16.mxu0 %v3159_v20 }
  0xaa   : > { %2968 = vmatmul.mubr.bf16.vlgmr.msra.gmra.mrb[8].mxu1 %v2596_v11  ;;  %2962 = vmatpush3.bf16.msra.mxu0 %v3159_v20 }
  0xad   : > { %2964 = vmatmul.mubr.bf16.vlgmr.msra.gmra.mrb[0].mxu0 %v2594_v33 }
 0x15d   : > { %v2845_v35 = vpop.f32.mrb[0].mxu1 }
 0x15e   : > { %v1000_v51 = vpop.f32.mrb[1].mxu1 }
 0x15f   : > { %v2846_v31 = vpop.f32.mrb[2].mxu1 }
 0x160   : > { %v1003_v57 = vpop.f32.mrb[3].mxu1 }
 0x165   : > { %v2849_v2 = vpop.f32.mrb[4].mxu1 }
 0x166   : > { %v1016_v36 = vpop.f32.mrb[5].mxu1 }
 0x167   : > { %v2850_v37 = vpop.f32.mrb[6].mxu1 }
 0x168   : > { %v1019_v39 = vpop.f32.mrb[7].mxu1  ;;  %v2945_v40 = vpop.f32.mrb[4].mxu0 }
 0x169   : > { %v2991_v41 = vadd.f32 %v2945_v40, %v2849_v2  ;;  %v1957_v42 = vpop.f32.mrb[5].mxu0 }
 0x16a   : > { %v2993_v30 = vadd.f32 %v1957_v42, %v1016_v36  ;;  %v2946_v8 = vpop.f32.mrb[6].mxu0 }
 0x16b   : > { %v2995_v43 = vadd.f32 %v2946_v8, %v2850_v37  ;;  %v1960_v0 = vpop.f32.mrb[7].mxu0 }
 0x16c   : > { %v2997_v55 = vadd.f32 %v1960_v0, %v1019_v39 }
 0x17d   : > { %v2969_v44 = vpop.f32.mrb[8].mxu1 }
 0x17e   : > { %v2992_v45 = vadd.f32 %v2991_v41, %v2969_v44  ;;  %v2166_v29 = vpop.f32.mrb[9].mxu1 }
 0x17f   : > { %v2994_v13 = vadd.f32 %v2993_v30, %v2166_v29  ;;  %v2970_v63 = vpop.f32.mrb[10].mxu1 }
 0x180   : > { %v2996_v48 = vadd.f32 %v2995_v43, %v2970_v63  ;;  %v2169_v49 = vpop.f32.mrb[11].mxu1  ;;  %v2965_v52 = vpop.f32.mrb[0].mxu0  ;;  %v2249_v20 = vmul.f32 %v2992_v45, %v2992_v45 }
 0x181   : > { %v2998_v53 = vadd.f32 %v2997_v55, %v2169_v49  ;;  %v2987_v47 = vadd.f32 %v2965_v52, %v2845_v35  ;;  %v2150_v62 = vpop.f32.mrb[1].mxu0  ;;  %v2247_v56 = vmul.f32 %v2994_v13, %v2994_v13 }
 0x182   : > { %v2642_v26 = vpack.c.bf16 %v2996_v48, %v2992_v45  ;;  %v2988_v59 = vadd.f32 %v2150_v62, %v1000_v51  ;;  %v2966_v3 = vpop.f32.mrb[2].mxu0  ;;  %v2250_v1 = vmul.f32 %v2996_v48, %v2996_v48 }
 0x183   : > { %v2637_v58 = vpack.c.bf16 %v2998_v53, %v2994_v13  ;;  %v2989_v4 = vadd.f32 %v2966_v3, %v2846_v31  ;;  %v2153_v5 = vpop.f32.mrb[3].mxu0  ;;  %v2245_v61 = vmul.f32 %v2987_v47, %v2987_v47  ;;  %v2248_v18 = vmul.f32 %v2998_v53, %v2998_v53 }
 0x184   : > { %2646 = vst [vmem:[%s219_s6 + $0x18] sm:$0xff] %v2642_v26   ;;  %v2990_v7 = vadd.f32 %v2153_v5, %v1003_v57  ;;  %v2243_v17 = vmul.f32 %v2988_v59, %v2988_v59 }
 0x185   : > { %2645 = vst [vmem:[%s219_s6 + $0x10] sm:$0xff] %v2637_v58   ;;  %v2632_v34 = vpack.c.bf16 %v2989_v4, %v2987_v47  ;;  %v2246_v50 = vmul.f32 %v2989_v4, %v2989_v4 }
 0x186   : > { %v2627_v27 = vpack.c.bf16 %v2990_v7, %v2988_v59  ;;  %v2229_v16 = vadd.f32 %v2990_v7, %v2988_v59  ;;  %v2244_v24 = vmul.f32 %v2990_v7, %v2990_v7 }
 0x187   : > { %2644 = vst [vmem:[%s219_s6 + $0x8] sm:$0xff] %v2632_v34  }
 0x188   : > { %2628 = vst [vmem:[%s219_s6] sm:$0xff] %v2627_v27   ;;  %v2230_v46 = vadd.f32 %v2987_v47, %v2229_v16  ;;  %v2251_v38 = vadd.f32 %v2244_v24, %v2243_v17 }
 0x18a   : > { %v2252_v6 = vadd.f32 %v2251_v38, %v2245_v61  ;;  %v2231_v15 = vadd.f32 %v2989_v4, %v2230_v46 }
 0x18c   : > { %v2232_v10 = vadd.f32 %v2994_v13, %v2231_v15  ;;  %v2253_v14 = vadd.f32 %v2252_v6, %v2246_v50 }
 0x18e   : > { %v2233_v54 = vadd.f32 %v2998_v53, %v2232_v10  ;;  %v2254_v19 = vadd.f32 %v2253_v14, %v2247_v56 }
 0x190   : > { %v2234_v22 = vadd.f32 %v2992_v45, %v2233_v54  ;;  %v2255_v9 = vadd.f32 %v2254_v19, %v2248_v18 }
 0x192   : > { %v2235_v23 = vadd.f32 %v2996_v48, %v2234_v22  ;;  %v2256_v60 = vadd.f32 %v2255_v9, %v2249_v20 }
 0x194   : > { %v2236_v25 = vrot.slane %v2235_v23, 4  ;;  %v2257_v28 = vadd.f32 %v2256_v60, %v2250_v1 }
 0x196   : > { %v2237_v32 = vadd.f32 %v2236_v25, %v2235_v23  ;;  %v2258_v11 = vrot.slane %v2257_v28, 4 }
 0x198   : > { %v2238_v12 = vrot.slane %v2237_v32, 2  ;;  %v2259_v21 = vadd.f32 %v2258_v11, %v2257_v28 }
 0x19a   : > { %v2239_v33 = vadd.f32 %v2238_v12, %v2237_v32  ;;  %v2260_v35 = vrot.slane %v2259_v21, 2 }
 0x19c   : > { %v2240_v51 = vrot.slane %v2239_v33, 1  ;;  %v2261_v31 = vadd.f32 %v2260_v35, %v2259_v21 }
 0x19e   : > { %v2241_v57 = vadd.f32 %v2240_v51, %v2239_v33  ;;  %v2262_v2 = vrot.slane %v2261_v31, 1 }
 0x1a0   : > { %2242 = vst [vmem:[%s226_s10] sm:$0x1] %v2241_v57  ;;  %v2263_v36 = vadd.f32 %v2262_v2, %v2261_v31 }
 0x1a2   : > { %2264 = vst [vmem:[%s226_s10 + $0x1] sm:$0x1] %v2263_v36 }
 0x1a3 PF: > { %s14_s14 = sadd.s32 1, %s3182_s14   ;;  %s3801_s12 = smov %s3178_s13 }
 0x1a4   : > { %p11_p5 = scmp.ge.s32.totalorder %s14_s14, 4   ;;  %s3802_s13 = smov %s3804_s15 }
 0x1a6   :  { %13 = sbr.rel (!%p11_p5) target bundleno = 2 (0x2), region = 75 }

</bundles_post_ra>
